<compile_context>
chip_gen: v7x
topology: tpu7x:2x2x1
jax: 0.10.0
libtpu: 0.0.40
codegen_flags: <defaults>
</compile_context>

<pallas_src>
import functools

import jax
import jax.numpy as jnp
from jax.experimental import pallas as pl
from jax.experimental.pallas import tpu as pltpu

# ----- deterministic Kalman "parameters" (constant-velocity model) -----------
DT = 1.0
Q_DIAG = (0.01, 0.01, 0.10, 0.10)   # process noise diag [x, y, vx, vy]
R_DIAG = (0.10, 0.10)               # measurement noise diag [x, y]
P0_DIAG = (1.0, 1.0, 1.0, 1.0)      # covariance used by kalman.init()

SUBLANES = 8
LANES = 128
CHUNK = SUBLANES * LANES            # 1024 objects = one vreg per carried tile


def _axis_predict(pos, vel, p00, p01, p11, q_pos, q_vel):
    """2-state CV predict for one decoupled axis.  P = [[p00, p01], [p01, p11]]."""
    pos_p = pos + DT * vel
    p00_p = p00 + DT * (2.0 * p01 + DT * p11) + q_pos
    p01_p = p01 + DT * p11
    p11_p = p11 + q_vel
    return pos_p, vel, p00_p, p01_p, p11_p


def _axis_step(z, pos, vel, p00, p01, p11, q_pos, q_vel, r):
    """Predict + scalar-measurement update for one decoupled axis (H = [1, 0])."""
    pos_p, vel_p, p00_p, p01_p, p11_p = _axis_predict(pos, vel, p00, p01, p11,
                                                      q_pos, q_vel)
    inv_s = pl.reciprocal(p00_p + r, approx=True)     # EUP slot, ~free
    k0 = p00_p * inv_s
    k1 = p01_p * inv_s
    innov = z - pos_p
    pos_n = pos_p + k0 * innov
    vel_n = vel_p + k1 * innov
    p00_n = p00_p - k0 * p00_p
    p01_n = p01_p - k0 * p01_p
    p11_n = p11_p - k1 * p01_p
    return pos_n, vel_n, p00_n, p01_n, p11_n


def multi_object_kalman_kernel(obs_ref, mask_ref, out_ref, *, hist_time, len_pred):
    """obs_ref:  (T,   2, C, 8, 128) f32
       mask_ref: (T,      C, 8, 128) f32 (0/1)
       out_ref:  (T+L, 5, C, 8, 128) f32 -> [x, y, sigma_x, sigma_y, rho]"""
    n_chunks = obs_ref.shape[2]
    shape = (SUBLANES, LANES)

    # Hoisted loop-invariant constant tiles.
    zeros = jnp.zeros(shape, jnp.float32)
    p0_a = jnp.full(shape, P0_DIAG[0], jnp.float32)   # var(x)
    p0_d = jnp.full(shape, P0_DIAG[1], jnp.float32)   # var(y)
    p0_c = jnp.full(shape, P0_DIAG[2], jnp.float32)   # var(vx)
    p0_f = jnp.full(shape, P0_DIAG[3], jnp.float32)   # var(vy)

    def run_chunk(ci):
        # Decoupled state: x-axis (x, vx, a, b, c), y-axis (y, vy, d, e, f),
        # with per-axis covariance [[a, b], [b, c]] / [[d, e], [e, f]].
        x = zeros; vx = zeros; a = zeros; b = zeros; c = zeros
        y = zeros; vy = zeros; d = zeros; e = zeros; f = zeros
        there_before = jnp.zeros(shape, jnp.bool_)
        there = jnp.zeros(shape, jnp.bool_)

        # ---------------- history filtering ----------------
        for i in range(hist_time):
            zx = obs_ref[i, 0, ci]
            zy = obs_ref[i, 1, ci]
            there = mask_ref[i, ci] > 0.5
            there_class = there

            if hist_time - i <= 3:
                there_class = jnp.logical_and(there_class, there_before)
            else:
                # kalman.init() for newly-appearing objects: position from
                # obs[i], velocity from obs[i+1] - obs[i]; P = diag(P0_DIAG).
                new = jnp.logical_and(there_class, jnp.logical_not(there_before))
                nxt_x = obs_ref[i + 1, 0, ci]
                nxt_y = obs_ref[i + 1, 1, ci]
                x = jnp.where(new, zx, x)
                y = jnp.where(new, zy, y)
                vx = jnp.where(new, nxt_x - zx, vx)
                vy = jnp.where(new, nxt_y - zy, vy)
                a = jnp.where(new, p0_a, a)
                b = jnp.where(new, zeros, b)
                c = jnp.where(new, p0_c, c)
                d = jnp.where(new, p0_d, d)
                e = jnp.where(new, zeros, e)
                f = jnp.where(new, p0_f, f)

            # kalman.step(): predict + measurement update where present.
            xs = _axis_step(zx, x, vx, a, b, c, Q_DIAG[0], Q_DIAG[2], R_DIAG[0])
            ys = _axis_step(zy, y, vy, d, e, f, Q_DIAG[1], Q_DIAG[3], R_DIAG[1])
            x, vx, a, b, c = [jnp.where(there_class, n, o)
                              for n, o in zip(xs, (x, vx, a, b, c))]
            y, vy, d, e, f = [jnp.where(there_class, n, o)
                              for n, o in zip(ys, (y, vy, d, e, f))]

            # Full-tile stores; rho == 0 exactly (x/y cross-cov never leaves 0).
            out_ref[i, 0, ci] = x
            out_ref[i, 1, ci] = y
            out_ref[i, 2, ci] = jnp.sqrt(jnp.maximum(a, 0.0))
            out_ref[i, 3, ci] = jnp.sqrt(jnp.maximum(d, 0.0))
            out_ref[i, 4, ci] = zeros

            there_before = jnp.logical_or(there_before, there)

        # ---------------- open-loop prediction ----------------
        # mask from the last history step (matches PyTorch loop-variable reuse)
        for j in range(len_pred):
            xp = _axis_predict(x, vx, a, b, c, Q_DIAG[0], Q_DIAG[2])
            yp = _axis_predict(y, vy, d, e, f, Q_DIAG[1], Q_DIAG[3])
            x, vx, a, b, c = [jnp.where(there, n, o)
                              for n, o in zip(xp, (x, vx, a, b, c))]
            y, vy, d, e, f = [jnp.where(there, n, o)
                              for n, o in zip(yp, (y, vy, d, e, f))]
            t = hist_time + j
            out_ref[t, 0, ci] = x
            out_ref[t, 1, ci] = y
            out_ref[t, 2, ci] = jnp.sqrt(jnp.maximum(a, 0.0))
            out_ref[t, 3, ci] = jnp.sqrt(jnp.maximum(d, 0.0))
            out_ref[t, 4, ci] = zeros

    if n_chunks == 1:
        run_chunk(0)                      # fully static indexing
    else:
        @pl.loop(0, n_chunks)             # bounded live ranges per chunk
        def _(ci):
            run_chunk(ci)


def multi_object_kalman(inputs, mask_inputs, len_pred=6, max_block_objs=8 * 1024):
    """inputs: (hist_time, batch, n_veh, 2) f32; mask_inputs: (hist_time, batch, n_veh) bool.
    Returns (hist_time + len_pred, batch, n_veh, 5) = [x, y, sigma_x, sigma_y, rho]."""
    T, B, V, Fdim = inputs.shape
    assert Fdim == 2, "use_class=False => inputs carry (x, y) observations"
    assert T >= 1
    N = B * V

    # ----- pack objects into 1024-object (8,128) chunks; pads get mask = 0 ----
    chunks_needed = pl.cdiv(N, CHUNK)
    max_chunks = max(1, max_block_objs // CHUNK)
    n_chunks = int(min(max_chunks, chunks_needed))       # chunks per grid block
    block_objs = n_chunks * CHUNK
    n_pad = pl.cdiv(N, block_objs) * block_objs
    grid_n = n_pad // block_objs

    obs = inputs.reshape(T, N, 2).astype(jnp.float32)
    msk = mask_inputs.reshape(T, N).astype(jnp.float32)
    pad = n_pad - N
    if pad:
        obs = jnp.pad(obs, ((0, 0), (0, pad), (0, 0)))
        msk = jnp.pad(msk, ((0, 0), (0, pad)))
    # object n -> (g, c, s, l) with n = ((g*n_chunks + c)*8 + s)*128 + l
    obs = obs.reshape(T, grid_n, n_chunks, SUBLANES, LANES, 2) \
             .transpose(1, 0, 5, 2, 3, 4)                   # (G,T,2,C,8,128)
    msk = msk.reshape(T, grid_n, n_chunks, SUBLANES, LANES) \
             .transpose(1, 0, 2, 3, 4)                      # (G,T,C,8,128)

    kernel = functools.partial(multi_object_kalman_kernel,
                               hist_time=T, len_pred=len_pred)
    out = pl.pallas_call(
        kernel,
        grid=(grid_n,),
        out_shape=jax.ShapeDtypeStruct(
            (grid_n, T + len_pred, 5, n_chunks, SUBLANES, LANES), jnp.float32),
        in_specs=[
            pl.BlockSpec((None, T, 2, n_chunks, SUBLANES, LANES),
                         lambda g: (g, 0, 0, 0, 0, 0)),
            pl.BlockSpec((None, T, n_chunks, SUBLANES, LANES),
                         lambda g: (g, 0, 0, 0, 0)),
        ],
        out_specs=pl.BlockSpec((None, T + len_pred, 5, n_chunks, SUBLANES, LANES),
                               lambda g: (g, 0, 0, 0, 0, 0)),
        compiler_params=pltpu.CompilerParams(
            dimension_semantics=("parallel",)),
    )(obs, msk)

    # (G, T+L, 5, C, 8, 128) -> (T+L, N_pad, 5) -> (T+L, B, V, 5)
    out = out.transpose(1, 0, 3, 4, 5, 2).reshape(T + len_pred, n_pad, 5)[:, :N]
    return out.reshape(T + len_pred, B, V, 5)


# TODO(synk): the use_nn=True path (MultiHeadAttention interactions + LayerNorm)
# and use_class=True per-class Kalman gating are not exercised here; the module
# is instantiated in its use_nn=False / use_class=False configuration.

if __name__ == "__main__":
    key = jax.random.PRNGKey(0)
    hist_time, batch, n_veh, len_pred = 8, 2, 8, 6

    k1, k2, k3 = jax.random.split(key, 3)
    # Smooth-ish trajectories: start positions + per-step velocities + noise.
    start = jax.random.normal(k1, (1, batch, n_veh, 2)) * 5.0
    vel = jax.random.normal(k2, (1, batch, n_veh, 2))
    t = jnp.arange(hist_time, dtype=jnp.float32)[:, None, None, None]
    noise = jax.random.normal(k3, (hist_time, batch, n_veh, 2)) * 0.05
    inputs = (start + vel * t + noise).astype(jnp.float32)

    # Presence mask: most objects present, a few appear late / disappear.
    mask_inputs = jax.random.bernoulli(
        jax.random.PRNGKey(1), p=0.8, shape=(hist_time, batch, n_veh))
    mask_inputs = mask_inputs.at[:, :, 0].set(True)  # object 0 always present

    out = multi_object_kalman(inputs, mask_inputs, len_pred=len_pred)
    jax.block_until_ready(out)
    assert out.shape == (hist_time + len_pred, batch, n_veh, 5)
    assert bool(jnp.all(jnp.isfinite(out)))
    print("KERNEL_OK")
</pallas_src>

<mosaic_0001>
module attributes {stable_mosaic.version = 11 : i64} {
  func.func @multi_object_kalman_kernel(%arg0: i32, %arg1: memref<1x8x2x1x8x128xf32, #tpu.memory_space<vmem>>, %arg2: memref<1x8x1x8x128xf32, #tpu.memory_space<vmem>>, %arg3: memref<1x14x5x1x8x128xf32, #tpu.memory_space<vmem>>) attributes {dimension_semantics = [#tpu.dimension_semantics<parallel>], iteration_bounds = array<i64: 1>, scalar_prefetch = 0 : i64, scratch_operands = 0 : i64, tpu.core_type = #tpu.core_type<tc>, window_params = [{transform_indices = @transform_0, window_bounds = array<i64: 1, 8, 2, 1, 8, 128>}, {transform_indices = @transform_1, window_bounds = array<i64: 1, 8, 1, 8, 128>}, {transform_indices = @transform_2, window_bounds = array<i64: 1, 14, 5, 1, 8, 128>}]} {
    %cst = arith.constant 0.000000e+00 : f32
    %0 = vector.broadcast %cst : f32 to vector<8x128xf32>
    %cst_0 = arith.constant 1.000000e+00 : f32
    %1 = vector.broadcast %cst_0 : f32 to vector<8x128xf32>
    %cst_1 = arith.constant 1.000000e+00 : f32
    %2 = vector.broadcast %cst_1 : f32 to vector<8x128xf32>
    %cst_2 = arith.constant 1.000000e+00 : f32
    %3 = vector.broadcast %cst_2 : f32 to vector<8x128xf32>
    %cst_3 = arith.constant 1.000000e+00 : f32
    %4 = vector.broadcast %cst_3 : f32 to vector<8x128xf32>
    %false = arith.constant false
    %5 = vector.broadcast %false : i1 to vector<8x128xi1>
    %c0 = arith.constant 0 : index
    %c0_4 = arith.constant 0 : index
    %c0_5 = arith.constant 0 : index
    %c0_6 = arith.constant 0 : index
    %c0_7 = arith.constant 0 : index
    %c0_8 = arith.constant 0 : index
    %6 = vector.load %arg1[%c0, %c0_4, %c0_5, %c0_6, %c0_7, %c0_8] : memref<1x8x2x1x8x128xf32, #tpu.memory_space<vmem>>, vector<1x1x1x1x8x128xf32>
    %7 = vector.shape_cast %6 : vector<1x1x1x1x8x128xf32> to vector<8x128xf32>
    %c0_9 = arith.constant 0 : index
    %c0_10 = arith.constant 0 : index
    %c1 = arith.constant 1 : index
    %c0_11 = arith.constant 0 : index
    %c0_12 = arith.constant 0 : index
    %c0_13 = arith.constant 0 : index
    %8 = vector.load %arg1[%c0_9, %c0_10, %c1, %c0_11, %c0_12, %c0_13] : memref<1x8x2x1x8x128xf32, #tpu.memory_space<vmem>>, vector<1x1x1x1x8x128xf32>
    %9 = vector.shape_cast %8 : vector<1x1x1x1x8x128xf32> to vector<8x128xf32>
    %c0_14 = arith.constant 0 : index
    %c0_15 = arith.constant 0 : index
    %c0_16 = arith.constant 0 : index
    %c0_17 = arith.constant 0 : index
    %c0_18 = arith.constant 0 : index
    %10 = vector.load %arg2[%c0_14, %c0_15, %c0_16, %c0_17, %c0_18] : memref<1x8x1x8x128xf32, #tpu.memory_space<vmem>>, vector<1x1x1x8x128xf32>
    %11 = vector.shape_cast %10 : vector<1x1x1x8x128xf32> to vector<8x128xf32>
    %cst_19 = arith.constant 5.000000e-01 : f32
    %12 = vector.broadcast %cst_19 : f32 to vector<8x128xf32>
    %13 = arith.cmpf ogt, %11, %12 : vector<8x128xf32>
    %cst_20 = arith.constant dense<true> : vector<8x128xi1>
    %14 = arith.xori %5, %cst_20 : vector<8x128xi1>
    %15 = arith.andi %13, %14 : vector<8x128xi1>
    %c0_21 = arith.constant 0 : index
    %c1_22 = arith.constant 1 : index
    %c0_23 = arith.constant 0 : index
    %c0_24 = arith.constant 0 : index
    %c0_25 = arith.constant 0 : index
    %c0_26 = arith.constant 0 : index
    %16 = vector.load %arg1[%c0_21, %c1_22, %c0_23, %c0_24, %c0_25, %c0_26] : memref<1x8x2x1x8x128xf32, #tpu.memory_space<vmem>>, vector<1x1x1x1x8x128xf32>
    %17 = vector.shape_cast %16 : vector<1x1x1x1x8x128xf32> to vector<8x128xf32>
    %c0_27 = arith.constant 0 : index
    %c1_28 = arith.constant 1 : index
    %c1_29 = arith.constant 1 : index
    %c0_30 = arith.constant 0 : index
    %c0_31 = arith.constant 0 : index
    %c0_32 = arith.constant 0 : index
    %18 = vector.load %arg1[%c0_27, %c1_28, %c1_29, %c0_30, %c0_31, %c0_32] : memref<1x8x2x1x8x128xf32, #tpu.memory_space<vmem>>, vector<1x1x1x1x8x128xf32>
    %19 = vector.shape_cast %18 : vector<1x1x1x1x8x128xf32> to vector<8x128xf32>
    %20 = arith.select %15, %7, %0 : vector<8x128xi1>, vector<8x128xf32>
    %21 = arith.select %15, %9, %0 : vector<8x128xi1>, vector<8x128xf32>
    %22 = arith.subf %17, %7 : vector<8x128xf32>
    %23 = arith.select %15, %22, %0 : vector<8x128xi1>, vector<8x128xf32>
    %24 = arith.subf %19, %9 : vector<8x128xf32>
    %25 = arith.select %15, %24, %0 : vector<8x128xi1>, vector<8x128xf32>
    %26 = arith.select %15, %1, %0 : vector<8x128xi1>, vector<8x128xf32>
    %27 = arith.select %15, %0, %0 : vector<8x128xi1>, vector<8x128xf32>
    %28 = arith.select %15, %3, %0 : vector<8x128xi1>, vector<8x128xf32>
    %29 = arith.select %15, %2, %0 : vector<8x128xi1>, vector<8x128xf32>
    %30 = arith.select %15, %0, %0 : vector<8x128xi1>, vector<8x128xf32>
    %31 = arith.select %15, %4, %0 : vector<8x128xi1>, vector<8x128xf32>
    %cst_33 = arith.constant 1.000000e+00 : f32
    %32 = vector.broadcast %cst_33 : f32 to vector<8x128xf32>
    %33 = arith.mulf %32, %23 : vector<8x128xf32>
    %34 = arith.addf %20, %33 : vector<8x128xf32>
    %cst_34 = arith.constant 2.000000e+00 : f32
    %35 = vector.broadcast %cst_34 : f32 to vector<8x128xf32>
    %36 = arith.mulf %35, %27 : vector<8x128xf32>
    %cst_35 = arith.constant 1.000000e+00 : f32
    %37 = vector.broadcast %cst_35 : f32 to vector<8x128xf32>
    %38 = arith.mulf %37, %28 : vector<8x128xf32>
    %39 = arith.addf %36, %38 : vector<8x128xf32>
    %cst_36 = arith.constant 1.000000e+00 : f32
    %40 = vector.broadcast %cst_36 : f32 to vector<8x128xf32>
    %41 = arith.mulf %40, %39 : vector<8x128xf32>
    %42 = arith.addf %26, %41 : vector<8x128xf32>
    %cst_37 = arith.constant 0.00999999977 : f32
    %43 = vector.broadcast %cst_37 : f32 to vector<8x128xf32>
    %44 = arith.addf %42, %43 : vector<8x128xf32>
    %cst_38 = arith.constant 1.000000e+00 : f32
    %45 = vector.broadcast %cst_38 : f32 to vector<8x128xf32>
    %46 = arith.mulf %45, %28 : vector<8x128xf32>
    %47 = arith.addf %27, %46 : vector<8x128xf32>
    %cst_39 = arith.constant 1.000000e-01 : f32
    %48 = vector.broadcast %cst_39 : f32 to vector<8x128xf32>
    %49 = arith.addf %28, %48 : vector<8x128xf32>
    %cst_40 = arith.constant 1.000000e-01 : f32
    %50 = vector.broadcast %cst_40 : f32 to vector<8x128xf32>
    %51 = arith.addf %44, %50 : vector<8x128xf32>
    %52 = tpu.reciprocal %51 {approx = true} : vector<8x128xf32> -> vector<8x128xf32>
    %53 = arith.mulf %44, %52 : vector<8x128xf32>
    %54 = arith.mulf %47, %52 : vector<8x128xf32>
    %55 = arith.subf %7, %34 : vector<8x128xf32>
    %56 = arith.mulf %53, %55 : vector<8x128xf32>
    %57 = arith.addf %34, %56 : vector<8x128xf32>
    %58 = arith.mulf %54, %55 : vector<8x128xf32>
    %59 = arith.addf %23, %58 : vector<8x128xf32>
    %60 = arith.mulf %53, %44 : vector<8x128xf32>
    %61 = arith.subf %44, %60 : vector<8x128xf32>
    %62 = arith.mulf %53, %47 : vector<8x128xf32>
    %63 = arith.subf %47, %62 : vector<8x128xf32>
    %64 = arith.mulf %54, %47 : vector<8x128xf32>
    %65 = arith.subf %49, %64 : vector<8x128xf32>
    %cst_41 = arith.constant 1.000000e+00 : f32
    %66 = vector.broadcast %cst_41 : f32 to vector<8x128xf32>
    %67 = arith.mulf %66, %25 : vector<8x128xf32>
    %68 = arith.addf %21, %67 : vector<8x128xf32>
    %cst_42 = arith.constant 2.000000e+00 : f32
    %69 = vector.broadcast %cst_42 : f32 to vector<8x128xf32>
    %70 = arith.mulf %69, %30 : vector<8x128xf32>
    %cst_43 = arith.constant 1.000000e+00 : f32
    %71 = vector.broadcast %cst_43 : f32 to vector<8x128xf32>
    %72 = arith.mulf %71, %31 : vector<8x128xf32>
    %73 = arith.addf %70, %72 : vector<8x128xf32>
    %cst_44 = arith.constant 1.000000e+00 : f32
    %74 = vector.broadcast %cst_44 : f32 to vector<8x128xf32>
    %75 = arith.mulf %74, %73 : vector<8x128xf32>
    %76 = arith.addf %29, %75 : vector<8x128xf32>
    %cst_45 = arith.constant 0.00999999977 : f32
    %77 = vector.broadcast %cst_45 : f32 to vector<8x128xf32>
    %78 = arith.addf %76, %77 : vector<8x128xf32>
    %cst_46 = arith.constant 1.000000e+00 : f32
    %79 = vector.broadcast %cst_46 : f32 to vector<8x128xf32>
    %80 = arith.mulf %79, %31 : vector<8x128xf32>
    %81 = arith.addf %30, %80 : vector<8x128xf32>
    %cst_47 = arith.constant 1.000000e-01 : f32
    %82 = vector.broadcast %cst_47 : f32 to vector<8x128xf32>
    %83 = arith.addf %31, %82 : vector<8x128xf32>
    %cst_48 = arith.constant 1.000000e-01 : f32
    %84 = vector.broadcast %cst_48 : f32 to vector<8x128xf32>
    %85 = arith.addf %78, %84 : vector<8x128xf32>
    %86 = tpu.reciprocal %85 {approx = true} : vector<8x128xf32> -> vector<8x128xf32>
    %87 = arith.mulf %78, %86 : vector<8x128xf32>
    %88 = arith.mulf %81, %86 : vector<8x128xf32>
    %89 = arith.subf %9, %68 : vector<8x128xf32>
    %90 = arith.mulf %87, %89 : vector<8x128xf32>
    %91 = arith.addf %68, %90 : vector<8x128xf32>
    %92 = arith.mulf %88, %89 : vector<8x128xf32>
    %93 = arith.addf %25, %92 : vector<8x128xf32>
    %94 = arith.mulf %87, %78 : vector<8x128xf32>
    %95 = arith.subf %78, %94 : vector<8x128xf32>
    %96 = arith.mulf %87, %81 : vector<8x128xf32>
    %97 = arith.subf %81, %96 : vector<8x128xf32>
    %98 = arith.mulf %88, %81 : vector<8x128xf32>
    %99 = arith.subf %83, %98 : vector<8x128xf32>
    %100 = arith.select %13, %57, %20 : vector<8x128xi1>, vector<8x128xf32>
    %101 = arith.select %13, %59, %23 : vector<8x128xi1>, vector<8x128xf32>
    %102 = arith.select %13, %61, %26 : vector<8x128xi1>, vector<8x128xf32>
    %103 = arith.select %13, %63, %27 : vector<8x128xi1>, vector<8x128xf32>
    %104 = arith.select %13, %65, %28 : vector<8x128xi1>, vector<8x128xf32>
    %105 = arith.select %13, %91, %21 : vector<8x128xi1>, vector<8x128xf32>
    %106 = arith.select %13, %93, %25 : vector<8x128xi1>, vector<8x128xf32>
    %107 = arith.select %13, %95, %29 : vector<8x128xi1>, vector<8x128xf32>
    %108 = arith.select %13, %97, %30 : vector<8x128xi1>, vector<8x128xf32>
    %109 = arith.select %13, %99, %31 : vector<8x128xi1>, vector<8x128xf32>
    %c0_49 = arith.constant 0 : index
    %c0_50 = arith.constant 0 : index
    %c0_51 = arith.constant 0 : index
    %c0_52 = arith.constant 0 : index
    %c0_53 = arith.constant 0 : index
    %c0_54 = arith.constant 0 : index
    %110 = vector.load %arg3[%c0_49, %c0_50, %c0_51, %c0_52, %c0_53, %c0_54] : memref<1x14x5x1x8x128xf32, #tpu.memory_space<vmem>>, vector<1x1x1x1x8x128xf32>
    %111 = vector.shape_cast %110 : vector<1x1x1x1x8x128xf32> to vector<8x128xf32>
    %112 = vector.shape_cast %100 : vector<8x128xf32> to vector<1x1x1x1x8x128xf32>
    tpu.vector_store %arg3[%c0_49, %c0_50, %c0_51, %c0_52, %c0_53, %c0_54], %112 {strides = array<i32>} : memref<1x14x5x1x8x128xf32, #tpu.memory_space<vmem>>, vector<1x1x1x1x8x128xf32>,
    %c0_55 = arith.constant 0 : index
    %c0_56 = arith.constant 0 : index
    %c1_57 = arith.constant 1 : index
    %c0_58 = arith.constant 0 : index
    %c0_59 = arith.constant 0 : index
    %c0_60 = arith.constant 0 : index
    %113 = vector.load %arg3[%c0_55, %c0_56, %c1_57, %c0_58, %c0_59, %c0_60] : memref<1x14x5x1x8x128xf32, #tpu.memory_space<vmem>>, vector<1x1x1x1x8x128xf32>
    %114 = vector.shape_cast %113 : vector<1x1x1x1x8x128xf32> to vector<8x128xf32>
    %115 = vector.shape_cast %105 : vector<8x128xf32> to vector<1x1x1x1x8x128xf32>
    tpu.vector_store %arg3[%c0_55, %c0_56, %c1_57, %c0_58, %c0_59, %c0_60], %115 {strides = array<i32>} : memref<1x14x5x1x8x128xf32, #tpu.memory_space<vmem>>, vector<1x1x1x1x8x128xf32>,
    %cst_61 = arith.constant 0.000000e+00 : f32
    %116 = vector.broadcast %cst_61 : f32 to vector<8x128xf32>
    %117 = arith.maximumf %102, %116 : vector<8x128xf32>
    %118 = math.sqrt %117 : vector<8x128xf32>
    %c0_62 = arith.constant 0 : index
    %c0_63 = arith.constant 0 : index
    %c2 = arith.constant 2 : index
    %c0_64 = arith.constant 0 : index
    %c0_65 = arith.constant 0 : index
    %c0_66 = arith.constant 0 : index
    %119 = vector.load %arg3[%c0_62, %c0_63, %c2, %c0_64, %c0_65, %c0_66] : memref<1x14x5x1x8x128xf32, #tpu.memory_space<vmem>>, vector<1x1x1x1x8x128xf32>
    %120 = vector.shape_cast %119 : vector<1x1x1x1x8x128xf32> to vector<8x128xf32>
    %121 = vector.shape_cast %118 : vector<8x128xf32> to vector<1x1x1x1x8x128xf32>
    tpu.vector_store %arg3[%c0_62, %c0_63, %c2, %c0_64, %c0_65, %c0_66], %121 {strides = array<i32>} : memref<1x14x5x1x8x128xf32, #tpu.memory_space<vmem>>, vector<1x1x1x1x8x128xf32>,
    %cst_67 = arith.constant 0.000000e+00 : f32
    %122 = vector.broadcast %cst_67 : f32 to vector<8x128xf32>
    %123 = arith.maximumf %107, %122 : vector<8x128xf32>
    %124 = math.sqrt %123 : vector<8x128xf32>
    %c0_68 = arith.constant 0 : index
    %c0_69 = arith.constant 0 : index
    %c3 = arith.constant 3 : index
    %c0_70 = arith.constant 0 : index
    %c0_71 = arith.constant 0 : index
    %c0_72 = arith.constant 0 : index
    %125 = vector.load %arg3[%c0_68, %c0_69, %c3, %c0_70, %c0_71, %c0_72] : memref<1x14x5x1x8x128xf32, #tpu.memory_space<vmem>>, vector<1x1x1x1x8x128xf32>
    %126 = vector.shape_cast %125 : vector<1x1x1x1x8x128xf32> to vector<8x128xf32>
    %127 = vector.shape_cast %124 : vector<8x128xf32> to vector<1x1x1x1x8x128xf32>
    tpu.vector_store %arg3[%c0_68, %c0_69, %c3, %c0_70, %c0_71, %c0_72], %127 {strides = array<i32>} : memref<1x14x5x1x8x128xf32, #tpu.memory_space<vmem>>, vector<1x1x1x1x8x128xf32>,
    %c0_73 = arith.constant 0 : index
    %c0_74 = arith.constant 0 : index
    %c4 = arith.constant 4 : index
    %c0_75 = arith.constant 0 : index
    %c0_76 = arith.constant 0 : index
    %c0_77 = arith.constant 0 : index
    %128 = vector.load %arg3[%c0_73, %c0_74, %c4, %c0_75, %c0_76, %c0_77] : memref<1x14x5x1x8x128xf32, #tpu.memory_space<vmem>>, vector<1x1x1x1x8x128xf32>
    %129 = vector.shape_cast %128 : vector<1x1x1x1x8x128xf32> to vector<8x128xf32>
    %130 = vector.shape_cast %0 : vector<8x128xf32> to vector<1x1x1x1x8x128xf32>
    tpu.vector_store %arg3[%c0_73, %c0_74, %c4, %c0_75, %c0_76, %c0_77], %130 {strides = array<i32>} : memref<1x14x5x1x8x128xf32, #tpu.memory_space<vmem>>, vector<1x1x1x1x8x128xf32>,
    %131 = arith.ori %5, %13 : vector<8x128xi1>
    %c0_78 = arith.constant 0 : index
    %c1_79 = arith.constant 1 : index
    %c0_80 = arith.constant 0 : index
    %c0_81 = arith.constant 0 : index
    %c0_82 = arith.constant 0 : index
    %c0_83 = arith.constant 0 : index
    %132 = vector.load %arg1[%c0_78, %c1_79, %c0_80, %c0_81, %c0_82, %c0_83] : memref<1x8x2x1x8x128xf32, #tpu.memory_space<vmem>>, vector<1x1x1x1x8x128xf32>
    %133 = vector.shape_cast %132 : vector<1x1x1x1x8x128xf32> to vector<8x128xf32>
    %c0_84 = arith.constant 0 : index
    %c1_85 = arith.constant 1 : index
    %c1_86 = arith.constant 1 : index
    %c0_87 = arith.constant 0 : index
    %c0_88 = arith.constant 0 : index
    %c0_89 = arith.constant 0 : index
    %134 = vector.load %arg1[%c0_84, %c1_85, %c1_86, %c0_87, %c0_88, %c0_89] : memref<1x8x2x1x8x128xf32, #tpu.memory_space<vmem>>, vector<1x1x1x1x8x128xf32>
    %135 = vector.shape_cast %134 : vector<1x1x1x1x8x128xf32> to vector<8x128xf32>
    %c0_90 = arith.constant 0 : index
    %c1_91 = arith.constant 1 : index
    %c0_92 = arith.constant 0 : index
    %c0_93 = arith.constant 0 : index
    %c0_94 = arith.constant 0 : index
    %136 = vector.load %arg2[%c0_90, %c1_91, %c0_92, %c0_93, %c0_94] : memref<1x8x1x8x128xf32, #tpu.memory_space<vmem>>, vector<1x1x1x8x128xf32>
    %137 = vector.shape_cast %136 : vector<1x1x1x8x128xf32> to vector<8x128xf32>
    %cst_95 = arith.constant 5.000000e-01 : f32
    %138 = vector.broadcast %cst_95 : f32 to vector<8x128xf32>
    %139 = arith.cmpf ogt, %137, %138 : vector<8x128xf32>
    %cst_96 = arith.constant dense<true> : vector<8x128xi1>
    %140 = arith.xori %131, %cst_96 : vector<8x128xi1>
    %141 = arith.andi %139, %140 : vector<8x128xi1>
    %c0_97 = arith.constant 0 : index
    %c2_98 = arith.constant 2 : index
    %c0_99 = arith.constant 0 : index
    %c0_100 = arith.constant 0 : index
    %c0_101 = arith.constant 0 : index
    %c0_102 = arith.constant 0 : index
    %142 = vector.load %arg1[%c0_97, %c2_98, %c0_99, %c0_100, %c0_101, %c0_102] : memref<1x8x2x1x8x128xf32, #tpu.memory_space<vmem>>, vector<1x1x1x1x8x128xf32>
    %143 = vector.shape_cast %142 : vector<1x1x1x1x8x128xf32> to vector<8x128xf32>
    %c0_103 = arith.constant 0 : index
    %c2_104 = arith.constant 2 : index
    %c1_105 = arith.constant 1 : index
    %c0_106 = arith.constant 0 : index
    %c0_107 = arith.constant 0 : index
    %c0_108 = arith.constant 0 : index
    %144 = vector.load %arg1[%c0_103, %c2_104, %c1_105, %c0_106, %c0_107, %c0_108] : memref<1x8x2x1x8x128xf32, #tpu.memory_space<vmem>>, vector<1x1x1x1x8x128xf32>
    %145 = vector.shape_cast %144 : vector<1x1x1x1x8x128xf32> to vector<8x128xf32>
    %146 = arith.select %141, %133, %100 : vector<8x128xi1>, vector<8x128xf32>
    %147 = arith.select %141, %135, %105 : vector<8x128xi1>, vector<8x128xf32>
    %148 = arith.subf %143, %133 : vector<8x128xf32>
    %149 = arith.select %141, %148, %101 : vector<8x128xi1>, vector<8x128xf32>
    %150 = arith.subf %145, %135 : vector<8x128xf32>
    %151 = arith.select %141, %150, %106 : vector<8x128xi1>, vector<8x128xf32>
    %152 = arith.select %141, %1, %102 : vector<8x128xi1>, vector<8x128xf32>
    %153 = arith.select %141, %0, %103 : vector<8x128xi1>, vector<8x128xf32>
    %154 = arith.select %141, %3, %104 : vector<8x128xi1>, vector<8x128xf32>
    %155 = arith.select %141, %2, %107 : vector<8x128xi1>, vector<8x128xf32>
    %156 = arith.select %141, %0, %108 : vector<8x128xi1>, vector<8x128xf32>
    %157 = arith.select %141, %4, %109 : vector<8x128xi1>, vector<8x128xf32>
    %cst_109 = arith.constant 1.000000e+00 : f32
    %158 = vector.broadcast %cst_109 : f32 to vector<8x128xf32>
    %159 = arith.mulf %158, %149 : vector<8x128xf32>
    %160 = arith.addf %146, %159 : vector<8x128xf32>
    %cst_110 = arith.constant 2.000000e+00 : f32
    %161 = vector.broadcast %cst_110 : f32 to vector<8x128xf32>
    %162 = arith.mulf %161, %153 : vector<8x128xf32>
    %cst_111 = arith.constant 1.000000e+00 : f32
    %163 = vector.broadcast %cst_111 : f32 to vector<8x128xf32>
    %164 = arith.mulf %163, %154 : vector<8x128xf32>
    %165 = arith.addf %162, %164 : vector<8x128xf32>
    %cst_112 = arith.constant 1.000000e+00 : f32
    %166 = vector.broadcast %cst_112 : f32 to vector<8x128xf32>
    %167 = arith.mulf %166, %165 : vector<8x128xf32>
    %168 = arith.addf %152, %167 : vector<8x128xf32>
    %cst_113 = arith.constant 0.00999999977 : f32
    %169 = vector.broadcast %cst_113 : f32 to vector<8x128xf32>
    %170 = arith.addf %168, %169 : vector<8x128xf32>
    %cst_114 = arith.constant 1.000000e+00 : f32
    %171 = vector.broadcast %cst_114 : f32 to vector<8x128xf32>
    %172 = arith.mulf %171, %154 : vector<8x128xf32>
    %173 = arith.addf %153, %172 : vector<8x128xf32>
    %cst_115 = arith.constant 1.000000e-01 : f32
    %174 = vector.broadcast %cst_115 : f32 to vector<8x128xf32>
    %175 = arith.addf %154, %174 : vector<8x128xf32>
    %cst_116 = arith.constant 1.000000e-01 : f32
    %176 = vector.broadcast %cst_116 : f32 to vector<8x128xf32>
    %177 = arith.addf %170, %176 : vector<8x128xf32>
    %178 = tpu.reciprocal %177 {approx = true} : vector<8x128xf32> -> vector<8x128xf32>
    %179 = arith.mulf %170, %178 : vector<8x128xf32>
    %180 = arith.mulf %173, %178 : vector<8x128xf32>
    %181 = arith.subf %133, %160 : vector<8x128xf32>
    %182 = arith.mulf %179, %181 : vector<8x128xf32>
    %183 = arith.addf %160, %182 : vector<8x128xf32>
    %184 = arith.mulf %180, %181 : vector<8x128xf32>
    %185 = arith.addf %149, %184 : vector<8x128xf32>
    %186 = arith.mulf %179, %170 : vector<8x128xf32>
    %187 = arith.subf %170, %186 : vector<8x128xf32>
    %188 = arith.mulf %179, %173 : vector<8x128xf32>
    %189 = arith.subf %173, %188 : vector<8x128xf32>
    %190 = arith.mulf %180, %173 : vector<8x128xf32>
    %191 = arith.subf %175, %190 : vector<8x128xf32>
    %cst_117 = arith.constant 1.000000e+00 : f32
    %192 = vector.broadcast %cst_117 : f32 to vector<8x128xf32>
    %193 = arith.mulf %192, %151 : vector<8x128xf32>
    %194 = arith.addf %147, %193 : vector<8x128xf32>
    %cst_118 = arith.constant 2.000000e+00 : f32
    %195 = vector.broadcast %cst_118 : f32 to vector<8x128xf32>
    %196 = arith.mulf %195, %156 : vector<8x128xf32>
    %cst_119 = arith.constant 1.000000e+00 : f32
    %197 = vector.broadcast %cst_119 : f32 to vector<8x128xf32>
    %198 = arith.mulf %197, %157 : vector<8x128xf32>
    %199 = arith.addf %196, %198 : vector<8x128xf32>
    %cst_120 = arith.constant 1.000000e+00 : f32
    %200 = vector.broadcast %cst_120 : f32 to vector<8x128xf32>
    %201 = arith.mulf %200, %199 : vector<8x128xf32>
    %202 = arith.addf %155, %201 : vector<8x128xf32>
    %cst_121 = arith.constant 0.00999999977 : f32
    %203 = vector.broadcast %cst_121 : f32 to vector<8x128xf32>
    %204 = arith.addf %202, %203 : vector<8x128xf32>
    %cst_122 = arith.constant 1.000000e+00 : f32
    %205 = vector.broadcast %cst_122 : f32 to vector<8x128xf32>
    %206 = arith.mulf %205, %157 : vector<8x128xf32>
    %207 = arith.addf %156, %206 : vector<8x128xf32>
    %cst_123 = arith.constant 1.000000e-01 : f32
    %208 = vector.broadcast %cst_123 : f32 to vector<8x128xf32>
    %209 = arith.addf %157, %208 : vector<8x128xf32>
    %cst_124 = arith.constant 1.000000e-01 : f32
    %210 = vector.broadcast %cst_124 : f32 to vector<8x128xf32>
    %211 = arith.addf %204, %210 : vector<8x128xf32>
    %212 = tpu.reciprocal %211 {approx = true} : vector<8x128xf32> -> vector<8x128xf32>
    %213 = arith.mulf %204, %212 : vector<8x128xf32>
    %214 = arith.mulf %207, %212 : vector<8x128xf32>
    %215 = arith.subf %135, %194 : vector<8x128xf32>
    %216 = arith.mulf %213, %215 : vector<8x128xf32>
    %217 = arith.addf %194, %216 : vector<8x128xf32>
    %218 = arith.mulf %214, %215 : vector<8x128xf32>
    %219 = arith.addf %151, %218 : vector<8x128xf32>
    %220 = arith.mulf %213, %204 : vector<8x128xf32>
    %221 = arith.subf %204, %220 : vector<8x128xf32>
    %222 = arith.mulf %213, %207 : vector<8x128xf32>
    %223 = arith.subf %207, %222 : vector<8x128xf32>
    %224 = arith.mulf %214, %207 : vector<8x128xf32>
    %225 = arith.subf %209, %224 : vector<8x128xf32>
    %226 = arith.select %139, %183, %146 : vector<8x128xi1>, vector<8x128xf32>
    %227 = arith.select %139, %185, %149 : vector<8x128xi1>, vector<8x128xf32>
    %228 = arith.select %139, %187, %152 : vector<8x128xi1>, vector<8x128xf32>
    %229 = arith.select %139, %189, %153 : vector<8x128xi1>, vector<8x128xf32>
    %230 = arith.select %139, %191, %154 : vector<8x128xi1>, vector<8x128xf32>
    %231 = arith.select %139, %217, %147 : vector<8x128xi1>, vector<8x128xf32>
    %232 = arith.select %139, %219, %151 : vector<8x128xi1>, vector<8x128xf32>
    %233 = arith.select %139, %221, %155 : vector<8x128xi1>, vector<8x128xf32>
    %234 = arith.select %139, %223, %156 : vector<8x128xi1>, vector<8x128xf32>
    %235 = arith.select %139, %225, %157 : vector<8x128xi1>, vector<8x128xf32>
    %c0_125 = arith.constant 0 : index
    %c1_126 = arith.constant 1 : index
    %c0_127 = arith.constant 0 : index
    %c0_128 = arith.constant 0 : index
    %c0_129 = arith.constant 0 : index
    %c0_130 = arith.constant 0 : index
    %236 = vector.load %arg3[%c0_125, %c1_126, %c0_127, %c0_128, %c0_129, %c0_130] : memref<1x14x5x1x8x128xf32, #tpu.memory_space<vmem>>, vector<1x1x1x1x8x128xf32>
    %237 = vector.shape_cast %236 : vector<1x1x1x1x8x128xf32> to vector<8x128xf32>
    %238 = vector.shape_cast %226 : vector<8x128xf32> to vector<1x1x1x1x8x128xf32>
    tpu.vector_store %arg3[%c0_125, %c1_126, %c0_127, %c0_128, %c0_129, %c0_130], %238 {strides = array<i32>} : memref<1x14x5x1x8x128xf32, #tpu.memory_space<vmem>>, vector<1x1x1x1x8x128xf32>,
    %c0_131 = arith.constant 0 : index
    %c1_132 = arith.constant 1 : index
    %c1_133 = arith.constant 1 : index
    %c0_134 = arith.constant 0 : index
    %c0_135 = arith.constant 0 : index
    %c0_136 = arith.constant 0 : index
    %239 = vector.load %arg3[%c0_131, %c1_132, %c1_133, %c0_134, %c0_135, %c0_136] : memref<1x14x5x1x8x128xf32, #tpu.memory_space<vmem>>, vector<1x1x1x1x8x128xf32>
    %240 = vector.shape_cast %239 : vector<1x1x1x1x8x128xf32> to vector<8x128xf32>
    %241 = vector.shape_cast %231 : vector<8x128xf32> to vector<1x1x1x1x8x128xf32>
    tpu.vector_store %arg3[%c0_131, %c1_132, %c1_133, %c0_134, %c0_135, %c0_136], %241 {strides = array<i32>} : memref<1x14x5x1x8x128xf32, #tpu.memory_space<vmem>>, vector<1x1x1x1x8x128xf32>,
    %cst_137 = arith.constant 0.000000e+00 : f32
    %242 = vector.broadcast %cst_137 : f32 to vector<8x128xf32>
    %243 = arith.maximumf %228, %242 : vector<8x128xf32>
    %244 = math.sqrt %243 : vector<8x128xf32>
    %c0_138 = arith.constant 0 : index
    %c1_139 = arith.constant 1 : index
    %c2_140 = arith.constant 2 : index
    %c0_141 = arith.constant 0 : index
    %c0_142 = arith.constant 0 : index
    %c0_143 = arith.constant 0 : index
    %245 = vector.load %arg3[%c0_138, %c1_139, %c2_140, %c0_141, %c0_142, %c0_143] : memref<1x14x5x1x8x128xf32, #tpu.memory_space<vmem>>, vector<1x1x1x1x8x128xf32>
    %246 = vector.shape_cast %245 : vector<1x1x1x1x8x128xf32> to vector<8x128xf32>
    %247 = vector.shape_cast %244 : vector<8x128xf32> to vector<1x1x1x1x8x128xf32>
    tpu.vector_store %arg3[%c0_138, %c1_139, %c2_140, %c0_141, %c0_142, %c0_143], %247 {strides = array<i32>} : memref<1x14x5x1x8x128xf32, #tpu.memory_space<vmem>>, vector<1x1x1x1x8x128xf32>,
    %cst_144 = arith.constant 0.000000e+00 : f32
    %248 = vector.broadcast %cst_144 : f32 to vector<8x128xf32>
    %249 = arith.maximumf %233, %248 : vector<8x128xf32>
    %250 = math.sqrt %249 : vector<8x128xf32>
    %c0_145 = arith.constant 0 : index
    %c1_146 = arith.constant 1 : index
    %c3_147 = arith.constant 3 : index
    %c0_148 = arith.constant 0 : index
    %c0_149 = arith.constant 0 : index
    %c0_150 = arith.constant 0 : index
    %251 = vector.load %arg3[%c0_145, %c1_146, %c3_147, %c0_148, %c0_149, %c0_150] : memref<1x14x5x1x8x128xf32, #tpu.memory_space<vmem>>, vector<1x1x1x1x8x128xf32>
    %252 = vector.shape_cast %251 : vector<1x1x1x1x8x128xf32> to vector<8x128xf32>
    %253 = vector.shape_cast %250 : vector<8x128xf32> to vector<1x1x1x1x8x128xf32>
    tpu.vector_store %arg3[%c0_145, %c1_146, %c3_147, %c0_148, %c0_149, %c0_150], %253 {strides = array<i32>} : memref<1x14x5x1x8x128xf32, #tpu.memory_space<vmem>>, vector<1x1x1x1x8x128xf32>,
    %c0_151 = arith.constant 0 : index
    %c1_152 = arith.constant 1 : index
    %c4_153 = arith.constant 4 : index
    %c0_154 = arith.constant 0 : index
    %c0_155 = arith.constant 0 : index
    %c0_156 = arith.constant 0 : index
    %254 = vector.load %arg3[%c0_151, %c1_152, %c4_153, %c0_154, %c0_155, %c0_156] : memref<1x14x5x1x8x128xf32, #tpu.memory_space<vmem>>, vector<1x1x1x1x8x128xf32>
    %255 = vector.shape_cast %254 : vector<1x1x1x1x8x128xf32> to vector<8x128xf32>
    %256 = vector.shape_cast %0 : vector<8x128xf32> to vector<1x1x1x1x8x128xf32>
    tpu.vector_store %arg3[%c0_151, %c1_152, %c4_153, %c0_154, %c0_155, %c0_156], %256 {strides = array<i32>} : memref<1x14x5x1x8x128xf32, #tpu.memory_space<vmem>>, vector<1x1x1x1x8x128xf32>,
    %257 = arith.ori %131, %139 : vector<8x128xi1>
    %c0_157 = arith.constant 0 : index
    %c2_158 = arith.constant 2 : index
    %c0_159 = arith.constant 0 : index
    %c0_160 = arith.constant 0 : index
    %c0_161 = arith.constant 0 : index
    %c0_162 = arith.constant 0 : index
    %258 = vector.load %arg1[%c0_157, %c2_158, %c0_159, %c0_160, %c0_161, %c0_162] : memref<1x8x2x1x8x128xf32, #tpu.memory_space<vmem>>, vector<1x1x1x1x8x128xf32>
    %259 = vector.shape_cast %258 : vector<1x1x1x1x8x128xf32> to vector<8x128xf32>
    %c0_163 = arith.constant 0 : index
    %c2_164 = arith.constant 2 : index
    %c1_165 = arith.constant 1 : index
    %c0_166 = arith.constant 0 : index
    %c0_167 = arith.constant 0 : index
    %c0_168 = arith.constant 0 : index
    %260 = vector.load %arg1[%c0_163, %c2_164, %c1_165, %c0_166, %c0_167, %c0_168] : memref<1x8x2x1x8x128xf32, #tpu.memory_space<vmem>>, vector<1x1x1x1x8x128xf32>
    %261 = vector.shape_cast %260 : vector<1x1x1x1x8x128xf32> to vector<8x128xf32>
    %c0_169 = arith.constant 0 : index
    %c2_170 = arith.constant 2 : index
    %c0_171 = arith.constant 0 : index
    %c0_172 = arith.constant 0 : index
    %c0_173 = arith.constant 0 : index
    %262 = vector.load %arg2[%c0_169, %c2_170, %c0_171, %c0_172, %c0_173] : memref<1x8x1x8x128xf32, #tpu.memory_space<vmem>>, vector<1x1x1x8x128xf32>
    %263 = vector.shape_cast %262 : vector<1x1x1x8x128xf32> to vector<8x128xf32>
    %cst_174 = arith.constant 5.000000e-01 : f32
    %264 = vector.broadcast %cst_174 : f32 to vector<8x128xf32>
    %265 = arith.cmpf ogt, %263, %264 : vector<8x128xf32>
    %cst_175 = arith.constant dense<true> : vector<8x128xi1>
    %266 = arith.xori %257, %cst_175 : vector<8x128xi1>
    %267 = arith.andi %265, %266 : vector<8x128xi1>
    %c0_176 = arith.constant 0 : index
    %c3_177 = arith.constant 3 : index
    %c0_178 = arith.constant 0 : index
    %c0_179 = arith.constant 0 : index
    %c0_180 = arith.constant 0 : index
    %c0_181 = arith.constant 0 : index
    %268 = vector.load %arg1[%c0_176, %c3_177, %c0_178, %c0_179, %c0_180, %c0_181] : memref<1x8x2x1x8x128xf32, #tpu.memory_space<vmem>>, vector<1x1x1x1x8x128xf32>
    %269 = vector.shape_cast %268 : vector<1x1x1x1x8x128xf32> to vector<8x128xf32>
    %c0_182 = arith.constant 0 : index
    %c3_183 = arith.constant 3 : index
    %c1_184 = arith.constant 1 : index
    %c0_185 = arith.constant 0 : index
    %c0_186 = arith.constant 0 : index
    %c0_187 = arith.constant 0 : index
    %270 = vector.load %arg1[%c0_182, %c3_183, %c1_184, %c0_185, %c0_186, %c0_187] : memref<1x8x2x1x8x128xf32, #tpu.memory_space<vmem>>, vector<1x1x1x1x8x128xf32>
    %271 = vector.shape_cast %270 : vector<1x1x1x1x8x128xf32> to vector<8x128xf32>
    %272 = arith.select %267, %259, %226 : vector<8x128xi1>, vector<8x128xf32>
    %273 = arith.select %267, %261, %231 : vector<8x128xi1>, vector<8x128xf32>
    %274 = arith.subf %269, %259 : vector<8x128xf32>
    %275 = arith.select %267, %274, %227 : vector<8x128xi1>, vector<8x128xf32>
    %276 = arith.subf %271, %261 : vector<8x128xf32>
    %277 = arith.select %267, %276, %232 : vector<8x128xi1>, vector<8x128xf32>
    %278 = arith.select %267, %1, %228 : vector<8x128xi1>, vector<8x128xf32>
    %279 = arith.select %267, %0, %229 : vector<8x128xi1>, vector<8x128xf32>
    %280 = arith.select %267, %3, %230 : vector<8x128xi1>, vector<8x128xf32>
    %281 = arith.select %267, %2, %233 : vector<8x128xi1>, vector<8x128xf32>
    %282 = arith.select %267, %0, %234 : vector<8x128xi1>, vector<8x128xf32>
    %283 = arith.select %267, %4, %235 : vector<8x128xi1>, vector<8x128xf32>
    %cst_188 = arith.constant 1.000000e+00 : f32
    %284 = vector.broadcast %cst_188 : f32 to vector<8x128xf32>
    %285 = arith.mulf %284, %275 : vector<8x128xf32>
    %286 = arith.addf %272, %285 : vector<8x128xf32>
    %cst_189 = arith.constant 2.000000e+00 : f32
    %287 = vector.broadcast %cst_189 : f32 to vector<8x128xf32>
    %288 = arith.mulf %287, %279 : vector<8x128xf32>
    %cst_190 = arith.constant 1.000000e+00 : f32
    %289 = vector.broadcast %cst_190 : f32 to vector<8x128xf32>
    %290 = arith.mulf %289, %280 : vector<8x128xf32>
    %291 = arith.addf %288, %290 : vector<8x128xf32>
    %cst_191 = arith.constant 1.000000e+00 : f32
    %292 = vector.broadcast %cst_191 : f32 to vector<8x128xf32>
    %293 = arith.mulf %292, %291 : vector<8x128xf32>
    %294 = arith.addf %278, %293 : vector<8x128xf32>
    %cst_192 = arith.constant 0.00999999977 : f32
    %295 = vector.broadcast %cst_192 : f32 to vector<8x128xf32>
    %296 = arith.addf %294, %295 : vector<8x128xf32>
    %cst_193 = arith.constant 1.000000e+00 : f32
    %297 = vector.broadcast %cst_193 : f32 to vector<8x128xf32>
    %298 = arith.mulf %297, %280 : vector<8x128xf32>
    %299 = arith.addf %279, %298 : vector<8x128xf32>
    %cst_194 = arith.constant 1.000000e-01 : f32
    %300 = vector.broadcast %cst_194 : f32 to vector<8x128xf32>
    %301 = arith.addf %280, %300 : vector<8x128xf32>
    %cst_195 = arith.constant 1.000000e-01 : f32
    %302 = vector.broadcast %cst_195 : f32 to vector<8x128xf32>
    %303 = arith.addf %296, %302 : vector<8x128xf32>
    %304 = tpu.reciprocal %303 {approx = true} : vector<8x128xf32> -> vector<8x128xf32>
    %305 = arith.mulf %296, %304 : vector<8x128xf32>
    %306 = arith.mulf %299, %304 : vector<8x128xf32>
    %307 = arith.subf %259, %286 : vector<8x128xf32>
    %308 = arith.mulf %305, %307 : vector<8x128xf32>
    %309 = arith.addf %286, %308 : vector<8x128xf32>
    %310 = arith.mulf %306, %307 : vector<8x128xf32>
    %311 = arith.addf %275, %310 : vector<8x128xf32>
    %312 = arith.mulf %305, %296 : vector<8x128xf32>
    %313 = arith.subf %296, %312 : vector<8x128xf32>
    %314 = arith.mulf %305, %299 : vector<8x128xf32>
    %315 = arith.subf %299, %314 : vector<8x128xf32>
    %316 = arith.mulf %306, %299 : vector<8x128xf32>
    %317 = arith.subf %301, %316 : vector<8x128xf32>
    %cst_196 = arith.constant 1.000000e+00 : f32
    %318 = vector.broadcast %cst_196 : f32 to vector<8x128xf32>
    %319 = arith.mulf %318, %277 : vector<8x128xf32>
    %320 = arith.addf %273, %319 : vector<8x128xf32>
    %cst_197 = arith.constant 2.000000e+00 : f32
    %321 = vector.broadcast %cst_197 : f32 to vector<8x128xf32>
    %322 = arith.mulf %321, %282 : vector<8x128xf32>
    %cst_198 = arith.constant 1.000000e+00 : f32
    %323 = vector.broadcast %cst_198 : f32 to vector<8x128xf32>
    %324 = arith.mulf %323, %283 : vector<8x128xf32>
    %325 = arith.addf %322, %324 : vector<8x128xf32>
    %cst_199 = arith.constant 1.000000e+00 : f32
    %326 = vector.broadcast %cst_199 : f32 to vector<8x128xf32>
    %327 = arith.mulf %326, %325 : vector<8x128xf32>
    %328 = arith.addf %281, %327 : vector<8x128xf32>
    %cst_200 = arith.constant 0.00999999977 : f32
    %329 = vector.broadcast %cst_200 : f32 to vector<8x128xf32>
    %330 = arith.addf %328, %329 : vector<8x128xf32>
    %cst_201 = arith.constant 1.000000e+00 : f32
    %331 = vector.broadcast %cst_201 : f32 to vector<8x128xf32>
    %332 = arith.mulf %331, %283 : vector<8x128xf32>
    %333 = arith.addf %282, %332 : vector<8x128xf32>
    %cst_202 = arith.constant 1.000000e-01 : f32
    %334 = vector.broadcast %cst_202 : f32 to vector<8x128xf32>
    %335 = arith.addf %283, %334 : vector<8x128xf32>
    %cst_203 = arith.constant 1.000000e-01 : f32
    %336 = vector.broadcast %cst_203 : f32 to vector<8x128xf32>
    %337 = arith.addf %330, %336 : vector<8x128xf32>
    %338 = tpu.reciprocal %337 {approx = true} : vector<8x128xf32> -> vector<8x128xf32>
    %339 = arith.mulf %330, %338 : vector<8x128xf32>
    %340 = arith.mulf %333, %338 : vector<8x128xf32>
    %341 = arith.subf %261, %320 : vector<8x128xf32>
    %342 = arith.mulf %339, %341 : vector<8x128xf32>
    %343 = arith.addf %320, %342 : vector<8x128xf32>
    %344 = arith.mulf %340, %341 : vector<8x128xf32>
    %345 = arith.addf %277, %344 : vector<8x128xf32>
    %346 = arith.mulf %339, %330 : vector<8x128xf32>
    %347 = arith.subf %330, %346 : vector<8x128xf32>
    %348 = arith.mulf %339, %333 : vector<8x128xf32>
    %349 = arith.subf %333, %348 : vector<8x128xf32>
    %350 = arith.mulf %340, %333 : vector<8x128xf32>
    %351 = arith.subf %335, %350 : vector<8x128xf32>
    %352 = arith.select %265, %309, %272 : vector<8x128xi1>, vector<8x128xf32>
    %353 = arith.select %265, %311, %275 : vector<8x128xi1>, vector<8x128xf32>
    %354 = arith.select %265, %313, %278 : vector<8x128xi1>, vector<8x128xf32>
    %355 = arith.select %265, %315, %279 : vector<8x128xi1>, vector<8x128xf32>
    %356 = arith.select %265, %317, %280 : vector<8x128xi1>, vector<8x128xf32>
    %357 = arith.select %265, %343, %273 : vector<8x128xi1>, vector<8x128xf32>
    %358 = arith.select %265, %345, %277 : vector<8x128xi1>, vector<8x128xf32>
    %359 = arith.select %265, %347, %281 : vector<8x128xi1>, vector<8x128xf32>
    %360 = arith.select %265, %349, %282 : vector<8x128xi1>, vector<8x128xf32>
    %361 = arith.select %265, %351, %283 : vector<8x128xi1>, vector<8x128xf32>
    %c0_204 = arith.constant 0 : index
    %c2_205 = arith.constant 2 : index
    %c0_206 = arith.constant 0 : index
    %c0_207 = arith.constant 0 : index
    %c0_208 = arith.constant 0 : index
    %c0_209 = arith.constant 0 : index
    %362 = vector.load %arg3[%c0_204, %c2_205, %c0_206, %c0_207, %c0_208, %c0_209] : memref<1x14x5x1x8x128xf32, #tpu.memory_space<vmem>>, vector<1x1x1x1x8x128xf32>
    %363 = vector.shape_cast %362 : vector<1x1x1x1x8x128xf32> to vector<8x128xf32>
    %364 = vector.shape_cast %352 : vector<8x128xf32> to vector<1x1x1x1x8x128xf32>
    tpu.vector_store %arg3[%c0_204, %c2_205, %c0_206, %c0_207, %c0_208, %c0_209], %364 {strides = array<i32>} : memref<1x14x5x1x8x128xf32, #tpu.memory_space<vmem>>, vector<1x1x1x1x8x128xf32>,
    %c0_210 = arith.constant 0 : index
    %c2_211 = arith.constant 2 : index
    %c1_212 = arith.constant 1 : index
    %c0_213 = arith.constant 0 : index
    %c0_214 = arith.constant 0 : index
    %c0_215 = arith.constant 0 : index
    %365 = vector.load %arg3[%c0_210, %c2_211, %c1_212, %c0_213, %c0_214, %c0_215] : memref<1x14x5x1x8x128xf32, #tpu.memory_space<vmem>>, vector<1x1x1x1x8x128xf32>
    %366 = vector.shape_cast %365 : vector<1x1x1x1x8x128xf32> to vector<8x128xf32>
    %367 = vector.shape_cast %357 : vector<8x128xf32> to vector<1x1x1x1x8x128xf32>
    tpu.vector_store %arg3[%c0_210, %c2_211, %c1_212, %c0_213, %c0_214, %c0_215], %367 {strides = array<i32>} : memref<1x14x5x1x8x128xf32, #tpu.memory_space<vmem>>, vector<1x1x1x1x8x128xf32>,
    %cst_216 = arith.constant 0.000000e+00 : f32
    %368 = vector.broadcast %cst_216 : f32 to vector<8x128xf32>
    %369 = arith.maximumf %354, %368 : vector<8x128xf32>
    %370 = math.sqrt %369 : vector<8x128xf32>
    %c0_217 = arith.constant 0 : index
    %c2_218 = arith.constant 2 : index
    %c2_219 = arith.constant 2 : index
    %c0_220 = arith.constant 0 : index
    %c0_221 = arith.constant 0 : index
    %c0_222 = arith.constant 0 : index
    %371 = vector.load %arg3[%c0_217, %c2_218, %c2_219, %c0_220, %c0_221, %c0_222] : memref<1x14x5x1x8x128xf32, #tpu.memory_space<vmem>>, vector<1x1x1x1x8x128xf32>
    %372 = vector.shape_cast %371 : vector<1x1x1x1x8x128xf32> to vector<8x128xf32>
    %373 = vector.shape_cast %370 : vector<8x128xf32> to vector<1x1x1x1x8x128xf32>
    tpu.vector_store %arg3[%c0_217, %c2_218, %c2_219, %c0_220, %c0_221, %c0_222], %373 {strides = array<i32>} : memref<1x14x5x1x8x128xf32, #tpu.memory_space<vmem>>, vector<1x1x1x1x8x128xf32>,
    %cst_223 = arith.constant 0.000000e+00 : f32
    %374 = vector.broadcast %cst_223 : f32 to vector<8x128xf32>
    %375 = arith.maximumf %359, %374 : vector<8x128xf32>
    %376 = math.sqrt %375 : vector<8x128xf32>
    %c0_224 = arith.constant 0 : index
    %c2_225 = arith.constant 2 : index
    %c3_226 = arith.constant 3 : index
    %c0_227 = arith.constant 0 : index
    %c0_228 = arith.constant 0 : index
    %c0_229 = arith.constant 0 : index
    %377 = vector.load %arg3[%c0_224, %c2_225, %c3_226, %c0_227, %c0_228, %c0_229] : memref<1x14x5x1x8x128xf32, #tpu.memory_space<vmem>>, vector<1x1x1x1x8x128xf32>
    %378 = vector.shape_cast %377 : vector<1x1x1x1x8x128xf32> to vector<8x128xf32>
    %379 = vector.shape_cast %376 : vector<8x128xf32> to vector<1x1x1x1x8x128xf32>
    tpu.vector_store %arg3[%c0_224, %c2_225, %c3_226, %c0_227, %c0_228, %c0_229], %379 {strides = array<i32>} : memref<1x14x5x1x8x128xf32, #tpu.memory_space<vmem>>, vector<1x1x1x1x8x128xf32>,
    %c0_230 = arith.constant 0 : index
    %c2_231 = arith.constant 2 : index
    %c4_232 = arith.constant 4 : index
    %c0_233 = arith.constant 0 : index
    %c0_234 = arith.constant 0 : index
    %c0_235 = arith.constant 0 : index
    %380 = vector.load %arg3[%c0_230, %c2_231, %c4_232, %c0_233, %c0_234, %c0_235] : memref<1x14x5x1x8x128xf32, #tpu.memory_space<vmem>>, vector<1x1x1x1x8x128xf32>
    %381 = vector.shape_cast %380 : vector<1x1x1x1x8x128xf32> to vector<8x128xf32>
    %382 = vector.shape_cast %0 : vector<8x128xf32> to vector<1x1x1x1x8x128xf32>
    tpu.vector_store %arg3[%c0_230, %c2_231, %c4_232, %c0_233, %c0_234, %c0_235], %382 {strides = array<i32>} : memref<1x14x5x1x8x128xf32, #tpu.memory_space<vmem>>, vector<1x1x1x1x8x128xf32>,
    %383 = arith.ori %257, %265 : vector<8x128xi1>
    %c0_236 = arith.constant 0 : index
    %c3_237 = arith.constant 3 : index
    %c0_238 = arith.constant 0 : index
    %c0_239 = arith.constant 0 : index
    %c0_240 = arith.constant 0 : index
    %c0_241 = arith.constant 0 : index
    %384 = vector.load %arg1[%c0_236, %c3_237, %c0_238, %c0_239, %c0_240, %c0_241] : memref<1x8x2x1x8x128xf32, #tpu.memory_space<vmem>>, vector<1x1x1x1x8x128xf32>
    %385 = vector.shape_cast %384 : vector<1x1x1x1x8x128xf32> to vector<8x128xf32>
    %c0_242 = arith.constant 0 : index
    %c3_243 = arith.constant 3 : index
    %c1_244 = arith.constant 1 : index
    %c0_245 = arith.constant 0 : index
    %c0_246 = arith.constant 0 : index
    %c0_247 = arith.constant 0 : index
    %386 = vector.load %arg1[%c0_242, %c3_243, %c1_244, %c0_245, %c0_246, %c0_247] : memref<1x8x2x1x8x128xf32, #tpu.memory_space<vmem>>, vector<1x1x1x1x8x128xf32>
    %387 = vector.shape_cast %386 : vector<1x1x1x1x8x128xf32> to vector<8x128xf32>
    %c0_248 = arith.constant 0 : index
    %c3_249 = arith.constant 3 : index
    %c0_250 = arith.constant 0 : index
    %c0_251 = arith.constant 0 : index
    %c0_252 = arith.constant 0 : index
    %388 = vector.load %arg2[%c0_248, %c3_249, %c0_250, %c0_251, %c0_252] : memref<1x8x1x8x128xf32, #tpu.memory_space<vmem>>, vector<1x1x1x8x128xf32>
    %389 = vector.shape_cast %388 : vector<1x1x1x8x128xf32> to vector<8x128xf32>
    %cst_253 = arith.constant 5.000000e-01 : f32
    %390 = vector.broadcast %cst_253 : f32 to vector<8x128xf32>
    %391 = arith.cmpf ogt, %389, %390 : vector<8x128xf32>
    %cst_254 = arith.constant dense<true> : vector<8x128xi1>
    %392 = arith.xori %383, %cst_254 : vector<8x128xi1>
    %393 = arith.andi %391, %392 : vector<8x128xi1>
    %c0_255 = arith.constant 0 : index
    %c4_256 = arith.constant 4 : index
    %c0_257 = arith.constant 0 : index
    %c0_258 = arith.constant 0 : index
    %c0_259 = arith.constant 0 : index
    %c0_260 = arith.constant 0 : index
    %394 = vector.load %arg1[%c0_255, %c4_256, %c0_257, %c0_258, %c0_259, %c0_260] : memref<1x8x2x1x8x128xf32, #tpu.memory_space<vmem>>, vector<1x1x1x1x8x128xf32>
    %395 = vector.shape_cast %394 : vector<1x1x1x1x8x128xf32> to vector<8x128xf32>
    %c0_261 = arith.constant 0 : index
    %c4_262 = arith.constant 4 : index
    %c1_263 = arith.constant 1 : index
    %c0_264 = arith.constant 0 : index
    %c0_265 = arith.constant 0 : index
    %c0_266 = arith.constant 0 : index
    %396 = vector.load %arg1[%c0_261, %c4_262, %c1_263, %c0_264, %c0_265, %c0_266] : memref<1x8x2x1x8x128xf32, #tpu.memory_space<vmem>>, vector<1x1x1x1x8x128xf32>
    %397 = vector.shape_cast %396 : vector<1x1x1x1x8x128xf32> to vector<8x128xf32>
    %398 = arith.select %393, %385, %352 : vector<8x128xi1>, vector<8x128xf32>
    %399 = arith.select %393, %387, %357 : vector<8x128xi1>, vector<8x128xf32>
    %400 = arith.subf %395, %385 : vector<8x128xf32>
    %401 = arith.select %393, %400, %353 : vector<8x128xi1>, vector<8x128xf32>
    %402 = arith.subf %397, %387 : vector<8x128xf32>
    %403 = arith.select %393, %402, %358 : vector<8x128xi1>, vector<8x128xf32>
    %404 = arith.select %393, %1, %354 : vector<8x128xi1>, vector<8x128xf32>
    %405 = arith.select %393, %0, %355 : vector<8x128xi1>, vector<8x128xf32>
    %406 = arith.select %393, %3, %356 : vector<8x128xi1>, vector<8x128xf32>
    %407 = arith.select %393, %2, %359 : vector<8x128xi1>, vector<8x128xf32>
    %408 = arith.select %393, %0, %360 : vector<8x128xi1>, vector<8x128xf32>
    %409 = arith.select %393, %4, %361 : vector<8x128xi1>, vector<8x128xf32>
    %cst_267 = arith.constant 1.000000e+00 : f32
    %410 = vector.broadcast %cst_267 : f32 to vector<8x128xf32>
    %411 = arith.mulf %410, %401 : vector<8x128xf32>
    %412 = arith.addf %398, %411 : vector<8x128xf32>
    %cst_268 = arith.constant 2.000000e+00 : f32
    %413 = vector.broadcast %cst_268 : f32 to vector<8x128xf32>
    %414 = arith.mulf %413, %405 : vector<8x128xf32>
    %cst_269 = arith.constant 1.000000e+00 : f32
    %415 = vector.broadcast %cst_269 : f32 to vector<8x128xf32>
    %416 = arith.mulf %415, %406 : vector<8x128xf32>
    %417 = arith.addf %414, %416 : vector<8x128xf32>
    %cst_270 = arith.constant 1.000000e+00 : f32
    %418 = vector.broadcast %cst_270 : f32 to vector<8x128xf32>
    %419 = arith.mulf %418, %417 : vector<8x128xf32>
    %420 = arith.addf %404, %419 : vector<8x128xf32>
    %cst_271 = arith.constant 0.00999999977 : f32
    %421 = vector.broadcast %cst_271 : f32 to vector<8x128xf32>
    %422 = arith.addf %420, %421 : vector<8x128xf32>
    %cst_272 = arith.constant 1.000000e+00 : f32
    %423 = vector.broadcast %cst_272 : f32 to vector<8x128xf32>
    %424 = arith.mulf %423, %406 : vector<8x128xf32>
    %425 = arith.addf %405, %424 : vector<8x128xf32>
    %cst_273 = arith.constant 1.000000e-01 : f32
    %426 = vector.broadcast %cst_273 : f32 to vector<8x128xf32>
    %427 = arith.addf %406, %426 : vector<8x128xf32>
    %cst_274 = arith.constant 1.000000e-01 : f32
    %428 = vector.broadcast %cst_274 : f32 to vector<8x128xf32>
    %429 = arith.addf %422, %428 : vector<8x128xf32>
    %430 = tpu.reciprocal %429 {approx = true} : vector<8x128xf32> -> vector<8x128xf32>
    %431 = arith.mulf %422, %430 : vector<8x128xf32>
    %432 = arith.mulf %425, %430 : vector<8x128xf32>
    %433 = arith.subf %385, %412 : vector<8x128xf32>
    %434 = arith.mulf %431, %433 : vector<8x128xf32>
    %435 = arith.addf %412, %434 : vector<8x128xf32>
    %436 = arith.mulf %432, %433 : vector<8x128xf32>
    %437 = arith.addf %401, %436 : vector<8x128xf32>
    %438 = arith.mulf %431, %422 : vector<8x128xf32>
    %439 = arith.subf %422, %438 : vector<8x128xf32>
    %440 = arith.mulf %431, %425 : vector<8x128xf32>
    %441 = arith.subf %425, %440 : vector<8x128xf32>
    %442 = arith.mulf %432, %425 : vector<8x128xf32>
    %443 = arith.subf %427, %442 : vector<8x128xf32>
    %cst_275 = arith.constant 1.000000e+00 : f32
    %444 = vector.broadcast %cst_275 : f32 to vector<8x128xf32>
    %445 = arith.mulf %444, %403 : vector<8x128xf32>
    %446 = arith.addf %399, %445 : vector<8x128xf32>
    %cst_276 = arith.constant 2.000000e+00 : f32
    %447 = vector.broadcast %cst_276 : f32 to vector<8x128xf32>
    %448 = arith.mulf %447, %408 : vector<8x128xf32>
    %cst_277 = arith.constant 1.000000e+00 : f32
    %449 = vector.broadcast %cst_277 : f32 to vector<8x128xf32>
    %450 = arith.mulf %449, %409 : vector<8x128xf32>
    %451 = arith.addf %448, %450 : vector<8x128xf32>
    %cst_278 = arith.constant 1.000000e+00 : f32
    %452 = vector.broadcast %cst_278 : f32 to vector<8x128xf32>
    %453 = arith.mulf %452, %451 : vector<8x128xf32>
    %454 = arith.addf %407, %453 : vector<8x128xf32>
    %cst_279 = arith.constant 0.00999999977 : f32
    %455 = vector.broadcast %cst_279 : f32 to vector<8x128xf32>
    %456 = arith.addf %454, %455 : vector<8x128xf32>
    %cst_280 = arith.constant 1.000000e+00 : f32
    %457 = vector.broadcast %cst_280 : f32 to vector<8x128xf32>
    %458 = arith.mulf %457, %409 : vector<8x128xf32>
    %459 = arith.addf %408, %458 : vector<8x128xf32>
    %cst_281 = arith.constant 1.000000e-01 : f32
    %460 = vector.broadcast %cst_281 : f32 to vector<8x128xf32>
    %461 = arith.addf %409, %460 : vector<8x128xf32>
    %cst_282 = arith.constant 1.000000e-01 : f32
    %462 = vector.broadcast %cst_282 : f32 to vector<8x128xf32>
    %463 = arith.addf %456, %462 : vector<8x128xf32>
    %464 = tpu.reciprocal %463 {approx = true} : vector<8x128xf32> -> vector<8x128xf32>
    %465 = arith.mulf %456, %464 : vector<8x128xf32>
    %466 = arith.mulf %459, %464 : vector<8x128xf32>
    %467 = arith.subf %387, %446 : vector<8x128xf32>
    %468 = arith.mulf %465, %467 : vector<8x128xf32>
    %469 = arith.addf %446, %468 : vector<8x128xf32>
    %470 = arith.mulf %466, %467 : vector<8x128xf32>
    %471 = arith.addf %403, %470 : vector<8x128xf32>
    %472 = arith.mulf %465, %456 : vector<8x128xf32>
    %473 = arith.subf %456, %472 : vector<8x128xf32>
    %474 = arith.mulf %465, %459 : vector<8x128xf32>
    %475 = arith.subf %459, %474 : vector<8x128xf32>
    %476 = arith.mulf %466, %459 : vector<8x128xf32>
    %477 = arith.subf %461, %476 : vector<8x128xf32>
    %478 = arith.select %391, %435, %398 : vector<8x128xi1>, vector<8x128xf32>
    %479 = arith.select %391, %437, %401 : vector<8x128xi1>, vector<8x128xf32>
    %480 = arith.select %391, %439, %404 : vector<8x128xi1>, vector<8x128xf32>
    %481 = arith.select %391, %441, %405 : vector<8x128xi1>, vector<8x128xf32>
    %482 = arith.select %391, %443, %406 : vector<8x128xi1>, vector<8x128xf32>
    %483 = arith.select %391, %469, %399 : vector<8x128xi1>, vector<8x128xf32>
    %484 = arith.select %391, %471, %403 : vector<8x128xi1>, vector<8x128xf32>
    %485 = arith.select %391, %473, %407 : vector<8x128xi1>, vector<8x128xf32>
    %486 = arith.select %391, %475, %408 : vector<8x128xi1>, vector<8x128xf32>
    %487 = arith.select %391, %477, %409 : vector<8x128xi1>, vector<8x128xf32>
    %c0_283 = arith.constant 0 : index
    %c3_284 = arith.constant 3 : index
    %c0_285 = arith.constant 0 : index
    %c0_286 = arith.constant 0 : index
    %c0_287 = arith.constant 0 : index
    %c0_288 = arith.constant 0 : index
    %488 = vector.load %arg3[%c0_283, %c3_284, %c0_285, %c0_286, %c0_287, %c0_288] : memref<1x14x5x1x8x128xf32, #tpu.memory_space<vmem>>, vector<1x1x1x1x8x128xf32>
    %489 = vector.shape_cast %488 : vector<1x1x1x1x8x128xf32> to vector<8x128xf32>
    %490 = vector.shape_cast %478 : vector<8x128xf32> to vector<1x1x1x1x8x128xf32>
    tpu.vector_store %arg3[%c0_283, %c3_284, %c0_285, %c0_286, %c0_287, %c0_288], %490 {strides = array<i32>} : memref<1x14x5x1x8x128xf32, #tpu.memory_space<vmem>>, vector<1x1x1x1x8x128xf32>,
    %c0_289 = arith.constant 0 : index
    %c3_290 = arith.constant 3 : index
    %c1_291 = arith.constant 1 : index
    %c0_292 = arith.constant 0 : index
    %c0_293 = arith.constant 0 : index
    %c0_294 = arith.constant 0 : index
    %491 = vector.load %arg3[%c0_289, %c3_290, %c1_291, %c0_292, %c0_293, %c0_294] : memref<1x14x5x1x8x128xf32, #tpu.memory_space<vmem>>, vector<1x1x1x1x8x128xf32>
    %492 = vector.shape_cast %491 : vector<1x1x1x1x8x128xf32> to vector<8x128xf32>
    %493 = vector.shape_cast %483 : vector<8x128xf32> to vector<1x1x1x1x8x128xf32>
    tpu.vector_store %arg3[%c0_289, %c3_290, %c1_291, %c0_292, %c0_293, %c0_294], %493 {strides = array<i32>} : memref<1x14x5x1x8x128xf32, #tpu.memory_space<vmem>>, vector<1x1x1x1x8x128xf32>,
    %cst_295 = arith.constant 0.000000e+00 : f32
    %494 = vector.broadcast %cst_295 : f32 to vector<8x128xf32>
    %495 = arith.maximumf %480, %494 : vector<8x128xf32>
    %496 = math.sqrt %495 : vector<8x128xf32>
    %c0_296 = arith.constant 0 : index
    %c3_297 = arith.constant 3 : index
    %c2_298 = arith.constant 2 : index
    %c0_299 = arith.constant 0 : index
    %c0_300 = arith.constant 0 : index
    %c0_301 = arith.constant 0 : index
    %497 = vector.load %arg3[%c0_296, %c3_297, %c2_298, %c0_299, %c0_300, %c0_301] : memref<1x14x5x1x8x128xf32, #tpu.memory_space<vmem>>, vector<1x1x1x1x8x128xf32>
    %498 = vector.shape_cast %497 : vector<1x1x1x1x8x128xf32> to vector<8x128xf32>
    %499 = vector.shape_cast %496 : vector<8x128xf32> to vector<1x1x1x1x8x128xf32>
    tpu.vector_store %arg3[%c0_296, %c3_297, %c2_298, %c0_299, %c0_300, %c0_301], %499 {strides = array<i32>} : memref<1x14x5x1x8x128xf32, #tpu.memory_space<vmem>>, vector<1x1x1x1x8x128xf32>,
    %cst_302 = arith.constant 0.000000e+00 : f32
    %500 = vector.broadcast %cst_302 : f32 to vector<8x128xf32>
    %501 = arith.maximumf %485, %500 : vector<8x128xf32>
    %502 = math.sqrt %501 : vector<8x128xf32>
    %c0_303 = arith.constant 0 : index
    %c3_304 = arith.constant 3 : index
    %c3_305 = arith.constant 3 : index
    %c0_306 = arith.constant 0 : index
    %c0_307 = arith.constant 0 : index
    %c0_308 = arith.constant 0 : index
    %503 = vector.load %arg3[%c0_303, %c3_304, %c3_305, %c0_306, %c0_307, %c0_308] : memref<1x14x5x1x8x128xf32, #tpu.memory_space<vmem>>, vector<1x1x1x1x8x128xf32>
    %504 = vector.shape_cast %503 : vector<1x1x1x1x8x128xf32> to vector<8x128xf32>
    %505 = vector.shape_cast %502 : vector<8x128xf32> to vector<1x1x1x1x8x128xf32>
    tpu.vector_store %arg3[%c0_303, %c3_304, %c3_305, %c0_306, %c0_307, %c0_308], %505 {strides = array<i32>} : memref<1x14x5x1x8x128xf32, #tpu.memory_space<vmem>>, vector<1x1x1x1x8x128xf32>,
    %c0_309 = arith.constant 0 : index
    %c3_310 = arith.constant 3 : index
    %c4_311 = arith.constant 4 : index
    %c0_312 = arith.constant 0 : index
    %c0_313 = arith.constant 0 : index
    %c0_314 = arith.constant 0 : index
    %506 = vector.load %arg3[%c0_309, %c3_310, %c4_311, %c0_312, %c0_313, %c0_314] : memref<1x14x5x1x8x128xf32, #tpu.memory_space<vmem>>, vector<1x1x1x1x8x128xf32>
    %507 = vector.shape_cast %506 : vector<1x1x1x1x8x128xf32> to vector<8x128xf32>
    %508 = vector.shape_cast %0 : vector<8x128xf32> to vector<1x1x1x1x8x128xf32>
    tpu.vector_store %arg3[%c0_309, %c3_310, %c4_311, %c0_312, %c0_313, %c0_314], %508 {strides = array<i32>} : memref<1x14x5x1x8x128xf32, #tpu.memory_space<vmem>>, vector<1x1x1x1x8x128xf32>,
    %509 = arith.ori %383, %391 : vector<8x128xi1>
    %c0_315 = arith.constant 0 : index
    %c4_316 = arith.constant 4 : index
    %c0_317 = arith.constant 0 : index
    %c0_318 = arith.constant 0 : index
    %c0_319 = arith.constant 0 : index
    %c0_320 = arith.constant 0 : index
    %510 = vector.load %arg1[%c0_315, %c4_316, %c0_317, %c0_318, %c0_319, %c0_320] : memref<1x8x2x1x8x128xf32, #tpu.memory_space<vmem>>, vector<1x1x1x1x8x128xf32>
    %511 = vector.shape_cast %510 : vector<1x1x1x1x8x128xf32> to vector<8x128xf32>
    %c0_321 = arith.constant 0 : index
    %c4_322 = arith.constant 4 : index
    %c1_323 = arith.constant 1 : index
    %c0_324 = arith.constant 0 : index
    %c0_325 = arith.constant 0 : index
    %c0_326 = arith.constant 0 : index
    %512 = vector.load %arg1[%c0_321, %c4_322, %c1_323, %c0_324, %c0_325, %c0_326] : memref<1x8x2x1x8x128xf32, #tpu.memory_space<vmem>>, vector<1x1x1x1x8x128xf32>
    %513 = vector.shape_cast %512 : vector<1x1x1x1x8x128xf32> to vector<8x128xf32>
    %c0_327 = arith.constant 0 : index
    %c4_328 = arith.constant 4 : index
    %c0_329 = arith.constant 0 : index
    %c0_330 = arith.constant 0 : index
    %c0_331 = arith.constant 0 : index
    %514 = vector.load %arg2[%c0_327, %c4_328, %c0_329, %c0_330, %c0_331] : memref<1x8x1x8x128xf32, #tpu.memory_space<vmem>>, vector<1x1x1x8x128xf32>
    %515 = vector.shape_cast %514 : vector<1x1x1x8x128xf32> to vector<8x128xf32>
    %cst_332 = arith.constant 5.000000e-01 : f32
    %516 = vector.broadcast %cst_332 : f32 to vector<8x128xf32>
    %517 = arith.cmpf ogt, %515, %516 : vector<8x128xf32>
    %cst_333 = arith.constant dense<true> : vector<8x128xi1>
    %518 = arith.xori %509, %cst_333 : vector<8x128xi1>
    %519 = arith.andi %517, %518 : vector<8x128xi1>
    %c0_334 = arith.constant 0 : index
    %c5 = arith.constant 5 : index
    %c0_335 = arith.constant 0 : index
    %c0_336 = arith.constant 0 : index
    %c0_337 = arith.constant 0 : index
    %c0_338 = arith.constant 0 : index
    %520 = vector.load %arg1[%c0_334, %c5, %c0_335, %c0_336, %c0_337, %c0_338] : memref<1x8x2x1x8x128xf32, #tpu.memory_space<vmem>>, vector<1x1x1x1x8x128xf32>
    %521 = vector.shape_cast %520 : vector<1x1x1x1x8x128xf32> to vector<8x128xf32>
    %c0_339 = arith.constant 0 : index
    %c5_340 = arith.constant 5 : index
    %c1_341 = arith.constant 1 : index
    %c0_342 = arith.constant 0 : index
    %c0_343 = arith.constant 0 : index
    %c0_344 = arith.constant 0 : index
    %522 = vector.load %arg1[%c0_339, %c5_340, %c1_341, %c0_342, %c0_343, %c0_344] : memref<1x8x2x1x8x128xf32, #tpu.memory_space<vmem>>, vector<1x1x1x1x8x128xf32>
    %523 = vector.shape_cast %522 : vector<1x1x1x1x8x128xf32> to vector<8x128xf32>
    %524 = arith.select %519, %511, %478 : vector<8x128xi1>, vector<8x128xf32>
    %525 = arith.select %519, %513, %483 : vector<8x128xi1>, vector<8x128xf32>
    %526 = arith.subf %521, %511 : vector<8x128xf32>
    %527 = arith.select %519, %526, %479 : vector<8x128xi1>, vector<8x128xf32>
    %528 = arith.subf %523, %513 : vector<8x128xf32>
    %529 = arith.select %519, %528, %484 : vector<8x128xi1>, vector<8x128xf32>
    %530 = arith.select %519, %1, %480 : vector<8x128xi1>, vector<8x128xf32>
    %531 = arith.select %519, %0, %481 : vector<8x128xi1>, vector<8x128xf32>
    %532 = arith.select %519, %3, %482 : vector<8x128xi1>, vector<8x128xf32>
    %533 = arith.select %519, %2, %485 : vector<8x128xi1>, vector<8x128xf32>
    %534 = arith.select %519, %0, %486 : vector<8x128xi1>, vector<8x128xf32>
    %535 = arith.select %519, %4, %487 : vector<8x128xi1>, vector<8x128xf32>
    %cst_345 = arith.constant 1.000000e+00 : f32
    %536 = vector.broadcast %cst_345 : f32 to vector<8x128xf32>
    %537 = arith.mulf %536, %527 : vector<8x128xf32>
    %538 = arith.addf %524, %537 : vector<8x128xf32>
    %cst_346 = arith.constant 2.000000e+00 : f32
    %539 = vector.broadcast %cst_346 : f32 to vector<8x128xf32>
    %540 = arith.mulf %539, %531 : vector<8x128xf32>
    %cst_347 = arith.constant 1.000000e+00 : f32
    %541 = vector.broadcast %cst_347 : f32 to vector<8x128xf32>
    %542 = arith.mulf %541, %532 : vector<8x128xf32>
    %543 = arith.addf %540, %542 : vector<8x128xf32>
    %cst_348 = arith.constant 1.000000e+00 : f32
    %544 = vector.broadcast %cst_348 : f32 to vector<8x128xf32>
    %545 = arith.mulf %544, %543 : vector<8x128xf32>
    %546 = arith.addf %530, %545 : vector<8x128xf32>
    %cst_349 = arith.constant 0.00999999977 : f32
    %547 = vector.broadcast %cst_349 : f32 to vector<8x128xf32>
    %548 = arith.addf %546, %547 : vector<8x128xf32>
    %cst_350 = arith.constant 1.000000e+00 : f32
    %549 = vector.broadcast %cst_350 : f32 to vector<8x128xf32>
    %550 = arith.mulf %549, %532 : vector<8x128xf32>
    %551 = arith.addf %531, %550 : vector<8x128xf32>
    %cst_351 = arith.constant 1.000000e-01 : f32
    %552 = vector.broadcast %cst_351 : f32 to vector<8x128xf32>
    %553 = arith.addf %532, %552 : vector<8x128xf32>
    %cst_352 = arith.constant 1.000000e-01 : f32
    %554 = vector.broadcast %cst_352 : f32 to vector<8x128xf32>
    %555 = arith.addf %548, %554 : vector<8x128xf32>
    %556 = tpu.reciprocal %555 {approx = true} : vector<8x128xf32> -> vector<8x128xf32>
    %557 = arith.mulf %548, %556 : vector<8x128xf32>
    %558 = arith.mulf %551, %556 : vector<8x128xf32>
    %559 = arith.subf %511, %538 : vector<8x128xf32>
    %560 = arith.mulf %557, %559 : vector<8x128xf32>
    %561 = arith.addf %538, %560 : vector<8x128xf32>
    %562 = arith.mulf %558, %559 : vector<8x128xf32>
    %563 = arith.addf %527, %562 : vector<8x128xf32>
    %564 = arith.mulf %557, %548 : vector<8x128xf32>
    %565 = arith.subf %548, %564 : vector<8x128xf32>
    %566 = arith.mulf %557, %551 : vector<8x128xf32>
    %567 = arith.subf %551, %566 : vector<8x128xf32>
    %568 = arith.mulf %558, %551 : vector<8x128xf32>
    %569 = arith.subf %553, %568 : vector<8x128xf32>
    %cst_353 = arith.constant 1.000000e+00 : f32
    %570 = vector.broadcast %cst_353 : f32 to vector<8x128xf32>
    %571 = arith.mulf %570, %529 : vector<8x128xf32>
    %572 = arith.addf %525, %571 : vector<8x128xf32>
    %cst_354 = arith.constant 2.000000e+00 : f32
    %573 = vector.broadcast %cst_354 : f32 to vector<8x128xf32>
    %574 = arith.mulf %573, %534 : vector<8x128xf32>
    %cst_355 = arith.constant 1.000000e+00 : f32
    %575 = vector.broadcast %cst_355 : f32 to vector<8x128xf32>
    %576 = arith.mulf %575, %535 : vector<8x128xf32>
    %577 = arith.addf %574, %576 : vector<8x128xf32>
    %cst_356 = arith.constant 1.000000e+00 : f32
    %578 = vector.broadcast %cst_356 : f32 to vector<8x128xf32>
    %579 = arith.mulf %578, %577 : vector<8x128xf32>
    %580 = arith.addf %533, %579 : vector<8x128xf32>
    %cst_357 = arith.constant 0.00999999977 : f32
    %581 = vector.broadcast %cst_357 : f32 to vector<8x128xf32>
    %582 = arith.addf %580, %581 : vector<8x128xf32>
    %cst_358 = arith.constant 1.000000e+00 : f32
    %583 = vector.broadcast %cst_358 : f32 to vector<8x128xf32>
    %584 = arith.mulf %583, %535 : vector<8x128xf32>
    %585 = arith.addf %534, %584 : vector<8x128xf32>
    %cst_359 = arith.constant 1.000000e-01 : f32
    %586 = vector.broadcast %cst_359 : f32 to vector<8x128xf32>
    %587 = arith.addf %535, %586 : vector<8x128xf32>
    %cst_360 = arith.constant 1.000000e-01 : f32
    %588 = vector.broadcast %cst_360 : f32 to vector<8x128xf32>
    %589 = arith.addf %582, %588 : vector<8x128xf32>
    %590 = tpu.reciprocal %589 {approx = true} : vector<8x128xf32> -> vector<8x128xf32>
    %591 = arith.mulf %582, %590 : vector<8x128xf32>
    %592 = arith.mulf %585, %590 : vector<8x128xf32>
    %593 = arith.subf %513, %572 : vector<8x128xf32>
    %594 = arith.mulf %591, %593 : vector<8x128xf32>
    %595 = arith.addf %572, %594 : vector<8x128xf32>
    %596 = arith.mulf %592, %593 : vector<8x128xf32>
    %597 = arith.addf %529, %596 : vector<8x128xf32>
    %598 = arith.mulf %591, %582 : vector<8x128xf32>
    %599 = arith.subf %582, %598 : vector<8x128xf32>
    %600 = arith.mulf %591, %585 : vector<8x128xf32>
    %601 = arith.subf %585, %600 : vector<8x128xf32>
    %602 = arith.mulf %592, %585 : vector<8x128xf32>
    %603 = arith.subf %587, %602 : vector<8x128xf32>
    %604 = arith.select %517, %561, %524 : vector<8x128xi1>, vector<8x128xf32>
    %605 = arith.select %517, %563, %527 : vector<8x128xi1>, vector<8x128xf32>
    %606 = arith.select %517, %565, %530 : vector<8x128xi1>, vector<8x128xf32>
    %607 = arith.select %517, %567, %531 : vector<8x128xi1>, vector<8x128xf32>
    %608 = arith.select %517, %569, %532 : vector<8x128xi1>, vector<8x128xf32>
    %609 = arith.select %517, %595, %525 : vector<8x128xi1>, vector<8x128xf32>
    %610 = arith.select %517, %597, %529 : vector<8x128xi1>, vector<8x128xf32>
    %611 = arith.select %517, %599, %533 : vector<8x128xi1>, vector<8x128xf32>
    %612 = arith.select %517, %601, %534 : vector<8x128xi1>, vector<8x128xf32>
    %613 = arith.select %517, %603, %535 : vector<8x128xi1>, vector<8x128xf32>
    %c0_361 = arith.constant 0 : index
    %c4_362 = arith.constant 4 : index
    %c0_363 = arith.constant 0 : index
    %c0_364 = arith.constant 0 : index
    %c0_365 = arith.constant 0 : index
    %c0_366 = arith.constant 0 : index
    %614 = vector.load %arg3[%c0_361, %c4_362, %c0_363, %c0_364, %c0_365, %c0_366] : memref<1x14x5x1x8x128xf32, #tpu.memory_space<vmem>>, vector<1x1x1x1x8x128xf32>
    %615 = vector.shape_cast %614 : vector<1x1x1x1x8x128xf32> to vector<8x128xf32>
    %616 = vector.shape_cast %604 : vector<8x128xf32> to vector<1x1x1x1x8x128xf32>
    tpu.vector_store %arg3[%c0_361, %c4_362, %c0_363, %c0_364, %c0_365, %c0_366], %616 {strides = array<i32>} : memref<1x14x5x1x8x128xf32, #tpu.memory_space<vmem>>, vector<1x1x1x1x8x128xf32>,
    %c0_367 = arith.constant 0 : index
    %c4_368 = arith.constant 4 : index
    %c1_369 = arith.constant 1 : index
    %c0_370 = arith.constant 0 : index
    %c0_371 = arith.constant 0 : index
    %c0_372 = arith.constant 0 : index
    %617 = vector.load %arg3[%c0_367, %c4_368, %c1_369, %c0_370, %c0_371, %c0_372] : memref<1x14x5x1x8x128xf32, #tpu.memory_space<vmem>>, vector<1x1x1x1x8x128xf32>
    %618 = vector.shape_cast %617 : vector<1x1x1x1x8x128xf32> to vector<8x128xf32>
    %619 = vector.shape_cast %609 : vector<8x128xf32> to vector<1x1x1x1x8x128xf32>
    tpu.vector_store %arg3[%c0_367, %c4_368, %c1_369, %c0_370, %c0_371, %c0_372], %619 {strides = array<i32>} : memref<1x14x5x1x8x128xf32, #tpu.memory_space<vmem>>, vector<1x1x1x1x8x128xf32>,
    %cst_373 = arith.constant 0.000000e+00 : f32
    %620 = vector.broadcast %cst_373 : f32 to vector<8x128xf32>
    %621 = arith.maximumf %606, %620 : vector<8x128xf32>
    %622 = math.sqrt %621 : vector<8x128xf32>
    %c0_374 = arith.constant 0 : index
    %c4_375 = arith.constant 4 : index
    %c2_376 = arith.constant 2 : index
    %c0_377 = arith.constant 0 : index
    %c0_378 = arith.constant 0 : index
    %c0_379 = arith.constant 0 : index
    %623 = vector.load %arg3[%c0_374, %c4_375, %c2_376, %c0_377, %c0_378, %c0_379] : memref<1x14x5x1x8x128xf32, #tpu.memory_space<vmem>>, vector<1x1x1x1x8x128xf32>
    %624 = vector.shape_cast %623 : vector<1x1x1x1x8x128xf32> to vector<8x128xf32>
    %625 = vector.shape_cast %622 : vector<8x128xf32> to vector<1x1x1x1x8x128xf32>
    tpu.vector_store %arg3[%c0_374, %c4_375, %c2_376, %c0_377, %c0_378, %c0_379], %625 {strides = array<i32>} : memref<1x14x5x1x8x128xf32, #tpu.memory_space<vmem>>, vector<1x1x1x1x8x128xf32>,
    %cst_380 = arith.constant 0.000000e+00 : f32
    %626 = vector.broadcast %cst_380 : f32 to vector<8x128xf32>
    %627 = arith.maximumf %611, %626 : vector<8x128xf32>
    %628 = math.sqrt %627 : vector<8x128xf32>
    %c0_381 = arith.constant 0 : index
    %c4_382 = arith.constant 4 : index
    %c3_383 = arith.constant 3 : index
    %c0_384 = arith.constant 0 : index
    %c0_385 = arith.constant 0 : index
    %c0_386 = arith.constant 0 : index
    %629 = vector.load %arg3[%c0_381, %c4_382, %c3_383, %c0_384, %c0_385, %c0_386] : memref<1x14x5x1x8x128xf32, #tpu.memory_space<vmem>>, vector<1x1x1x1x8x128xf32>
    %630 = vector.shape_cast %629 : vector<1x1x1x1x8x128xf32> to vector<8x128xf32>
    %631 = vector.shape_cast %628 : vector<8x128xf32> to vector<1x1x1x1x8x128xf32>
    tpu.vector_store %arg3[%c0_381, %c4_382, %c3_383, %c0_384, %c0_385, %c0_386], %631 {strides = array<i32>} : memref<1x14x5x1x8x128xf32, #tpu.memory_space<vmem>>, vector<1x1x1x1x8x128xf32>,
    %c0_387 = arith.constant 0 : index
    %c4_388 = arith.constant 4 : index
    %c4_389 = arith.constant 4 : index
    %c0_390 = arith.constant 0 : index
    %c0_391 = arith.constant 0 : index
    %c0_392 = arith.constant 0 : index
    %632 = vector.load %arg3[%c0_387, %c4_388, %c4_389, %c0_390, %c0_391, %c0_392] : memref<1x14x5x1x8x128xf32, #tpu.memory_space<vmem>>, vector<1x1x1x1x8x128xf32>
    %633 = vector.shape_cast %632 : vector<1x1x1x1x8x128xf32> to vector<8x128xf32>
    %634 = vector.shape_cast %0 : vector<8x128xf32> to vector<1x1x1x1x8x128xf32>
    tpu.vector_store %arg3[%c0_387, %c4_388, %c4_389, %c0_390, %c0_391, %c0_392], %634 {strides = array<i32>} : memref<1x14x5x1x8x128xf32, #tpu.memory_space<vmem>>, vector<1x1x1x1x8x128xf32>,
    %635 = arith.ori %509, %517 : vector<8x128xi1>
    %c0_393 = arith.constant 0 : index
    %c5_394 = arith.constant 5 : index
    %c0_395 = arith.constant 0 : index
    %c0_396 = arith.constant 0 : index
    %c0_397 = arith.constant 0 : index
    %c0_398 = arith.constant 0 : index
    %636 = vector.load %arg1[%c0_393, %c5_394, %c0_395, %c0_396, %c0_397, %c0_398] : memref<1x8x2x1x8x128xf32, #tpu.memory_space<vmem>>, vector<1x1x1x1x8x128xf32>
    %637 = vector.shape_cast %636 : vector<1x1x1x1x8x128xf32> to vector<8x128xf32>
    %c0_399 = arith.constant 0 : index
    %c5_400 = arith.constant 5 : index
    %c1_401 = arith.constant 1 : index
    %c0_402 = arith.constant 0 : index
    %c0_403 = arith.constant 0 : index
    %c0_404 = arith.constant 0 : index
    %638 = vector.load %arg1[%c0_399, %c5_400, %c1_401, %c0_402, %c0_403, %c0_404] : memref<1x8x2x1x8x128xf32, #tpu.memory_space<vmem>>, vector<1x1x1x1x8x128xf32>
    %639 = vector.shape_cast %638 : vector<1x1x1x1x8x128xf32> to vector<8x128xf32>
    %c0_405 = arith.constant 0 : index
    %c5_406 = arith.constant 5 : index
    %c0_407 = arith.constant 0 : index
    %c0_408 = arith.constant 0 : index
    %c0_409 = arith.constant 0 : index
    %640 = vector.load %arg2[%c0_405, %c5_406, %c0_407, %c0_408, %c0_409] : memref<1x8x1x8x128xf32, #tpu.memory_space<vmem>>, vector<1x1x1x8x128xf32>
    %641 = vector.shape_cast %640 : vector<1x1x1x8x128xf32> to vector<8x128xf32>
    %cst_410 = arith.constant 5.000000e-01 : f32
    %642 = vector.broadcast %cst_410 : f32 to vector<8x128xf32>
    %643 = arith.cmpf ogt, %641, %642 : vector<8x128xf32>
    %644 = arith.andi %643, %635 : vector<8x128xi1>
    %cst_411 = arith.constant 1.000000e+00 : f32
    %645 = vector.broadcast %cst_411 : f32 to vector<8x128xf32>
    %646 = arith.mulf %645, %605 : vector<8x128xf32>
    %647 = arith.addf %604, %646 : vector<8x128xf32>
    %cst_412 = arith.constant 2.000000e+00 : f32
    %648 = vector.broadcast %cst_412 : f32 to vector<8x128xf32>
    %649 = arith.mulf %648, %607 : vector<8x128xf32>
    %cst_413 = arith.constant 1.000000e+00 : f32
    %650 = vector.broadcast %cst_413 : f32 to vector<8x128xf32>
    %651 = arith.mulf %650, %608 : vector<8x128xf32>
    %652 = arith.addf %649, %651 : vector<8x128xf32>
    %cst_414 = arith.constant 1.000000e+00 : f32
    %653 = vector.broadcast %cst_414 : f32 to vector<8x128xf32>
    %654 = arith.mulf %653, %652 : vector<8x128xf32>
    %655 = arith.addf %606, %654 : vector<8x128xf32>
    %cst_415 = arith.constant 0.00999999977 : f32
    %656 = vector.broadcast %cst_415 : f32 to vector<8x128xf32>
    %657 = arith.addf %655, %656 : vector<8x128xf32>
    %cst_416 = arith.constant 1.000000e+00 : f32
    %658 = vector.broadcast %cst_416 : f32 to vector<8x128xf32>
    %659 = arith.mulf %658, %608 : vector<8x128xf32>
    %660 = arith.addf %607, %659 : vector<8x128xf32>
    %cst_417 = arith.constant 1.000000e-01 : f32
    %661 = vector.broadcast %cst_417 : f32 to vector<8x128xf32>
    %662 = arith.addf %608, %661 : vector<8x128xf32>
    %cst_418 = arith.constant 1.000000e-01 : f32
    %663 = vector.broadcast %cst_418 : f32 to vector<8x128xf32>
    %664 = arith.addf %657, %663 : vector<8x128xf32>
    %665 = tpu.reciprocal %664 {approx = true} : vector<8x128xf32> -> vector<8x128xf32>
    %666 = arith.mulf %657, %665 : vector<8x128xf32>
    %667 = arith.mulf %660, %665 : vector<8x128xf32>
    %668 = arith.subf %637, %647 : vector<8x128xf32>
    %669 = arith.mulf %666, %668 : vector<8x128xf32>
    %670 = arith.addf %647, %669 : vector<8x128xf32>
    %671 = arith.mulf %667, %668 : vector<8x128xf32>
    %672 = arith.addf %605, %671 : vector<8x128xf32>
    %673 = arith.mulf %666, %657 : vector<8x128xf32>
    %674 = arith.subf %657, %673 : vector<8x128xf32>
    %675 = arith.mulf %666, %660 : vector<8x128xf32>
    %676 = arith.subf %660, %675 : vector<8x128xf32>
    %677 = arith.mulf %667, %660 : vector<8x128xf32>
    %678 = arith.subf %662, %677 : vector<8x128xf32>
    %cst_419 = arith.constant 1.000000e+00 : f32
    %679 = vector.broadcast %cst_419 : f32 to vector<8x128xf32>
    %680 = arith.mulf %679, %610 : vector<8x128xf32>
    %681 = arith.addf %609, %680 : vector<8x128xf32>
    %cst_420 = arith.constant 2.000000e+00 : f32
    %682 = vector.broadcast %cst_420 : f32 to vector<8x128xf32>
    %683 = arith.mulf %682, %612 : vector<8x128xf32>
    %cst_421 = arith.constant 1.000000e+00 : f32
    %684 = vector.broadcast %cst_421 : f32 to vector<8x128xf32>
    %685 = arith.mulf %684, %613 : vector<8x128xf32>
    %686 = arith.addf %683, %685 : vector<8x128xf32>
    %cst_422 = arith.constant 1.000000e+00 : f32
    %687 = vector.broadcast %cst_422 : f32 to vector<8x128xf32>
    %688 = arith.mulf %687, %686 : vector<8x128xf32>
    %689 = arith.addf %611, %688 : vector<8x128xf32>
    %cst_423 = arith.constant 0.00999999977 : f32
    %690 = vector.broadcast %cst_423 : f32 to vector<8x128xf32>
    %691 = arith.addf %689, %690 : vector<8x128xf32>
    %cst_424 = arith.constant 1.000000e+00 : f32
    %692 = vector.broadcast %cst_424 : f32 to vector<8x128xf32>
    %693 = arith.mulf %692, %613 : vector<8x128xf32>
    %694 = arith.addf %612, %693 : vector<8x128xf32>
    %cst_425 = arith.constant 1.000000e-01 : f32
    %695 = vector.broadcast %cst_425 : f32 to vector<8x128xf32>
    %696 = arith.addf %613, %695 : vector<8x128xf32>
    %cst_426 = arith.constant 1.000000e-01 : f32
    %697 = vector.broadcast %cst_426 : f32 to vector<8x128xf32>
    %698 = arith.addf %691, %697 : vector<8x128xf32>
    %699 = tpu.reciprocal %698 {approx = true} : vector<8x128xf32> -> vector<8x128xf32>
    %700 = arith.mulf %691, %699 : vector<8x128xf32>
    %701 = arith.mulf %694, %699 : vector<8x128xf32>
    %702 = arith.subf %639, %681 : vector<8x128xf32>
    %703 = arith.mulf %700, %702 : vector<8x128xf32>
    %704 = arith.addf %681, %703 : vector<8x128xf32>
    %705 = arith.mulf %701, %702 : vector<8x128xf32>
    %706 = arith.addf %610, %705 : vector<8x128xf32>
    %707 = arith.mulf %700, %691 : vector<8x128xf32>
    %708 = arith.subf %691, %707 : vector<8x128xf32>
    %709 = arith.mulf %700, %694 : vector<8x128xf32>
    %710 = arith.subf %694, %709 : vector<8x128xf32>
    %711 = arith.mulf %701, %694 : vector<8x128xf32>
    %712 = arith.subf %696, %711 : vector<8x128xf32>
    %713 = arith.select %644, %670, %604 : vector<8x128xi1>, vector<8x128xf32>
    %714 = arith.select %644, %672, %605 : vector<8x128xi1>, vector<8x128xf32>
    %715 = arith.select %644, %674, %606 : vector<8x128xi1>, vector<8x128xf32>
    %716 = arith.select %644, %676, %607 : vector<8x128xi1>, vector<8x128xf32>
    %717 = arith.select %644, %678, %608 : vector<8x128xi1>, vector<8x128xf32>
    %718 = arith.select %644, %704, %609 : vector<8x128xi1>, vector<8x128xf32>
    %719 = arith.select %644, %706, %610 : vector<8x128xi1>, vector<8x128xf32>
    %720 = arith.select %644, %708, %611 : vector<8x128xi1>, vector<8x128xf32>
    %721 = arith.select %644, %710, %612 : vector<8x128xi1>, vector<8x128xf32>
    %722 = arith.select %644, %712, %613 : vector<8x128xi1>, vector<8x128xf32>
    %c0_427 = arith.constant 0 : index
    %c5_428 = arith.constant 5 : index
    %c0_429 = arith.constant 0 : index
    %c0_430 = arith.constant 0 : index
    %c0_431 = arith.constant 0 : index
    %c0_432 = arith.constant 0 : index
    %723 = vector.load %arg3[%c0_427, %c5_428, %c0_429, %c0_430, %c0_431, %c0_432] : memref<1x14x5x1x8x128xf32, #tpu.memory_space<vmem>>, vector<1x1x1x1x8x128xf32>
    %724 = vector.shape_cast %723 : vector<1x1x1x1x8x128xf32> to vector<8x128xf32>
    %725 = vector.shape_cast %713 : vector<8x128xf32> to vector<1x1x1x1x8x128xf32>
    tpu.vector_store %arg3[%c0_427, %c5_428, %c0_429, %c0_430, %c0_431, %c0_432], %725 {strides = array<i32>} : memref<1x14x5x1x8x128xf32, #tpu.memory_space<vmem>>, vector<1x1x1x1x8x128xf32>,
    %c0_433 = arith.constant 0 : index
    %c5_434 = arith.constant 5 : index
    %c1_435 = arith.constant 1 : index
    %c0_436 = arith.constant 0 : index
    %c0_437 = arith.constant 0 : index
    %c0_438 = arith.constant 0 : index
    %726 = vector.load %arg3[%c0_433, %c5_434, %c1_435, %c0_436, %c0_437, %c0_438] : memref<1x14x5x1x8x128xf32, #tpu.memory_space<vmem>>, vector<1x1x1x1x8x128xf32>
    %727 = vector.shape_cast %726 : vector<1x1x1x1x8x128xf32> to vector<8x128xf32>
    %728 = vector.shape_cast %718 : vector<8x128xf32> to vector<1x1x1x1x8x128xf32>
    tpu.vector_store %arg3[%c0_433, %c5_434, %c1_435, %c0_436, %c0_437, %c0_438], %728 {strides = array<i32>} : memref<1x14x5x1x8x128xf32, #tpu.memory_space<vmem>>, vector<1x1x1x1x8x128xf32>,
    %cst_439 = arith.constant 0.000000e+00 : f32
    %729 = vector.broadcast %cst_439 : f32 to vector<8x128xf32>
    %730 = arith.maximumf %715, %729 : vector<8x128xf32>
    %731 = math.sqrt %730 : vector<8x128xf32>
    %c0_440 = arith.constant 0 : index
    %c5_441 = arith.constant 5 : index
    %c2_442 = arith.constant 2 : index
    %c0_443 = arith.constant 0 : index
    %c0_444 = arith.constant 0 : index
    %c0_445 = arith.constant 0 : index
    %732 = vector.load %arg3[%c0_440, %c5_441, %c2_442, %c0_443, %c0_444, %c0_445] : memref<1x14x5x1x8x128xf32, #tpu.memory_space<vmem>>, vector<1x1x1x1x8x128xf32>
    %733 = vector.shape_cast %732 : vector<1x1x1x1x8x128xf32> to vector<8x128xf32>
    %734 = vector.shape_cast %731 : vector<8x128xf32> to vector<1x1x1x1x8x128xf32>
    tpu.vector_store %arg3[%c0_440, %c5_441, %c2_442, %c0_443, %c0_444, %c0_445], %734 {strides = array<i32>} : memref<1x14x5x1x8x128xf32, #tpu.memory_space<vmem>>, vector<1x1x1x1x8x128xf32>,
    %cst_446 = arith.constant 0.000000e+00 : f32
    %735 = vector.broadcast %cst_446 : f32 to vector<8x128xf32>
    %736 = arith.maximumf %720, %735 : vector<8x128xf32>
    %737 = math.sqrt %736 : vector<8x128xf32>
    %c0_447 = arith.constant 0 : index
    %c5_448 = arith.constant 5 : index
    %c3_449 = arith.constant 3 : index
    %c0_450 = arith.constant 0 : index
    %c0_451 = arith.constant 0 : index
    %c0_452 = arith.constant 0 : index
    %738 = vector.load %arg3[%c0_447, %c5_448, %c3_449, %c0_450, %c0_451, %c0_452] : memref<1x14x5x1x8x128xf32, #tpu.memory_space<vmem>>, vector<1x1x1x1x8x128xf32>
    %739 = vector.shape_cast %738 : vector<1x1x1x1x8x128xf32> to vector<8x128xf32>
    %740 = vector.shape_cast %737 : vector<8x128xf32> to vector<1x1x1x1x8x128xf32>
    tpu.vector_store %arg3[%c0_447, %c5_448, %c3_449, %c0_450, %c0_451, %c0_452], %740 {strides = array<i32>} : memref<1x14x5x1x8x128xf32, #tpu.memory_space<vmem>>, vector<1x1x1x1x8x128xf32>,
    %c0_453 = arith.constant 0 : index
    %c5_454 = arith.constant 5 : index
    %c4_455 = arith.constant 4 : index
    %c0_456 = arith.constant 0 : index
    %c0_457 = arith.constant 0 : index
    %c0_458 = arith.constant 0 : index
    %741 = vector.load %arg3[%c0_453, %c5_454, %c4_455, %c0_456, %c0_457, %c0_458] : memref<1x14x5x1x8x128xf32, #tpu.memory_space<vmem>>, vector<1x1x1x1x8x128xf32>
    %742 = vector.shape_cast %741 : vector<1x1x1x1x8x128xf32> to vector<8x128xf32>
    %743 = vector.shape_cast %0 : vector<8x128xf32> to vector<1x1x1x1x8x128xf32>
    tpu.vector_store %arg3[%c0_453, %c5_454, %c4_455, %c0_456, %c0_457, %c0_458], %743 {strides = array<i32>} : memref<1x14x5x1x8x128xf32, #tpu.memory_space<vmem>>, vector<1x1x1x1x8x128xf32>,
    %744 = arith.ori %635, %643 : vector<8x128xi1>
    %c0_459 = arith.constant 0 : index
    %c6 = arith.constant 6 : index
    %c0_460 = arith.constant 0 : index
    %c0_461 = arith.constant 0 : index
    %c0_462 = arith.constant 0 : index
    %c0_463 = arith.constant 0 : index
    %745 = vector.load %arg1[%c0_459, %c6, %c0_460, %c0_461, %c0_462, %c0_463] : memref<1x8x2x1x8x128xf32, #tpu.memory_space<vmem>>, vector<1x1x1x1x8x128xf32>
    %746 = vector.shape_cast %745 : vector<1x1x1x1x8x128xf32> to vector<8x128xf32>
    %c0_464 = arith.constant 0 : index
    %c6_465 = arith.constant 6 : index
    %c1_466 = arith.constant 1 : index
    %c0_467 = arith.constant 0 : index
    %c0_468 = arith.constant 0 : index
    %c0_469 = arith.constant 0 : index
    %747 = vector.load %arg1[%c0_464, %c6_465, %c1_466, %c0_467, %c0_468, %c0_469] : memref<1x8x2x1x8x128xf32, #tpu.memory_space<vmem>>, vector<1x1x1x1x8x128xf32>
    %748 = vector.shape_cast %747 : vector<1x1x1x1x8x128xf32> to vector<8x128xf32>
    %c0_470 = arith.constant 0 : index
    %c6_471 = arith.constant 6 : index
    %c0_472 = arith.constant 0 : index
    %c0_473 = arith.constant 0 : index
    %c0_474 = arith.constant 0 : index
    %749 = vector.load %arg2[%c0_470, %c6_471, %c0_472, %c0_473, %c0_474] : memref<1x8x1x8x128xf32, #tpu.memory_space<vmem>>, vector<1x1x1x8x128xf32>
    %750 = vector.shape_cast %749 : vector<1x1x1x8x128xf32> to vector<8x128xf32>
    %cst_475 = arith.constant 5.000000e-01 : f32
    %751 = vector.broadcast %cst_475 : f32 to vector<8x128xf32>
    %752 = arith.cmpf ogt, %750, %751 : vector<8x128xf32>
    %753 = arith.andi %752, %744 : vector<8x128xi1>
    %cst_476 = arith.constant 1.000000e+00 : f32
    %754 = vector.broadcast %cst_476 : f32 to vector<8x128xf32>
    %755 = arith.mulf %754, %714 : vector<8x128xf32>
    %756 = arith.addf %713, %755 : vector<8x128xf32>
    %cst_477 = arith.constant 2.000000e+00 : f32
    %757 = vector.broadcast %cst_477 : f32 to vector<8x128xf32>
    %758 = arith.mulf %757, %716 : vector<8x128xf32>
    %cst_478 = arith.constant 1.000000e+00 : f32
    %759 = vector.broadcast %cst_478 : f32 to vector<8x128xf32>
    %760 = arith.mulf %759, %717 : vector<8x128xf32>
    %761 = arith.addf %758, %760 : vector<8x128xf32>
    %cst_479 = arith.constant 1.000000e+00 : f32
    %762 = vector.broadcast %cst_479 : f32 to vector<8x128xf32>
    %763 = arith.mulf %762, %761 : vector<8x128xf32>
    %764 = arith.addf %715, %763 : vector<8x128xf32>
    %cst_480 = arith.constant 0.00999999977 : f32
    %765 = vector.broadcast %cst_480 : f32 to vector<8x128xf32>
    %766 = arith.addf %764, %765 : vector<8x128xf32>
    %cst_481 = arith.constant 1.000000e+00 : f32
    %767 = vector.broadcast %cst_481 : f32 to vector<8x128xf32>
    %768 = arith.mulf %767, %717 : vector<8x128xf32>
    %769 = arith.addf %716, %768 : vector<8x128xf32>
    %cst_482 = arith.constant 1.000000e-01 : f32
    %770 = vector.broadcast %cst_482 : f32 to vector<8x128xf32>
    %771 = arith.addf %717, %770 : vector<8x128xf32>
    %cst_483 = arith.constant 1.000000e-01 : f32
    %772 = vector.broadcast %cst_483 : f32 to vector<8x128xf32>
    %773 = arith.addf %766, %772 : vector<8x128xf32>
    %774 = tpu.reciprocal %773 {approx = true} : vector<8x128xf32> -> vector<8x128xf32>
    %775 = arith.mulf %766, %774 : vector<8x128xf32>
    %776 = arith.mulf %769, %774 : vector<8x128xf32>
    %777 = arith.subf %746, %756 : vector<8x128xf32>
    %778 = arith.mulf %775, %777 : vector<8x128xf32>
    %779 = arith.addf %756, %778 : vector<8x128xf32>
    %780 = arith.mulf %776, %777 : vector<8x128xf32>
    %781 = arith.addf %714, %780 : vector<8x128xf32>
    %782 = arith.mulf %775, %766 : vector<8x128xf32>
    %783 = arith.subf %766, %782 : vector<8x128xf32>
    %784 = arith.mulf %775, %769 : vector<8x128xf32>
    %785 = arith.subf %769, %784 : vector<8x128xf32>
    %786 = arith.mulf %776, %769 : vector<8x128xf32>
    %787 = arith.subf %771, %786 : vector<8x128xf32>
    %cst_484 = arith.constant 1.000000e+00 : f32
    %788 = vector.broadcast %cst_484 : f32 to vector<8x128xf32>
    %789 = arith.mulf %788, %719 : vector<8x128xf32>
    %790 = arith.addf %718, %789 : vector<8x128xf32>
    %cst_485 = arith.constant 2.000000e+00 : f32
    %791 = vector.broadcast %cst_485 : f32 to vector<8x128xf32>
    %792 = arith.mulf %791, %721 : vector<8x128xf32>
    %cst_486 = arith.constant 1.000000e+00 : f32
    %793 = vector.broadcast %cst_486 : f32 to vector<8x128xf32>
    %794 = arith.mulf %793, %722 : vector<8x128xf32>
    %795 = arith.addf %792, %794 : vector<8x128xf32>
    %cst_487 = arith.constant 1.000000e+00 : f32
    %796 = vector.broadcast %cst_487 : f32 to vector<8x128xf32>
    %797 = arith.mulf %796, %795 : vector<8x128xf32>
    %798 = arith.addf %720, %797 : vector<8x128xf32>
    %cst_488 = arith.constant 0.00999999977 : f32
    %799 = vector.broadcast %cst_488 : f32 to vector<8x128xf32>
    %800 = arith.addf %798, %799 : vector<8x128xf32>
    %cst_489 = arith.constant 1.000000e+00 : f32
    %801 = vector.broadcast %cst_489 : f32 to vector<8x128xf32>
    %802 = arith.mulf %801, %722 : vector<8x128xf32>
    %803 = arith.addf %721, %802 : vector<8x128xf32>
    %cst_490 = arith.constant 1.000000e-01 : f32
    %804 = vector.broadcast %cst_490 : f32 to vector<8x128xf32>
    %805 = arith.addf %722, %804 : vector<8x128xf32>
    %cst_491 = arith.constant 1.000000e-01 : f32
    %806 = vector.broadcast %cst_491 : f32 to vector<8x128xf32>
    %807 = arith.addf %800, %806 : vector<8x128xf32>
    %808 = tpu.reciprocal %807 {approx = true} : vector<8x128xf32> -> vector<8x128xf32>
    %809 = arith.mulf %800, %808 : vector<8x128xf32>
    %810 = arith.mulf %803, %808 : vector<8x128xf32>
    %811 = arith.subf %748, %790 : vector<8x128xf32>
    %812 = arith.mulf %809, %811 : vector<8x128xf32>
    %813 = arith.addf %790, %812 : vector<8x128xf32>
    %814 = arith.mulf %810, %811 : vector<8x128xf32>
    %815 = arith.addf %719, %814 : vector<8x128xf32>
    %816 = arith.mulf %809, %800 : vector<8x128xf32>
    %817 = arith.subf %800, %816 : vector<8x128xf32>
    %818 = arith.mulf %809, %803 : vector<8x128xf32>
    %819 = arith.subf %803, %818 : vector<8x128xf32>
    %820 = arith.mulf %810, %803 : vector<8x128xf32>
    %821 = arith.subf %805, %820 : vector<8x128xf32>
    %822 = arith.select %753, %779, %713 : vector<8x128xi1>, vector<8x128xf32>
    %823 = arith.select %753, %781, %714 : vector<8x128xi1>, vector<8x128xf32>
    %824 = arith.select %753, %783, %715 : vector<8x128xi1>, vector<8x128xf32>
    %825 = arith.select %753, %785, %716 : vector<8x128xi1>, vector<8x128xf32>
    %826 = arith.select %753, %787, %717 : vector<8x128xi1>, vector<8x128xf32>
    %827 = arith.select %753, %813, %718 : vector<8x128xi1>, vector<8x128xf32>
    %828 = arith.select %753, %815, %719 : vector<8x128xi1>, vector<8x128xf32>
    %829 = arith.select %753, %817, %720 : vector<8x128xi1>, vector<8x128xf32>
    %830 = arith.select %753, %819, %721 : vector<8x128xi1>, vector<8x128xf32>
    %831 = arith.select %753, %821, %722 : vector<8x128xi1>, vector<8x128xf32>
    %c0_492 = arith.constant 0 : index
    %c6_493 = arith.constant 6 : index
    %c0_494 = arith.constant 0 : index
    %c0_495 = arith.constant 0 : index
    %c0_496 = arith.constant 0 : index
    %c0_497 = arith.constant 0 : index
    %832 = vector.load %arg3[%c0_492, %c6_493, %c0_494, %c0_495, %c0_496, %c0_497] : memref<1x14x5x1x8x128xf32, #tpu.memory_space<vmem>>, vector<1x1x1x1x8x128xf32>
    %833 = vector.shape_cast %832 : vector<1x1x1x1x8x128xf32> to vector<8x128xf32>
    %834 = vector.shape_cast %822 : vector<8x128xf32> to vector<1x1x1x1x8x128xf32>
    tpu.vector_store %arg3[%c0_492, %c6_493, %c0_494, %c0_495, %c0_496, %c0_497], %834 {strides = array<i32>} : memref<1x14x5x1x8x128xf32, #tpu.memory_space<vmem>>, vector<1x1x1x1x8x128xf32>,
    %c0_498 = arith.constant 0 : index
    %c6_499 = arith.constant 6 : index
    %c1_500 = arith.constant 1 : index
    %c0_501 = arith.constant 0 : index
    %c0_502 = arith.constant 0 : index
    %c0_503 = arith.constant 0 : index
    %835 = vector.load %arg3[%c0_498, %c6_499, %c1_500, %c0_501, %c0_502, %c0_503] : memref<1x14x5x1x8x128xf32, #tpu.memory_space<vmem>>, vector<1x1x1x1x8x128xf32>
    %836 = vector.shape_cast %835 : vector<1x1x1x1x8x128xf32> to vector<8x128xf32>
    %837 = vector.shape_cast %827 : vector<8x128xf32> to vector<1x1x1x1x8x128xf32>
    tpu.vector_store %arg3[%c0_498, %c6_499, %c1_500, %c0_501, %c0_502, %c0_503], %837 {strides = array<i32>} : memref<1x14x5x1x8x128xf32, #tpu.memory_space<vmem>>, vector<1x1x1x1x8x128xf32>,
    %cst_504 = arith.constant 0.000000e+00 : f32
    %838 = vector.broadcast %cst_504 : f32 to vector<8x128xf32>
    %839 = arith.maximumf %824, %838 : vector<8x128xf32>
    %840 = math.sqrt %839 : vector<8x128xf32>
    %c0_505 = arith.constant 0 : index
    %c6_506 = arith.constant 6 : index
    %c2_507 = arith.constant 2 : index
    %c0_508 = arith.constant 0 : index
    %c0_509 = arith.constant 0 : index
    %c0_510 = arith.constant 0 : index
    %841 = vector.load %arg3[%c0_505, %c6_506, %c2_507, %c0_508, %c0_509, %c0_510] : memref<1x14x5x1x8x128xf32, #tpu.memory_space<vmem>>, vector<1x1x1x1x8x128xf32>
    %842 = vector.shape_cast %841 : vector<1x1x1x1x8x128xf32> to vector<8x128xf32>
    %843 = vector.shape_cast %840 : vector<8x128xf32> to vector<1x1x1x1x8x128xf32>
    tpu.vector_store %arg3[%c0_505, %c6_506, %c2_507, %c0_508, %c0_509, %c0_510], %843 {strides = array<i32>} : memref<1x14x5x1x8x128xf32, #tpu.memory_space<vmem>>, vector<1x1x1x1x8x128xf32>,
    %cst_511 = arith.constant 0.000000e+00 : f32
    %844 = vector.broadcast %cst_511 : f32 to vector<8x128xf32>
    %845 = arith.maximumf %829, %844 : vector<8x128xf32>
    %846 = math.sqrt %845 : vector<8x128xf32>
    %c0_512 = arith.constant 0 : index
    %c6_513 = arith.constant 6 : index
    %c3_514 = arith.constant 3 : index
    %c0_515 = arith.constant 0 : index
    %c0_516 = arith.constant 0 : index
    %c0_517 = arith.constant 0 : index
    %847 = vector.load %arg3[%c0_512, %c6_513, %c3_514, %c0_515, %c0_516, %c0_517] : memref<1x14x5x1x8x128xf32, #tpu.memory_space<vmem>>, vector<1x1x1x1x8x128xf32>
    %848 = vector.shape_cast %847 : vector<1x1x1x1x8x128xf32> to vector<8x128xf32>
    %849 = vector.shape_cast %846 : vector<8x128xf32> to vector<1x1x1x1x8x128xf32>
    tpu.vector_store %arg3[%c0_512, %c6_513, %c3_514, %c0_515, %c0_516, %c0_517], %849 {strides = array<i32>} : memref<1x14x5x1x8x128xf32, #tpu.memory_space<vmem>>, vector<1x1x1x1x8x128xf32>,
    %c0_518 = arith.constant 0 : index
    %c6_519 = arith.constant 6 : index
    %c4_520 = arith.constant 4 : index
    %c0_521 = arith.constant 0 : index
    %c0_522 = arith.constant 0 : index
    %c0_523 = arith.constant 0 : index
    %850 = vector.load %arg3[%c0_518, %c6_519, %c4_520, %c0_521, %c0_522, %c0_523] : memref<1x14x5x1x8x128xf32, #tpu.memory_space<vmem>>, vector<1x1x1x1x8x128xf32>
    %851 = vector.shape_cast %850 : vector<1x1x1x1x8x128xf32> to vector<8x128xf32>
    %852 = vector.shape_cast %0 : vector<8x128xf32> to vector<1x1x1x1x8x128xf32>
    tpu.vector_store %arg3[%c0_518, %c6_519, %c4_520, %c0_521, %c0_522, %c0_523], %852 {strides = array<i32>} : memref<1x14x5x1x8x128xf32, #tpu.memory_space<vmem>>, vector<1x1x1x1x8x128xf32>,
    %853 = arith.ori %744, %752 : vector<8x128xi1>
    %c0_524 = arith.constant 0 : index
    %c7 = arith.constant 7 : index
    %c0_525 = arith.constant 0 : index
    %c0_526 = arith.constant 0 : index
    %c0_527 = arith.constant 0 : index
    %c0_528 = arith.constant 0 : index
    %854 = vector.load %arg1[%c0_524, %c7, %c0_525, %c0_526, %c0_527, %c0_528] : memref<1x8x2x1x8x128xf32, #tpu.memory_space<vmem>>, vector<1x1x1x1x8x128xf32>
    %855 = vector.shape_cast %854 : vector<1x1x1x1x8x128xf32> to vector<8x128xf32>
    %c0_529 = arith.constant 0 : index
    %c7_530 = arith.constant 7 : index
    %c1_531 = arith.constant 1 : index
    %c0_532 = arith.constant 0 : index
    %c0_533 = arith.constant 0 : index
    %c0_534 = arith.constant 0 : index
    %856 = vector.load %arg1[%c0_529, %c7_530, %c1_531, %c0_532, %c0_533, %c0_534] : memref<1x8x2x1x8x128xf32, #tpu.memory_space<vmem>>, vector<1x1x1x1x8x128xf32>
    %857 = vector.shape_cast %856 : vector<1x1x1x1x8x128xf32> to vector<8x128xf32>
    %c0_535 = arith.constant 0 : index
    %c7_536 = arith.constant 7 : index
    %c0_537 = arith.constant 0 : index
    %c0_538 = arith.constant 0 : index
    %c0_539 = arith.constant 0 : index
    %858 = vector.load %arg2[%c0_535, %c7_536, %c0_537, %c0_538, %c0_539] : memref<1x8x1x8x128xf32, #tpu.memory_space<vmem>>, vector<1x1x1x8x128xf32>
    %859 = vector.shape_cast %858 : vector<1x1x1x8x128xf32> to vector<8x128xf32>
    %cst_540 = arith.constant 5.000000e-01 : f32
    %860 = vector.broadcast %cst_540 : f32 to vector<8x128xf32>
    %861 = arith.cmpf ogt, %859, %860 : vector<8x128xf32>
    %862 = arith.andi %861, %853 : vector<8x128xi1>
    %cst_541 = arith.constant 1.000000e+00 : f32
    %863 = vector.broadcast %cst_541 : f32 to vector<8x128xf32>
    %864 = arith.mulf %863, %823 : vector<8x128xf32>
    %865 = arith.addf %822, %864 : vector<8x128xf32>
    %cst_542 = arith.constant 2.000000e+00 : f32
    %866 = vector.broadcast %cst_542 : f32 to vector<8x128xf32>
    %867 = arith.mulf %866, %825 : vector<8x128xf32>
    %cst_543 = arith.constant 1.000000e+00 : f32
    %868 = vector.broadcast %cst_543 : f32 to vector<8x128xf32>
    %869 = arith.mulf %868, %826 : vector<8x128xf32>
    %870 = arith.addf %867, %869 : vector<8x128xf32>
    %cst_544 = arith.constant 1.000000e+00 : f32
    %871 = vector.broadcast %cst_544 : f32 to vector<8x128xf32>
    %872 = arith.mulf %871, %870 : vector<8x128xf32>
    %873 = arith.addf %824, %872 : vector<8x128xf32>
    %cst_545 = arith.constant 0.00999999977 : f32
    %874 = vector.broadcast %cst_545 : f32 to vector<8x128xf32>
    %875 = arith.addf %873, %874 : vector<8x128xf32>
    %cst_546 = arith.constant 1.000000e+00 : f32
    %876 = vector.broadcast %cst_546 : f32 to vector<8x128xf32>
    %877 = arith.mulf %876, %826 : vector<8x128xf32>
    %878 = arith.addf %825, %877 : vector<8x128xf32>
    %cst_547 = arith.constant 1.000000e-01 : f32
    %879 = vector.broadcast %cst_547 : f32 to vector<8x128xf32>
    %880 = arith.addf %826, %879 : vector<8x128xf32>
    %cst_548 = arith.constant 1.000000e-01 : f32
    %881 = vector.broadcast %cst_548 : f32 to vector<8x128xf32>
    %882 = arith.addf %875, %881 : vector<8x128xf32>
    %883 = tpu.reciprocal %882 {approx = true} : vector<8x128xf32> -> vector<8x128xf32>
    %884 = arith.mulf %875, %883 : vector<8x128xf32>
    %885 = arith.mulf %878, %883 : vector<8x128xf32>
    %886 = arith.subf %855, %865 : vector<8x128xf32>
    %887 = arith.mulf %884, %886 : vector<8x128xf32>
    %888 = arith.addf %865, %887 : vector<8x128xf32>
    %889 = arith.mulf %885, %886 : vector<8x128xf32>
    %890 = arith.addf %823, %889 : vector<8x128xf32>
    %891 = arith.mulf %884, %875 : vector<8x128xf32>
    %892 = arith.subf %875, %891 : vector<8x128xf32>
    %893 = arith.mulf %884, %878 : vector<8x128xf32>
    %894 = arith.subf %878, %893 : vector<8x128xf32>
    %895 = arith.mulf %885, %878 : vector<8x128xf32>
    %896 = arith.subf %880, %895 : vector<8x128xf32>
    %cst_549 = arith.constant 1.000000e+00 : f32
    %897 = vector.broadcast %cst_549 : f32 to vector<8x128xf32>
    %898 = arith.mulf %897, %828 : vector<8x128xf32>
    %899 = arith.addf %827, %898 : vector<8x128xf32>
    %cst_550 = arith.constant 2.000000e+00 : f32
    %900 = vector.broadcast %cst_550 : f32 to vector<8x128xf32>
    %901 = arith.mulf %900, %830 : vector<8x128xf32>
    %cst_551 = arith.constant 1.000000e+00 : f32
    %902 = vector.broadcast %cst_551 : f32 to vector<8x128xf32>
    %903 = arith.mulf %902, %831 : vector<8x128xf32>
    %904 = arith.addf %901, %903 : vector<8x128xf32>
    %cst_552 = arith.constant 1.000000e+00 : f32
    %905 = vector.broadcast %cst_552 : f32 to vector<8x128xf32>
    %906 = arith.mulf %905, %904 : vector<8x128xf32>
    %907 = arith.addf %829, %906 : vector<8x128xf32>
    %cst_553 = arith.constant 0.00999999977 : f32
    %908 = vector.broadcast %cst_553 : f32 to vector<8x128xf32>
    %909 = arith.addf %907, %908 : vector<8x128xf32>
    %cst_554 = arith.constant 1.000000e+00 : f32
    %910 = vector.broadcast %cst_554 : f32 to vector<8x128xf32>
    %911 = arith.mulf %910, %831 : vector<8x128xf32>
    %912 = arith.addf %830, %911 : vector<8x128xf32>
    %cst_555 = arith.constant 1.000000e-01 : f32
    %913 = vector.broadcast %cst_555 : f32 to vector<8x128xf32>
    %914 = arith.addf %831, %913 : vector<8x128xf32>
    %cst_556 = arith.constant 1.000000e-01 : f32
    %915 = vector.broadcast %cst_556 : f32 to vector<8x128xf32>
    %916 = arith.addf %909, %915 : vector<8x128xf32>
    %917 = tpu.reciprocal %916 {approx = true} : vector<8x128xf32> -> vector<8x128xf32>
    %918 = arith.mulf %909, %917 : vector<8x128xf32>
    %919 = arith.mulf %912, %917 : vector<8x128xf32>
    %920 = arith.subf %857, %899 : vector<8x128xf32>
    %921 = arith.mulf %918, %920 : vector<8x128xf32>
    %922 = arith.addf %899, %921 : vector<8x128xf32>
    %923 = arith.mulf %919, %920 : vector<8x128xf32>
    %924 = arith.addf %828, %923 : vector<8x128xf32>
    %925 = arith.mulf %918, %909 : vector<8x128xf32>
    %926 = arith.subf %909, %925 : vector<8x128xf32>
    %927 = arith.mulf %918, %912 : vector<8x128xf32>
    %928 = arith.subf %912, %927 : vector<8x128xf32>
    %929 = arith.mulf %919, %912 : vector<8x128xf32>
    %930 = arith.subf %914, %929 : vector<8x128xf32>
    %931 = arith.select %862, %888, %822 : vector<8x128xi1>, vector<8x128xf32>
    %932 = arith.select %862, %890, %823 : vector<8x128xi1>, vector<8x128xf32>
    %933 = arith.select %862, %892, %824 : vector<8x128xi1>, vector<8x128xf32>
    %934 = arith.select %862, %894, %825 : vector<8x128xi1>, vector<8x128xf32>
    %935 = arith.select %862, %896, %826 : vector<8x128xi1>, vector<8x128xf32>
    %936 = arith.select %862, %922, %827 : vector<8x128xi1>, vector<8x128xf32>
    %937 = arith.select %862, %924, %828 : vector<8x128xi1>, vector<8x128xf32>
    %938 = arith.select %862, %926, %829 : vector<8x128xi1>, vector<8x128xf32>
    %939 = arith.select %862, %928, %830 : vector<8x128xi1>, vector<8x128xf32>
    %940 = arith.select %862, %930, %831 : vector<8x128xi1>, vector<8x128xf32>
    %c0_557 = arith.constant 0 : index
    %c7_558 = arith.constant 7 : index
    %c0_559 = arith.constant 0 : index
    %c0_560 = arith.constant 0 : index
    %c0_561 = arith.constant 0 : index
    %c0_562 = arith.constant 0 : index
    %941 = vector.load %arg3[%c0_557, %c7_558, %c0_559, %c0_560, %c0_561, %c0_562] : memref<1x14x5x1x8x128xf32, #tpu.memory_space<vmem>>, vector<1x1x1x1x8x128xf32>
    %942 = vector.shape_cast %941 : vector<1x1x1x1x8x128xf32> to vector<8x128xf32>
    %943 = vector.shape_cast %931 : vector<8x128xf32> to vector<1x1x1x1x8x128xf32>
    tpu.vector_store %arg3[%c0_557, %c7_558, %c0_559, %c0_560, %c0_561, %c0_562], %943 {strides = array<i32>} : memref<1x14x5x1x8x128xf32, #tpu.memory_space<vmem>>, vector<1x1x1x1x8x128xf32>,
    %c0_563 = arith.constant 0 : index
    %c7_564 = arith.constant 7 : index
    %c1_565 = arith.constant 1 : index
    %c0_566 = arith.constant 0 : index
    %c0_567 = arith.constant 0 : index
    %c0_568 = arith.constant 0 : index
    %944 = vector.load %arg3[%c0_563, %c7_564, %c1_565, %c0_566, %c0_567, %c0_568] : memref<1x14x5x1x8x128xf32, #tpu.memory_space<vmem>>, vector<1x1x1x1x8x128xf32>
    %945 = vector.shape_cast %944 : vector<1x1x1x1x8x128xf32> to vector<8x128xf32>
    %946 = vector.shape_cast %936 : vector<8x128xf32> to vector<1x1x1x1x8x128xf32>
    tpu.vector_store %arg3[%c0_563, %c7_564, %c1_565, %c0_566, %c0_567, %c0_568], %946 {strides = array<i32>} : memref<1x14x5x1x8x128xf32, #tpu.memory_space<vmem>>, vector<1x1x1x1x8x128xf32>,
    %cst_569 = arith.constant 0.000000e+00 : f32
    %947 = vector.broadcast %cst_569 : f32 to vector<8x128xf32>
    %948 = arith.maximumf %933, %947 : vector<8x128xf32>
    %949 = math.sqrt %948 : vector<8x128xf32>
    %c0_570 = arith.constant 0 : index
    %c7_571 = arith.constant 7 : index
    %c2_572 = arith.constant 2 : index
    %c0_573 = arith.constant 0 : index
    %c0_574 = arith.constant 0 : index
    %c0_575 = arith.constant 0 : index
    %950 = vector.load %arg3[%c0_570, %c7_571, %c2_572, %c0_573, %c0_574, %c0_575] : memref<1x14x5x1x8x128xf32, #tpu.memory_space<vmem>>, vector<1x1x1x1x8x128xf32>
    %951 = vector.shape_cast %950 : vector<1x1x1x1x8x128xf32> to vector<8x128xf32>
    %952 = vector.shape_cast %949 : vector<8x128xf32> to vector<1x1x1x1x8x128xf32>
    tpu.vector_store %arg3[%c0_570, %c7_571, %c2_572, %c0_573, %c0_574, %c0_575], %952 {strides = array<i32>} : memref<1x14x5x1x8x128xf32, #tpu.memory_space<vmem>>, vector<1x1x1x1x8x128xf32>,
    %cst_576 = arith.constant 0.000000e+00 : f32
    %953 = vector.broadcast %cst_576 : f32 to vector<8x128xf32>
    %954 = arith.maximumf %938, %953 : vector<8x128xf32>
    %955 = math.sqrt %954 : vector<8x128xf32>
    %c0_577 = arith.constant 0 : index
    %c7_578 = arith.constant 7 : index
    %c3_579 = arith.constant 3 : index
    %c0_580 = arith.constant 0 : index
    %c0_581 = arith.constant 0 : index
    %c0_582 = arith.constant 0 : index
    %956 = vector.load %arg3[%c0_577, %c7_578, %c3_579, %c0_580, %c0_581, %c0_582] : memref<1x14x5x1x8x128xf32, #tpu.memory_space<vmem>>, vector<1x1x1x1x8x128xf32>
    %957 = vector.shape_cast %956 : vector<1x1x1x1x8x128xf32> to vector<8x128xf32>
    %958 = vector.shape_cast %955 : vector<8x128xf32> to vector<1x1x1x1x8x128xf32>
    tpu.vector_store %arg3[%c0_577, %c7_578, %c3_579, %c0_580, %c0_581, %c0_582], %958 {strides = array<i32>} : memref<1x14x5x1x8x128xf32, #tpu.memory_space<vmem>>, vector<1x1x1x1x8x128xf32>,
    %c0_583 = arith.constant 0 : index
    %c7_584 = arith.constant 7 : index
    %c4_585 = arith.constant 4 : index
    %c0_586 = arith.constant 0 : index
    %c0_587 = arith.constant 0 : index
    %c0_588 = arith.constant 0 : index
    %959 = vector.load %arg3[%c0_583, %c7_584, %c4_585, %c0_586, %c0_587, %c0_588] : memref<1x14x5x1x8x128xf32, #tpu.memory_space<vmem>>, vector<1x1x1x1x8x128xf32>
    %960 = vector.shape_cast %959 : vector<1x1x1x1x8x128xf32> to vector<8x128xf32>
    %961 = vector.shape_cast %0 : vector<8x128xf32> to vector<1x1x1x1x8x128xf32>
    tpu.vector_store %arg3[%c0_583, %c7_584, %c4_585, %c0_586, %c0_587, %c0_588], %961 {strides = array<i32>} : memref<1x14x5x1x8x128xf32, #tpu.memory_space<vmem>>, vector<1x1x1x1x8x128xf32>,
    %cst_589 = arith.constant 1.000000e+00 : f32
    %962 = vector.broadcast %cst_589 : f32 to vector<8x128xf32>
    %963 = arith.mulf %962, %932 : vector<8x128xf32>
    %964 = arith.addf %931, %963 : vector<8x128xf32>
    %cst_590 = arith.constant 2.000000e+00 : f32
    %965 = vector.broadcast %cst_590 : f32 to vector<8x128xf32>
    %966 = arith.mulf %965, %934 : vector<8x128xf32>
    %cst_591 = arith.constant 1.000000e+00 : f32
    %967 = vector.broadcast %cst_591 : f32 to vector<8x128xf32>
    %968 = arith.mulf %967, %935 : vector<8x128xf32>
    %969 = arith.addf %966, %968 : vector<8x128xf32>
    %cst_592 = arith.constant 1.000000e+00 : f32
    %970 = vector.broadcast %cst_592 : f32 to vector<8x128xf32>
    %971 = arith.mulf %970, %969 : vector<8x128xf32>
    %972 = arith.addf %933, %971 : vector<8x128xf32>
    %cst_593 = arith.constant 0.00999999977 : f32
    %973 = vector.broadcast %cst_593 : f32 to vector<8x128xf32>
    %974 = arith.addf %972, %973 : vector<8x128xf32>
    %cst_594 = arith.constant 1.000000e+00 : f32
    %975 = vector.broadcast %cst_594 : f32 to vector<8x128xf32>
    %976 = arith.mulf %975, %935 : vector<8x128xf32>
    %977 = arith.addf %934, %976 : vector<8x128xf32>
    %cst_595 = arith.constant 1.000000e-01 : f32
    %978 = vector.broadcast %cst_595 : f32 to vector<8x128xf32>
    %979 = arith.addf %935, %978 : vector<8x128xf32>
    %cst_596 = arith.constant 1.000000e+00 : f32
    %980 = vector.broadcast %cst_596 : f32 to vector<8x128xf32>
    %981 = arith.mulf %980, %937 : vector<8x128xf32>
    %982 = arith.addf %936, %981 : vector<8x128xf32>
    %cst_597 = arith.constant 2.000000e+00 : f32
    %983 = vector.broadcast %cst_597 : f32 to vector<8x128xf32>
    %984 = arith.mulf %983, %939 : vector<8x128xf32>
    %cst_598 = arith.constant 1.000000e+00 : f32
    %985 = vector.broadcast %cst_598 : f32 to vector<8x128xf32>
    %986 = arith.mulf %985, %940 : vector<8x128xf32>
    %987 = arith.addf %984, %986 : vector<8x128xf32>
    %cst_599 = arith.constant 1.000000e+00 : f32
    %988 = vector.broadcast %cst_599 : f32 to vector<8x128xf32>
    %989 = arith.mulf %988, %987 : vector<8x128xf32>
    %990 = arith.addf %938, %989 : vector<8x128xf32>
    %cst_600 = arith.constant 0.00999999977 : f32
    %991 = vector.broadcast %cst_600 : f32 to vector<8x128xf32>
    %992 = arith.addf %990, %991 : vector<8x128xf32>
    %cst_601 = arith.constant 1.000000e+00 : f32
    %993 = vector.broadcast %cst_601 : f32 to vector<8x128xf32>
    %994 = arith.mulf %993, %940 : vector<8x128xf32>
    %995 = arith.addf %939, %994 : vector<8x128xf32>
    %cst_602 = arith.constant 1.000000e-01 : f32
    %996 = vector.broadcast %cst_602 : f32 to vector<8x128xf32>
    %997 = arith.addf %940, %996 : vector<8x128xf32>
    %998 = arith.select %861, %964, %931 : vector<8x128xi1>, vector<8x128xf32>
    %999 = arith.select %861, %932, %932 : vector<8x128xi1>, vector<8x128xf32>
    %1000 = arith.select %861, %974, %933 : vector<8x128xi1>, vector<8x128xf32>
    %1001 = arith.select %861, %977, %934 : vector<8x128xi1>, vector<8x128xf32>
    %1002 = arith.select %861, %979, %935 : vector<8x128xi1>, vector<8x128xf32>
    %1003 = arith.select %861, %982, %936 : vector<8x128xi1>, vector<8x128xf32>
    %1004 = arith.select %861, %937, %937 : vector<8x128xi1>, vector<8x128xf32>
    %1005 = arith.select %861, %992, %938 : vector<8x128xi1>, vector<8x128xf32>
    %1006 = arith.select %861, %995, %939 : vector<8x128xi1>, vector<8x128xf32>
    %1007 = arith.select %861, %997, %940 : vector<8x128xi1>, vector<8x128xf32>
    %c0_603 = arith.constant 0 : index
    %c8 = arith.constant 8 : index
    %c0_604 = arith.constant 0 : index
    %c0_605 = arith.constant 0 : index
    %c0_606 = arith.constant 0 : index
    %c0_607 = arith.constant 0 : index
    %1008 = vector.load %arg3[%c0_603, %c8, %c0_604, %c0_605, %c0_606, %c0_607] : memref<1x14x5x1x8x128xf32, #tpu.memory_space<vmem>>, vector<1x1x1x1x8x128xf32>
    %1009 = vector.shape_cast %1008 : vector<1x1x1x1x8x128xf32> to vector<8x128xf32>
    %1010 = vector.shape_cast %998 : vector<8x128xf32> to vector<1x1x1x1x8x128xf32>
    tpu.vector_store %arg3[%c0_603, %c8, %c0_604, %c0_605, %c0_606, %c0_607], %1010 {strides = array<i32>} : memref<1x14x5x1x8x128xf32, #tpu.memory_space<vmem>>, vector<1x1x1x1x8x128xf32>,
    %c0_608 = arith.constant 0 : index
    %c8_609 = arith.constant 8 : index
    %c1_610 = arith.constant 1 : index
    %c0_611 = arith.constant 0 : index
    %c0_612 = arith.constant 0 : index
    %c0_613 = arith.constant 0 : index
    %1011 = vector.load %arg3[%c0_608, %c8_609, %c1_610, %c0_611, %c0_612, %c0_613] : memref<1x14x5x1x8x128xf32, #tpu.memory_space<vmem>>, vector<1x1x1x1x8x128xf32>
    %1012 = vector.shape_cast %1011 : vector<1x1x1x1x8x128xf32> to vector<8x128xf32>
    %1013 = vector.shape_cast %1003 : vector<8x128xf32> to vector<1x1x1x1x8x128xf32>
    tpu.vector_store %arg3[%c0_608, %c8_609, %c1_610, %c0_611, %c0_612, %c0_613], %1013 {strides = array<i32>} : memref<1x14x5x1x8x128xf32, #tpu.memory_space<vmem>>, vector<1x1x1x1x8x128xf32>,
    %cst_614 = arith.constant 0.000000e+00 : f32
    %1014 = vector.broadcast %cst_614 : f32 to vector<8x128xf32>
    %1015 = arith.maximumf %1000, %1014 : vector<8x128xf32>
    %1016 = math.sqrt %1015 : vector<8x128xf32>
    %c0_615 = arith.constant 0 : index
    %c8_616 = arith.constant 8 : index
    %c2_617 = arith.constant 2 : index
    %c0_618 = arith.constant 0 : index
    %c0_619 = arith.constant 0 : index
    %c0_620 = arith.constant 0 : index
    %1017 = vector.load %arg3[%c0_615, %c8_616, %c2_617, %c0_618, %c0_619, %c0_620] : memref<1x14x5x1x8x128xf32, #tpu.memory_space<vmem>>, vector<1x1x1x1x8x128xf32>
    %1018 = vector.shape_cast %1017 : vector<1x1x1x1x8x128xf32> to vector<8x128xf32>
    %1019 = vector.shape_cast %1016 : vector<8x128xf32> to vector<1x1x1x1x8x128xf32>
    tpu.vector_store %arg3[%c0_615, %c8_616, %c2_617, %c0_618, %c0_619, %c0_620], %1019 {strides = array<i32>} : memref<1x14x5x1x8x128xf32, #tpu.memory_space<vmem>>, vector<1x1x1x1x8x128xf32>,
    %cst_621 = arith.constant 0.000000e+00 : f32
    %1020 = vector.broadcast %cst_621 : f32 to vector<8x128xf32>
    %1021 = arith.maximumf %1005, %1020 : vector<8x128xf32>
    %1022 = math.sqrt %1021 : vector<8x128xf32>
    %c0_622 = arith.constant 0 : index
    %c8_623 = arith.constant 8 : index
    %c3_624 = arith.constant 3 : index
    %c0_625 = arith.constant 0 : index
    %c0_626 = arith.constant 0 : index
    %c0_627 = arith.constant 0 : index
    %1023 = vector.load %arg3[%c0_622, %c8_623, %c3_624, %c0_625, %c0_626, %c0_627] : memref<1x14x5x1x8x128xf32, #tpu.memory_space<vmem>>, vector<1x1x1x1x8x128xf32>
    %1024 = vector.shape_cast %1023 : vector<1x1x1x1x8x128xf32> to vector<8x128xf32>
    %1025 = vector.shape_cast %1022 : vector<8x128xf32> to vector<1x1x1x1x8x128xf32>
    tpu.vector_store %arg3[%c0_622, %c8_623, %c3_624, %c0_625, %c0_626, %c0_627], %1025 {strides = array<i32>} : memref<1x14x5x1x8x128xf32, #tpu.memory_space<vmem>>, vector<1x1x1x1x8x128xf32>,
    %c0_628 = arith.constant 0 : index
    %c8_629 = arith.constant 8 : index
    %c4_630 = arith.constant 4 : index
    %c0_631 = arith.constant 0 : index
    %c0_632 = arith.constant 0 : index
    %c0_633 = arith.constant 0 : index
    %1026 = vector.load %arg3[%c0_628, %c8_629, %c4_630, %c0_631, %c0_632, %c0_633] : memref<1x14x5x1x8x128xf32, #tpu.memory_space<vmem>>, vector<1x1x1x1x8x128xf32>
    %1027 = vector.shape_cast %1026 : vector<1x1x1x1x8x128xf32> to vector<8x128xf32>
    %1028 = vector.shape_cast %0 : vector<8x128xf32> to vector<1x1x1x1x8x128xf32>
    tpu.vector_store %arg3[%c0_628, %c8_629, %c4_630, %c0_631, %c0_632, %c0_633], %1028 {strides = array<i32>} : memref<1x14x5x1x8x128xf32, #tpu.memory_space<vmem>>, vector<1x1x1x1x8x128xf32>,
    %cst_634 = arith.constant 1.000000e+00 : f32
    %1029 = vector.broadcast %cst_634 : f32 to vector<8x128xf32>
    %1030 = arith.mulf %1029, %999 : vector<8x128xf32>
    %1031 = arith.addf %998, %1030 : vector<8x128xf32>
    %cst_635 = arith.constant 2.000000e+00 : f32
    %1032 = vector.broadcast %cst_635 : f32 to vector<8x128xf32>
    %1033 = arith.mulf %1032, %1001 : vector<8x128xf32>
    %cst_636 = arith.constant 1.000000e+00 : f32
    %1034 = vector.broadcast %cst_636 : f32 to vector<8x128xf32>
    %1035 = arith.mulf %1034, %1002 : vector<8x128xf32>
    %1036 = arith.addf %1033, %1035 : vector<8x128xf32>
    %cst_637 = arith.constant 1.000000e+00 : f32
    %1037 = vector.broadcast %cst_637 : f32 to vector<8x128xf32>
    %1038 = arith.mulf %1037, %1036 : vector<8x128xf32>
    %1039 = arith.addf %1000, %1038 : vector<8x128xf32>
    %cst_638 = arith.constant 0.00999999977 : f32
    %1040 = vector.broadcast %cst_638 : f32 to vector<8x128xf32>
    %1041 = arith.addf %1039, %1040 : vector<8x128xf32>
    %cst_639 = arith.constant 1.000000e+00 : f32
    %1042 = vector.broadcast %cst_639 : f32 to vector<8x128xf32>
    %1043 = arith.mulf %1042, %1002 : vector<8x128xf32>
    %1044 = arith.addf %1001, %1043 : vector<8x128xf32>
    %cst_640 = arith.constant 1.000000e-01 : f32
    %1045 = vector.broadcast %cst_640 : f32 to vector<8x128xf32>
    %1046 = arith.addf %1002, %1045 : vector<8x128xf32>
    %cst_641 = arith.constant 1.000000e+00 : f32
    %1047 = vector.broadcast %cst_641 : f32 to vector<8x128xf32>
    %1048 = arith.mulf %1047, %1004 : vector<8x128xf32>
    %1049 = arith.addf %1003, %1048 : vector<8x128xf32>
    %cst_642 = arith.constant 2.000000e+00 : f32
    %1050 = vector.broadcast %cst_642 : f32 to vector<8x128xf32>
    %1051 = arith.mulf %1050, %1006 : vector<8x128xf32>
    %cst_643 = arith.constant 1.000000e+00 : f32
    %1052 = vector.broadcast %cst_643 : f32 to vector<8x128xf32>
    %1053 = arith.mulf %1052, %1007 : vector<8x128xf32>
    %1054 = arith.addf %1051, %1053 : vector<8x128xf32>
    %cst_644 = arith.constant 1.000000e+00 : f32
    %1055 = vector.broadcast %cst_644 : f32 to vector<8x128xf32>
    %1056 = arith.mulf %1055, %1054 : vector<8x128xf32>
    %1057 = arith.addf %1005, %1056 : vector<8x128xf32>
    %cst_645 = arith.constant 0.00999999977 : f32
    %1058 = vector.broadcast %cst_645 : f32 to vector<8x128xf32>
    %1059 = arith.addf %1057, %1058 : vector<8x128xf32>
    %cst_646 = arith.constant 1.000000e+00 : f32
    %1060 = vector.broadcast %cst_646 : f32 to vector<8x128xf32>
    %1061 = arith.mulf %1060, %1007 : vector<8x128xf32>
    %1062 = arith.addf %1006, %1061 : vector<8x128xf32>
    %cst_647 = arith.constant 1.000000e-01 : f32
    %1063 = vector.broadcast %cst_647 : f32 to vector<8x128xf32>
    %1064 = arith.addf %1007, %1063 : vector<8x128xf32>
    %1065 = arith.select %861, %1031, %998 : vector<8x128xi1>, vector<8x128xf32>
    %1066 = arith.select %861, %999, %999 : vector<8x128xi1>, vector<8x128xf32>
    %1067 = arith.select %861, %1041, %1000 : vector<8x128xi1>, vector<8x128xf32>
    %1068 = arith.select %861, %1044, %1001 : vector<8x128xi1>, vector<8x128xf32>
    %1069 = arith.select %861, %1046, %1002 : vector<8x128xi1>, vector<8x128xf32>
    %1070 = arith.select %861, %1049, %1003 : vector<8x128xi1>, vector<8x128xf32>
    %1071 = arith.select %861, %1004, %1004 : vector<8x128xi1>, vector<8x128xf32>
    %1072 = arith.select %861, %1059, %1005 : vector<8x128xi1>, vector<8x128xf32>
    %1073 = arith.select %861, %1062, %1006 : vector<8x128xi1>, vector<8x128xf32>
    %1074 = arith.select %861, %1064, %1007 : vector<8x128xi1>, vector<8x128xf32>
    %c0_648 = arith.constant 0 : index
    %c9 = arith.constant 9 : index
    %c0_649 = arith.constant 0 : index
    %c0_650 = arith.constant 0 : index
    %c0_651 = arith.constant 0 : index
    %c0_652 = arith.constant 0 : index
    %1075 = vector.load %arg3[%c0_648, %c9, %c0_649, %c0_650, %c0_651, %c0_652] : memref<1x14x5x1x8x128xf32, #tpu.memory_space<vmem>>, vector<1x1x1x1x8x128xf32>
    %1076 = vector.shape_cast %1075 : vector<1x1x1x1x8x128xf32> to vector<8x128xf32>
    %1077 = vector.shape_cast %1065 : vector<8x128xf32> to vector<1x1x1x1x8x128xf32>
    tpu.vector_store %arg3[%c0_648, %c9, %c0_649, %c0_650, %c0_651, %c0_652], %1077 {strides = array<i32>} : memref<1x14x5x1x8x128xf32, #tpu.memory_space<vmem>>, vector<1x1x1x1x8x128xf32>,
    %c0_653 = arith.constant 0 : index
    %c9_654 = arith.constant 9 : index
    %c1_655 = arith.constant 1 : index
    %c0_656 = arith.constant 0 : index
    %c0_657 = arith.constant 0 : index
    %c0_658 = arith.constant 0 : index
    %1078 = vector.load %arg3[%c0_653, %c9_654, %c1_655, %c0_656, %c0_657, %c0_658] : memref<1x14x5x1x8x128xf32, #tpu.memory_space<vmem>>, vector<1x1x1x1x8x128xf32>
    %1079 = vector.shape_cast %1078 : vector<1x1x1x1x8x128xf32> to vector<8x128xf32>
    %1080 = vector.shape_cast %1070 : vector<8x128xf32> to vector<1x1x1x1x8x128xf32>
    tpu.vector_store %arg3[%c0_653, %c9_654, %c1_655, %c0_656, %c0_657, %c0_658], %1080 {strides = array<i32>} : memref<1x14x5x1x8x128xf32, #tpu.memory_space<vmem>>, vector<1x1x1x1x8x128xf32>,
    %cst_659 = arith.constant 0.000000e+00 : f32
    %1081 = vector.broadcast %cst_659 : f32 to vector<8x128xf32>
    %1082 = arith.maximumf %1067, %1081 : vector<8x128xf32>
    %1083 = math.sqrt %1082 : vector<8x128xf32>
    %c0_660 = arith.constant 0 : index
    %c9_661 = arith.constant 9 : index
    %c2_662 = arith.constant 2 : index
    %c0_663 = arith.constant 0 : index
    %c0_664 = arith.constant 0 : index
    %c0_665 = arith.constant 0 : index
    %1084 = vector.load %arg3[%c0_660, %c9_661, %c2_662, %c0_663, %c0_664, %c0_665] : memref<1x14x5x1x8x128xf32, #tpu.memory_space<vmem>>, vector<1x1x1x1x8x128xf32>
    %1085 = vector.shape_cast %1084 : vector<1x1x1x1x8x128xf32> to vector<8x128xf32>
    %1086 = vector.shape_cast %1083 : vector<8x128xf32> to vector<1x1x1x1x8x128xf32>
    tpu.vector_store %arg3[%c0_660, %c9_661, %c2_662, %c0_663, %c0_664, %c0_665], %1086 {strides = array<i32>} : memref<1x14x5x1x8x128xf32, #tpu.memory_space<vmem>>, vector<1x1x1x1x8x128xf32>,
    %cst_666 = arith.constant 0.000000e+00 : f32
    %1087 = vector.broadcast %cst_666 : f32 to vector<8x128xf32>
    %1088 = arith.maximumf %1072, %1087 : vector<8x128xf32>
    %1089 = math.sqrt %1088 : vector<8x128xf32>
    %c0_667 = arith.constant 0 : index
    %c9_668 = arith.constant 9 : index
    %c3_669 = arith.constant 3 : index
    %c0_670 = arith.constant 0 : index
    %c0_671 = arith.constant 0 : index
    %c0_672 = arith.constant 0 : index
    %1090 = vector.load %arg3[%c0_667, %c9_668, %c3_669, %c0_670, %c0_671, %c0_672] : memref<1x14x5x1x8x128xf32, #tpu.memory_space<vmem>>, vector<1x1x1x1x8x128xf32>
    %1091 = vector.shape_cast %1090 : vector<1x1x1x1x8x128xf32> to vector<8x128xf32>
    %1092 = vector.shape_cast %1089 : vector<8x128xf32> to vector<1x1x1x1x8x128xf32>
    tpu.vector_store %arg3[%c0_667, %c9_668, %c3_669, %c0_670, %c0_671, %c0_672], %1092 {strides = array<i32>} : memref<1x14x5x1x8x128xf32, #tpu.memory_space<vmem>>, vector<1x1x1x1x8x128xf32>,
    %c0_673 = arith.constant 0 : index
    %c9_674 = arith.constant 9 : index
    %c4_675 = arith.constant 4 : index
    %c0_676 = arith.constant 0 : index
    %c0_677 = arith.constant 0 : index
    %c0_678 = arith.constant 0 : index
    %1093 = vector.load %arg3[%c0_673, %c9_674, %c4_675, %c0_676, %c0_677, %c0_678] : memref<1x14x5x1x8x128xf32, #tpu.memory_space<vmem>>, vector<1x1x1x1x8x128xf32>
    %1094 = vector.shape_cast %1093 : vector<1x1x1x1x8x128xf32> to vector<8x128xf32>
    %1095 = vector.shape_cast %0 : vector<8x128xf32> to vector<1x1x1x1x8x128xf32>
    tpu.vector_store %arg3[%c0_673, %c9_674, %c4_675, %c0_676, %c0_677, %c0_678], %1095 {strides = array<i32>} : memref<1x14x5x1x8x128xf32, #tpu.memory_space<vmem>>, vector<1x1x1x1x8x128xf32>,
    %cst_679 = arith.constant 1.000000e+00 : f32
    %1096 = vector.broadcast %cst_679 : f32 to vector<8x128xf32>
    %1097 = arith.mulf %1096, %1066 : vector<8x128xf32>
    %1098 = arith.addf %1065, %1097 : vector<8x128xf32>
    %cst_680 = arith.constant 2.000000e+00 : f32
    %1099 = vector.broadcast %cst_680 : f32 to vector<8x128xf32>
    %1100 = arith.mulf %1099, %1068 : vector<8x128xf32>
    %cst_681 = arith.constant 1.000000e+00 : f32
    %1101 = vector.broadcast %cst_681 : f32 to vector<8x128xf32>
    %1102 = arith.mulf %1101, %1069 : vector<8x128xf32>
    %1103 = arith.addf %1100, %1102 : vector<8x128xf32>
    %cst_682 = arith.constant 1.000000e+00 : f32
    %1104 = vector.broadcast %cst_682 : f32 to vector<8x128xf32>
    %1105 = arith.mulf %1104, %1103 : vector<8x128xf32>
    %1106 = arith.addf %1067, %1105 : vector<8x128xf32>
    %cst_683 = arith.constant 0.00999999977 : f32
    %1107 = vector.broadcast %cst_683 : f32 to vector<8x128xf32>
    %1108 = arith.addf %1106, %1107 : vector<8x128xf32>
    %cst_684 = arith.constant 1.000000e+00 : f32
    %1109 = vector.broadcast %cst_684 : f32 to vector<8x128xf32>
    %1110 = arith.mulf %1109, %1069 : vector<8x128xf32>
    %1111 = arith.addf %1068, %1110 : vector<8x128xf32>
    %cst_685 = arith.constant 1.000000e-01 : f32
    %1112 = vector.broadcast %cst_685 : f32 to vector<8x128xf32>
    %1113 = arith.addf %1069, %1112 : vector<8x128xf32>
    %cst_686 = arith.constant 1.000000e+00 : f32
    %1114 = vector.broadcast %cst_686 : f32 to vector<8x128xf32>
    %1115 = arith.mulf %1114, %1071 : vector<8x128xf32>
    %1116 = arith.addf %1070, %1115 : vector<8x128xf32>
    %cst_687 = arith.constant 2.000000e+00 : f32
    %1117 = vector.broadcast %cst_687 : f32 to vector<8x128xf32>
    %1118 = arith.mulf %1117, %1073 : vector<8x128xf32>
    %cst_688 = arith.constant 1.000000e+00 : f32
    %1119 = vector.broadcast %cst_688 : f32 to vector<8x128xf32>
    %1120 = arith.mulf %1119, %1074 : vector<8x128xf32>
    %1121 = arith.addf %1118, %1120 : vector<8x128xf32>
    %cst_689 = arith.constant 1.000000e+00 : f32
    %1122 = vector.broadcast %cst_689 : f32 to vector<8x128xf32>
    %1123 = arith.mulf %1122, %1121 : vector<8x128xf32>
    %1124 = arith.addf %1072, %1123 : vector<8x128xf32>
    %cst_690 = arith.constant 0.00999999977 : f32
    %1125 = vector.broadcast %cst_690 : f32 to vector<8x128xf32>
    %1126 = arith.addf %1124, %1125 : vector<8x128xf32>
    %cst_691 = arith.constant 1.000000e+00 : f32
    %1127 = vector.broadcast %cst_691 : f32 to vector<8x128xf32>
    %1128 = arith.mulf %1127, %1074 : vector<8x128xf32>
    %1129 = arith.addf %1073, %1128 : vector<8x128xf32>
    %cst_692 = arith.constant 1.000000e-01 : f32
    %1130 = vector.broadcast %cst_692 : f32 to vector<8x128xf32>
    %1131 = arith.addf %1074, %1130 : vector<8x128xf32>
    %1132 = arith.select %861, %1098, %1065 : vector<8x128xi1>, vector<8x128xf32>
    %1133 = arith.select %861, %1066, %1066 : vector<8x128xi1>, vector<8x128xf32>
    %1134 = arith.select %861, %1108, %1067 : vector<8x128xi1>, vector<8x128xf32>
    %1135 = arith.select %861, %1111, %1068 : vector<8x128xi1>, vector<8x128xf32>
    %1136 = arith.select %861, %1113, %1069 : vector<8x128xi1>, vector<8x128xf32>
    %1137 = arith.select %861, %1116, %1070 : vector<8x128xi1>, vector<8x128xf32>
    %1138 = arith.select %861, %1071, %1071 : vector<8x128xi1>, vector<8x128xf32>
    %1139 = arith.select %861, %1126, %1072 : vector<8x128xi1>, vector<8x128xf32>
    %1140 = arith.select %861, %1129, %1073 : vector<8x128xi1>, vector<8x128xf32>
    %1141 = arith.select %861, %1131, %1074 : vector<8x128xi1>, vector<8x128xf32>
    %c0_693 = arith.constant 0 : index
    %c10 = arith.constant 10 : index
    %c0_694 = arith.constant 0 : index
    %c0_695 = arith.constant 0 : index
    %c0_696 = arith.constant 0 : index
    %c0_697 = arith.constant 0 : index
    %1142 = vector.load %arg3[%c0_693, %c10, %c0_694, %c0_695, %c0_696, %c0_697] : memref<1x14x5x1x8x128xf32, #tpu.memory_space<vmem>>, vector<1x1x1x1x8x128xf32>
    %1143 = vector.shape_cast %1142 : vector<1x1x1x1x8x128xf32> to vector<8x128xf32>
    %1144 = vector.shape_cast %1132 : vector<8x128xf32> to vector<1x1x1x1x8x128xf32>
    tpu.vector_store %arg3[%c0_693, %c10, %c0_694, %c0_695, %c0_696, %c0_697], %1144 {strides = array<i32>} : memref<1x14x5x1x8x128xf32, #tpu.memory_space<vmem>>, vector<1x1x1x1x8x128xf32>,
    %c0_698 = arith.constant 0 : index
    %c10_699 = arith.constant 10 : index
    %c1_700 = arith.constant 1 : index
    %c0_701 = arith.constant 0 : index
    %c0_702 = arith.constant 0 : index
    %c0_703 = arith.constant 0 : index
    %1145 = vector.load %arg3[%c0_698, %c10_699, %c1_700, %c0_701, %c0_702, %c0_703] : memref<1x14x5x1x8x128xf32, #tpu.memory_space<vmem>>, vector<1x1x1x1x8x128xf32>
    %1146 = vector.shape_cast %1145 : vector<1x1x1x1x8x128xf32> to vector<8x128xf32>
    %1147 = vector.shape_cast %1137 : vector<8x128xf32> to vector<1x1x1x1x8x128xf32>
    tpu.vector_store %arg3[%c0_698, %c10_699, %c1_700, %c0_701, %c0_702, %c0_703], %1147 {strides = array<i32>} : memref<1x14x5x1x8x128xf32, #tpu.memory_space<vmem>>, vector<1x1x1x1x8x128xf32>,
    %cst_704 = arith.constant 0.000000e+00 : f32
    %1148 = vector.broadcast %cst_704 : f32 to vector<8x128xf32>
    %1149 = arith.maximumf %1134, %1148 : vector<8x128xf32>
    %1150 = math.sqrt %1149 : vector<8x128xf32>
    %c0_705 = arith.constant 0 : index
    %c10_706 = arith.constant 10 : index
    %c2_707 = arith.constant 2 : index
    %c0_708 = arith.constant 0 : index
    %c0_709 = arith.constant 0 : index
    %c0_710 = arith.constant 0 : index
    %1151 = vector.load %arg3[%c0_705, %c10_706, %c2_707, %c0_708, %c0_709, %c0_710] : memref<1x14x5x1x8x128xf32, #tpu.memory_space<vmem>>, vector<1x1x1x1x8x128xf32>
    %1152 = vector.shape_cast %1151 : vector<1x1x1x1x8x128xf32> to vector<8x128xf32>
    %1153 = vector.shape_cast %1150 : vector<8x128xf32> to vector<1x1x1x1x8x128xf32>
    tpu.vector_store %arg3[%c0_705, %c10_706, %c2_707, %c0_708, %c0_709, %c0_710], %1153 {strides = array<i32>} : memref<1x14x5x1x8x128xf32, #tpu.memory_space<vmem>>, vector<1x1x1x1x8x128xf32>,
    %cst_711 = arith.constant 0.000000e+00 : f32
    %1154 = vector.broadcast %cst_711 : f32 to vector<8x128xf32>
    %1155 = arith.maximumf %1139, %1154 : vector<8x128xf32>
    %1156 = math.sqrt %1155 : vector<8x128xf32>
    %c0_712 = arith.constant 0 : index
    %c10_713 = arith.constant 10 : index
    %c3_714 = arith.constant 3 : index
    %c0_715 = arith.constant 0 : index
    %c0_716 = arith.constant 0 : index
    %c0_717 = arith.constant 0 : index
    %1157 = vector.load %arg3[%c0_712, %c10_713, %c3_714, %c0_715, %c0_716, %c0_717] : memref<1x14x5x1x8x128xf32, #tpu.memory_space<vmem>>, vector<1x1x1x1x8x128xf32>
    %1158 = vector.shape_cast %1157 : vector<1x1x1x1x8x128xf32> to vector<8x128xf32>
    %1159 = vector.shape_cast %1156 : vector<8x128xf32> to vector<1x1x1x1x8x128xf32>
    tpu.vector_store %arg3[%c0_712, %c10_713, %c3_714, %c0_715, %c0_716, %c0_717], %1159 {strides = array<i32>} : memref<1x14x5x1x8x128xf32, #tpu.memory_space<vmem>>, vector<1x1x1x1x8x128xf32>,
    %c0_718 = arith.constant 0 : index
    %c10_719 = arith.constant 10 : index
    %c4_720 = arith.constant 4 : index
    %c0_721 = arith.constant 0 : index
    %c0_722 = arith.constant 0 : index
    %c0_723 = arith.constant 0 : index
    %1160 = vector.load %arg3[%c0_718, %c10_719, %c4_720, %c0_721, %c0_722, %c0_723] : memref<1x14x5x1x8x128xf32, #tpu.memory_space<vmem>>, vector<1x1x1x1x8x128xf32>
    %1161 = vector.shape_cast %1160 : vector<1x1x1x1x8x128xf32> to vector<8x128xf32>
    %1162 = vector.shape_cast %0 : vector<8x128xf32> to vector<1x1x1x1x8x128xf32>
    tpu.vector_store %arg3[%c0_718, %c10_719, %c4_720, %c0_721, %c0_722, %c0_723], %1162 {strides = array<i32>} : memref<1x14x5x1x8x128xf32, #tpu.memory_space<vmem>>, vector<1x1x1x1x8x128xf32>,
    %cst_724 = arith.constant 1.000000e+00 : f32
    %1163 = vector.broadcast %cst_724 : f32 to vector<8x128xf32>
    %1164 = arith.mulf %1163, %1133 : vector<8x128xf32>
    %1165 = arith.addf %1132, %1164 : vector<8x128xf32>
    %cst_725 = arith.constant 2.000000e+00 : f32
    %1166 = vector.broadcast %cst_725 : f32 to vector<8x128xf32>
    %1167 = arith.mulf %1166, %1135 : vector<8x128xf32>
    %cst_726 = arith.constant 1.000000e+00 : f32
    %1168 = vector.broadcast %cst_726 : f32 to vector<8x128xf32>
    %1169 = arith.mulf %1168, %1136 : vector<8x128xf32>
    %1170 = arith.addf %1167, %1169 : vector<8x128xf32>
    %cst_727 = arith.constant 1.000000e+00 : f32
    %1171 = vector.broadcast %cst_727 : f32 to vector<8x128xf32>
    %1172 = arith.mulf %1171, %1170 : vector<8x128xf32>
    %1173 = arith.addf %1134, %1172 : vector<8x128xf32>
    %cst_728 = arith.constant 0.00999999977 : f32
    %1174 = vector.broadcast %cst_728 : f32 to vector<8x128xf32>
    %1175 = arith.addf %1173, %1174 : vector<8x128xf32>
    %cst_729 = arith.constant 1.000000e+00 : f32
    %1176 = vector.broadcast %cst_729 : f32 to vector<8x128xf32>
    %1177 = arith.mulf %1176, %1136 : vector<8x128xf32>
    %1178 = arith.addf %1135, %1177 : vector<8x128xf32>
    %cst_730 = arith.constant 1.000000e-01 : f32
    %1179 = vector.broadcast %cst_730 : f32 to vector<8x128xf32>
    %1180 = arith.addf %1136, %1179 : vector<8x128xf32>
    %cst_731 = arith.constant 1.000000e+00 : f32
    %1181 = vector.broadcast %cst_731 : f32 to vector<8x128xf32>
    %1182 = arith.mulf %1181, %1138 : vector<8x128xf32>
    %1183 = arith.addf %1137, %1182 : vector<8x128xf32>
    %cst_732 = arith.constant 2.000000e+00 : f32
    %1184 = vector.broadcast %cst_732 : f32 to vector<8x128xf32>
    %1185 = arith.mulf %1184, %1140 : vector<8x128xf32>
    %cst_733 = arith.constant 1.000000e+00 : f32
    %1186 = vector.broadcast %cst_733 : f32 to vector<8x128xf32>
    %1187 = arith.mulf %1186, %1141 : vector<8x128xf32>
    %1188 = arith.addf %1185, %1187 : vector<8x128xf32>
    %cst_734 = arith.constant 1.000000e+00 : f32
    %1189 = vector.broadcast %cst_734 : f32 to vector<8x128xf32>
    %1190 = arith.mulf %1189, %1188 : vector<8x128xf32>
    %1191 = arith.addf %1139, %1190 : vector<8x128xf32>
    %cst_735 = arith.constant 0.00999999977 : f32
    %1192 = vector.broadcast %cst_735 : f32 to vector<8x128xf32>
    %1193 = arith.addf %1191, %1192 : vector<8x128xf32>
    %cst_736 = arith.constant 1.000000e+00 : f32
    %1194 = vector.broadcast %cst_736 : f32 to vector<8x128xf32>
    %1195 = arith.mulf %1194, %1141 : vector<8x128xf32>
    %1196 = arith.addf %1140, %1195 : vector<8x128xf32>
    %cst_737 = arith.constant 1.000000e-01 : f32
    %1197 = vector.broadcast %cst_737 : f32 to vector<8x128xf32>
    %1198 = arith.addf %1141, %1197 : vector<8x128xf32>
    %1199 = arith.select %861, %1165, %1132 : vector<8x128xi1>, vector<8x128xf32>
    %1200 = arith.select %861, %1133, %1133 : vector<8x128xi1>, vector<8x128xf32>
    %1201 = arith.select %861, %1175, %1134 : vector<8x128xi1>, vector<8x128xf32>
    %1202 = arith.select %861, %1178, %1135 : vector<8x128xi1>, vector<8x128xf32>
    %1203 = arith.select %861, %1180, %1136 : vector<8x128xi1>, vector<8x128xf32>
    %1204 = arith.select %861, %1183, %1137 : vector<8x128xi1>, vector<8x128xf32>
    %1205 = arith.select %861, %1138, %1138 : vector<8x128xi1>, vector<8x128xf32>
    %1206 = arith.select %861, %1193, %1139 : vector<8x128xi1>, vector<8x128xf32>
    %1207 = arith.select %861, %1196, %1140 : vector<8x128xi1>, vector<8x128xf32>
    %1208 = arith.select %861, %1198, %1141 : vector<8x128xi1>, vector<8x128xf32>
    %c0_738 = arith.constant 0 : index
    %c11 = arith.constant 11 : index
    %c0_739 = arith.constant 0 : index
    %c0_740 = arith.constant 0 : index
    %c0_741 = arith.constant 0 : index
    %c0_742 = arith.constant 0 : index
    %1209 = vector.load %arg3[%c0_738, %c11, %c0_739, %c0_740, %c0_741, %c0_742] : memref<1x14x5x1x8x128xf32, #tpu.memory_space<vmem>>, vector<1x1x1x1x8x128xf32>
    %1210 = vector.shape_cast %1209 : vector<1x1x1x1x8x128xf32> to vector<8x128xf32>
    %1211 = vector.shape_cast %1199 : vector<8x128xf32> to vector<1x1x1x1x8x128xf32>
    tpu.vector_store %arg3[%c0_738, %c11, %c0_739, %c0_740, %c0_741, %c0_742], %1211 {strides = array<i32>} : memref<1x14x5x1x8x128xf32, #tpu.memory_space<vmem>>, vector<1x1x1x1x8x128xf32>,
    %c0_743 = arith.constant 0 : index
    %c11_744 = arith.constant 11 : index
    %c1_745 = arith.constant 1 : index
    %c0_746 = arith.constant 0 : index
    %c0_747 = arith.constant 0 : index
    %c0_748 = arith.constant 0 : index
    %1212 = vector.load %arg3[%c0_743, %c11_744, %c1_745, %c0_746, %c0_747, %c0_748] : memref<1x14x5x1x8x128xf32, #tpu.memory_space<vmem>>, vector<1x1x1x1x8x128xf32>
    %1213 = vector.shape_cast %1212 : vector<1x1x1x1x8x128xf32> to vector<8x128xf32>
    %1214 = vector.shape_cast %1204 : vector<8x128xf32> to vector<1x1x1x1x8x128xf32>
    tpu.vector_store %arg3[%c0_743, %c11_744, %c1_745, %c0_746, %c0_747, %c0_748], %1214 {strides = array<i32>} : memref<1x14x5x1x8x128xf32, #tpu.memory_space<vmem>>, vector<1x1x1x1x8x128xf32>,
    %cst_749 = arith.constant 0.000000e+00 : f32
    %1215 = vector.broadcast %cst_749 : f32 to vector<8x128xf32>
    %1216 = arith.maximumf %1201, %1215 : vector<8x128xf32>
    %1217 = math.sqrt %1216 : vector<8x128xf32>
    %c0_750 = arith.constant 0 : index
    %c11_751 = arith.constant 11 : index
    %c2_752 = arith.constant 2 : index
    %c0_753 = arith.constant 0 : index
    %c0_754 = arith.constant 0 : index
    %c0_755 = arith.constant 0 : index
    %1218 = vector.load %arg3[%c0_750, %c11_751, %c2_752, %c0_753, %c0_754, %c0_755] : memref<1x14x5x1x8x128xf32, #tpu.memory_space<vmem>>, vector<1x1x1x1x8x128xf32>
    %1219 = vector.shape_cast %1218 : vector<1x1x1x1x8x128xf32> to vector<8x128xf32>
    %1220 = vector.shape_cast %1217 : vector<8x128xf32> to vector<1x1x1x1x8x128xf32>
    tpu.vector_store %arg3[%c0_750, %c11_751, %c2_752, %c0_753, %c0_754, %c0_755], %1220 {strides = array<i32>} : memref<1x14x5x1x8x128xf32, #tpu.memory_space<vmem>>, vector<1x1x1x1x8x128xf32>,
    %cst_756 = arith.constant 0.000000e+00 : f32
    %1221 = vector.broadcast %cst_756 : f32 to vector<8x128xf32>
    %1222 = arith.maximumf %1206, %1221 : vector<8x128xf32>
    %1223 = math.sqrt %1222 : vector<8x128xf32>
    %c0_757 = arith.constant 0 : index
    %c11_758 = arith.constant 11 : index
    %c3_759 = arith.constant 3 : index
    %c0_760 = arith.constant 0 : index
    %c0_761 = arith.constant 0 : index
    %c0_762 = arith.constant 0 : index
    %1224 = vector.load %arg3[%c0_757, %c11_758, %c3_759, %c0_760, %c0_761, %c0_762] : memref<1x14x5x1x8x128xf32, #tpu.memory_space<vmem>>, vector<1x1x1x1x8x128xf32>
    %1225 = vector.shape_cast %1224 : vector<1x1x1x1x8x128xf32> to vector<8x128xf32>
    %1226 = vector.shape_cast %1223 : vector<8x128xf32> to vector<1x1x1x1x8x128xf32>
    tpu.vector_store %arg3[%c0_757, %c11_758, %c3_759, %c0_760, %c0_761, %c0_762], %1226 {strides = array<i32>} : memref<1x14x5x1x8x128xf32, #tpu.memory_space<vmem>>, vector<1x1x1x1x8x128xf32>,
    %c0_763 = arith.constant 0 : index
    %c11_764 = arith.constant 11 : index
    %c4_765 = arith.constant 4 : index
    %c0_766 = arith.constant 0 : index
    %c0_767 = arith.constant 0 : index
    %c0_768 = arith.constant 0 : index
    %1227 = vector.load %arg3[%c0_763, %c11_764, %c4_765, %c0_766, %c0_767, %c0_768] : memref<1x14x5x1x8x128xf32, #tpu.memory_space<vmem>>, vector<1x1x1x1x8x128xf32>
    %1228 = vector.shape_cast %1227 : vector<1x1x1x1x8x128xf32> to vector<8x128xf32>
    %1229 = vector.shape_cast %0 : vector<8x128xf32> to vector<1x1x1x1x8x128xf32>
    tpu.vector_store %arg3[%c0_763, %c11_764, %c4_765, %c0_766, %c0_767, %c0_768], %1229 {strides = array<i32>} : memref<1x14x5x1x8x128xf32, #tpu.memory_space<vmem>>, vector<1x1x1x1x8x128xf32>,
    %cst_769 = arith.constant 1.000000e+00 : f32
    %1230 = vector.broadcast %cst_769 : f32 to vector<8x128xf32>
    %1231 = arith.mulf %1230, %1200 : vector<8x128xf32>
    %1232 = arith.addf %1199, %1231 : vector<8x128xf32>
    %cst_770 = arith.constant 2.000000e+00 : f32
    %1233 = vector.broadcast %cst_770 : f32 to vector<8x128xf32>
    %1234 = arith.mulf %1233, %1202 : vector<8x128xf32>
    %cst_771 = arith.constant 1.000000e+00 : f32
    %1235 = vector.broadcast %cst_771 : f32 to vector<8x128xf32>
    %1236 = arith.mulf %1235, %1203 : vector<8x128xf32>
    %1237 = arith.addf %1234, %1236 : vector<8x128xf32>
    %cst_772 = arith.constant 1.000000e+00 : f32
    %1238 = vector.broadcast %cst_772 : f32 to vector<8x128xf32>
    %1239 = arith.mulf %1238, %1237 : vector<8x128xf32>
    %1240 = arith.addf %1201, %1239 : vector<8x128xf32>
    %cst_773 = arith.constant 0.00999999977 : f32
    %1241 = vector.broadcast %cst_773 : f32 to vector<8x128xf32>
    %1242 = arith.addf %1240, %1241 : vector<8x128xf32>
    %cst_774 = arith.constant 1.000000e+00 : f32
    %1243 = vector.broadcast %cst_774 : f32 to vector<8x128xf32>
    %1244 = arith.mulf %1243, %1203 : vector<8x128xf32>
    %1245 = arith.addf %1202, %1244 : vector<8x128xf32>
    %cst_775 = arith.constant 1.000000e-01 : f32
    %1246 = vector.broadcast %cst_775 : f32 to vector<8x128xf32>
    %1247 = arith.addf %1203, %1246 : vector<8x128xf32>
    %cst_776 = arith.constant 1.000000e+00 : f32
    %1248 = vector.broadcast %cst_776 : f32 to vector<8x128xf32>
    %1249 = arith.mulf %1248, %1205 : vector<8x128xf32>
    %1250 = arith.addf %1204, %1249 : vector<8x128xf32>
    %cst_777 = arith.constant 2.000000e+00 : f32
    %1251 = vector.broadcast %cst_777 : f32 to vector<8x128xf32>
    %1252 = arith.mulf %1251, %1207 : vector<8x128xf32>
    %cst_778 = arith.constant 1.000000e+00 : f32
    %1253 = vector.broadcast %cst_778 : f32 to vector<8x128xf32>
    %1254 = arith.mulf %1253, %1208 : vector<8x128xf32>
    %1255 = arith.addf %1252, %1254 : vector<8x128xf32>
    %cst_779 = arith.constant 1.000000e+00 : f32
    %1256 = vector.broadcast %cst_779 : f32 to vector<8x128xf32>
    %1257 = arith.mulf %1256, %1255 : vector<8x128xf32>
    %1258 = arith.addf %1206, %1257 : vector<8x128xf32>
    %cst_780 = arith.constant 0.00999999977 : f32
    %1259 = vector.broadcast %cst_780 : f32 to vector<8x128xf32>
    %1260 = arith.addf %1258, %1259 : vector<8x128xf32>
    %cst_781 = arith.constant 1.000000e+00 : f32
    %1261 = vector.broadcast %cst_781 : f32 to vector<8x128xf32>
    %1262 = arith.mulf %1261, %1208 : vector<8x128xf32>
    %1263 = arith.addf %1207, %1262 : vector<8x128xf32>
    %cst_782 = arith.constant 1.000000e-01 : f32
    %1264 = vector.broadcast %cst_782 : f32 to vector<8x128xf32>
    %1265 = arith.addf %1208, %1264 : vector<8x128xf32>
    %1266 = arith.select %861, %1232, %1199 : vector<8x128xi1>, vector<8x128xf32>
    %1267 = arith.select %861, %1200, %1200 : vector<8x128xi1>, vector<8x128xf32>
    %1268 = arith.select %861, %1242, %1201 : vector<8x128xi1>, vector<8x128xf32>
    %1269 = arith.select %861, %1245, %1202 : vector<8x128xi1>, vector<8x128xf32>
    %1270 = arith.select %861, %1247, %1203 : vector<8x128xi1>, vector<8x128xf32>
    %1271 = arith.select %861, %1250, %1204 : vector<8x128xi1>, vector<8x128xf32>
    %1272 = arith.select %861, %1205, %1205 : vector<8x128xi1>, vector<8x128xf32>
    %1273 = arith.select %861, %1260, %1206 : vector<8x128xi1>, vector<8x128xf32>
    %1274 = arith.select %861, %1263, %1207 : vector<8x128xi1>, vector<8x128xf32>
    %1275 = arith.select %861, %1265, %1208 : vector<8x128xi1>, vector<8x128xf32>
    %c0_783 = arith.constant 0 : index
    %c12 = arith.constant 12 : index
    %c0_784 = arith.constant 0 : index
    %c0_785 = arith.constant 0 : index
    %c0_786 = arith.constant 0 : index
    %c0_787 = arith.constant 0 : index
    %1276 = vector.load %arg3[%c0_783, %c12, %c0_784, %c0_785, %c0_786, %c0_787] : memref<1x14x5x1x8x128xf32, #tpu.memory_space<vmem>>, vector<1x1x1x1x8x128xf32>
    %1277 = vector.shape_cast %1276 : vector<1x1x1x1x8x128xf32> to vector<8x128xf32>
    %1278 = vector.shape_cast %1266 : vector<8x128xf32> to vector<1x1x1x1x8x128xf32>
    tpu.vector_store %arg3[%c0_783, %c12, %c0_784, %c0_785, %c0_786, %c0_787], %1278 {strides = array<i32>} : memref<1x14x5x1x8x128xf32, #tpu.memory_space<vmem>>, vector<1x1x1x1x8x128xf32>,
    %c0_788 = arith.constant 0 : index
    %c12_789 = arith.constant 12 : index
    %c1_790 = arith.constant 1 : index
    %c0_791 = arith.constant 0 : index
    %c0_792 = arith.constant 0 : index
    %c0_793 = arith.constant 0 : index
    %1279 = vector.load %arg3[%c0_788, %c12_789, %c1_790, %c0_791, %c0_792, %c0_793] : memref<1x14x5x1x8x128xf32, #tpu.memory_space<vmem>>, vector<1x1x1x1x8x128xf32>
    %1280 = vector.shape_cast %1279 : vector<1x1x1x1x8x128xf32> to vector<8x128xf32>
    %1281 = vector.shape_cast %1271 : vector<8x128xf32> to vector<1x1x1x1x8x128xf32>
    tpu.vector_store %arg3[%c0_788, %c12_789, %c1_790, %c0_791, %c0_792, %c0_793], %1281 {strides = array<i32>} : memref<1x14x5x1x8x128xf32, #tpu.memory_space<vmem>>, vector<1x1x1x1x8x128xf32>,
    %cst_794 = arith.constant 0.000000e+00 : f32
    %1282 = vector.broadcast %cst_794 : f32 to vector<8x128xf32>
    %1283 = arith.maximumf %1268, %1282 : vector<8x128xf32>
    %1284 = math.sqrt %1283 : vector<8x128xf32>
    %c0_795 = arith.constant 0 : index
    %c12_796 = arith.constant 12 : index
    %c2_797 = arith.constant 2 : index
    %c0_798 = arith.constant 0 : index
    %c0_799 = arith.constant 0 : index
    %c0_800 = arith.constant 0 : index
    %1285 = vector.load %arg3[%c0_795, %c12_796, %c2_797, %c0_798, %c0_799, %c0_800] : memref<1x14x5x1x8x128xf32, #tpu.memory_space<vmem>>, vector<1x1x1x1x8x128xf32>
    %1286 = vector.shape_cast %1285 : vector<1x1x1x1x8x128xf32> to vector<8x128xf32>
    %1287 = vector.shape_cast %1284 : vector<8x128xf32> to vector<1x1x1x1x8x128xf32>
    tpu.vector_store %arg3[%c0_795, %c12_796, %c2_797, %c0_798, %c0_799, %c0_800], %1287 {strides = array<i32>} : memref<1x14x5x1x8x128xf32, #tpu.memory_space<vmem>>, vector<1x1x1x1x8x128xf32>,
    %cst_801 = arith.constant 0.000000e+00 : f32
    %1288 = vector.broadcast %cst_801 : f32 to vector<8x128xf32>
    %1289 = arith.maximumf %1273, %1288 : vector<8x128xf32>
    %1290 = math.sqrt %1289 : vector<8x128xf32>
    %c0_802 = arith.constant 0 : index
    %c12_803 = arith.constant 12 : index
    %c3_804 = arith.constant 3 : index
    %c0_805 = arith.constant 0 : index
    %c0_806 = arith.constant 0 : index
    %c0_807 = arith.constant 0 : index
    %1291 = vector.load %arg3[%c0_802, %c12_803, %c3_804, %c0_805, %c0_806, %c0_807] : memref<1x14x5x1x8x128xf32, #tpu.memory_space<vmem>>, vector<1x1x1x1x8x128xf32>
    %1292 = vector.shape_cast %1291 : vector<1x1x1x1x8x128xf32> to vector<8x128xf32>
    %1293 = vector.shape_cast %1290 : vector<8x128xf32> to vector<1x1x1x1x8x128xf32>
    tpu.vector_store %arg3[%c0_802, %c12_803, %c3_804, %c0_805, %c0_806, %c0_807], %1293 {strides = array<i32>} : memref<1x14x5x1x8x128xf32, #tpu.memory_space<vmem>>, vector<1x1x1x1x8x128xf32>,
    %c0_808 = arith.constant 0 : index
    %c12_809 = arith.constant 12 : index
    %c4_810 = arith.constant 4 : index
    %c0_811 = arith.constant 0 : index
    %c0_812 = arith.constant 0 : index
    %c0_813 = arith.constant 0 : index
    %1294 = vector.load %arg3[%c0_808, %c12_809, %c4_810, %c0_811, %c0_812, %c0_813] : memref<1x14x5x1x8x128xf32, #tpu.memory_space<vmem>>, vector<1x1x1x1x8x128xf32>
    %1295 = vector.shape_cast %1294 : vector<1x1x1x1x8x128xf32> to vector<8x128xf32>
    %1296 = vector.shape_cast %0 : vector<8x128xf32> to vector<1x1x1x1x8x128xf32>
    tpu.vector_store %arg3[%c0_808, %c12_809, %c4_810, %c0_811, %c0_812, %c0_813], %1296 {strides = array<i32>} : memref<1x14x5x1x8x128xf32, #tpu.memory_space<vmem>>, vector<1x1x1x1x8x128xf32>,
    %cst_814 = arith.constant 1.000000e+00 : f32
    %1297 = vector.broadcast %cst_814 : f32 to vector<8x128xf32>
    %1298 = arith.mulf %1297, %1267 : vector<8x128xf32>
    %1299 = arith.addf %1266, %1298 : vector<8x128xf32>
    %cst_815 = arith.constant 2.000000e+00 : f32
    %1300 = vector.broadcast %cst_815 : f32 to vector<8x128xf32>
    %1301 = arith.mulf %1300, %1269 : vector<8x128xf32>
    %cst_816 = arith.constant 1.000000e+00 : f32
    %1302 = vector.broadcast %cst_816 : f32 to vector<8x128xf32>
    %1303 = arith.mulf %1302, %1270 : vector<8x128xf32>
    %1304 = arith.addf %1301, %1303 : vector<8x128xf32>
    %cst_817 = arith.constant 1.000000e+00 : f32
    %1305 = vector.broadcast %cst_817 : f32 to vector<8x128xf32>
    %1306 = arith.mulf %1305, %1304 : vector<8x128xf32>
    %1307 = arith.addf %1268, %1306 : vector<8x128xf32>
    %cst_818 = arith.constant 0.00999999977 : f32
    %1308 = vector.broadcast %cst_818 : f32 to vector<8x128xf32>
    %1309 = arith.addf %1307, %1308 : vector<8x128xf32>
    %cst_819 = arith.constant 1.000000e+00 : f32
    %1310 = vector.broadcast %cst_819 : f32 to vector<8x128xf32>
    %1311 = arith.mulf %1310, %1272 : vector<8x128xf32>
    %1312 = arith.addf %1271, %1311 : vector<8x128xf32>
    %cst_820 = arith.constant 2.000000e+00 : f32
    %1313 = vector.broadcast %cst_820 : f32 to vector<8x128xf32>
    %1314 = arith.mulf %1313, %1274 : vector<8x128xf32>
    %cst_821 = arith.constant 1.000000e+00 : f32
    %1315 = vector.broadcast %cst_821 : f32 to vector<8x128xf32>
    %1316 = arith.mulf %1315, %1275 : vector<8x128xf32>
    %1317 = arith.addf %1314, %1316 : vector<8x128xf32>
    %cst_822 = arith.constant 1.000000e+00 : f32
    %1318 = vector.broadcast %cst_822 : f32 to vector<8x128xf32>
    %1319 = arith.mulf %1318, %1317 : vector<8x128xf32>
    %1320 = arith.addf %1273, %1319 : vector<8x128xf32>
    %cst_823 = arith.constant 0.00999999977 : f32
    %1321 = vector.broadcast %cst_823 : f32 to vector<8x128xf32>
    %1322 = arith.addf %1320, %1321 : vector<8x128xf32>
    %1323 = arith.select %861, %1299, %1266 : vector<8x128xi1>, vector<8x128xf32>
    %1324 = arith.select %861, %1309, %1268 : vector<8x128xi1>, vector<8x128xf32>
    %1325 = arith.select %861, %1312, %1271 : vector<8x128xi1>, vector<8x128xf32>
    %1326 = arith.select %861, %1322, %1273 : vector<8x128xi1>, vector<8x128xf32>
    %c0_824 = arith.constant 0 : index
    %c13 = arith.constant 13 : index
    %c0_825 = arith.constant 0 : index
    %c0_826 = arith.constant 0 : index
    %c0_827 = arith.constant 0 : index
    %c0_828 = arith.constant 0 : index
    %1327 = vector.load %arg3[%c0_824, %c13, %c0_825, %c0_826, %c0_827, %c0_828] : memref<1x14x5x1x8x128xf32, #tpu.memory_space<vmem>>, vector<1x1x1x1x8x128xf32>
    %1328 = vector.shape_cast %1327 : vector<1x1x1x1x8x128xf32> to vector<8x128xf32>
    %1329 = vector.shape_cast %1323 : vector<8x128xf32> to vector<1x1x1x1x8x128xf32>
    tpu.vector_store %arg3[%c0_824, %c13, %c0_825, %c0_826, %c0_827, %c0_828], %1329 {strides = array<i32>} : memref<1x14x5x1x8x128xf32, #tpu.memory_space<vmem>>, vector<1x1x1x1x8x128xf32>,
    %c0_829 = arith.constant 0 : index
    %c13_830 = arith.constant 13 : index
    %c1_831 = arith.constant 1 : index
    %c0_832 = arith.constant 0 : index
    %c0_833 = arith.constant 0 : index
    %c0_834 = arith.constant 0 : index
    %1330 = vector.load %arg3[%c0_829, %c13_830, %c1_831, %c0_832, %c0_833, %c0_834] : memref<1x14x5x1x8x128xf32, #tpu.memory_space<vmem>>, vector<1x1x1x1x8x128xf32>
    %1331 = vector.shape_cast %1330 : vector<1x1x1x1x8x128xf32> to vector<8x128xf32>
    %1332 = vector.shape_cast %1325 : vector<8x128xf32> to vector<1x1x1x1x8x128xf32>
    tpu.vector_store %arg3[%c0_829, %c13_830, %c1_831, %c0_832, %c0_833, %c0_834], %1332 {strides = array<i32>} : memref<1x14x5x1x8x128xf32, #tpu.memory_space<vmem>>, vector<1x1x1x1x8x128xf32>,
    %cst_835 = arith.constant 0.000000e+00 : f32
    %1333 = vector.broadcast %cst_835 : f32 to vector<8x128xf32>
    %1334 = arith.maximumf %1324, %1333 : vector<8x128xf32>
    %1335 = math.sqrt %1334 : vector<8x128xf32>
    %c0_836 = arith.constant 0 : index
    %c13_837 = arith.constant 13 : index
    %c2_838 = arith.constant 2 : index
    %c0_839 = arith.constant 0 : index
    %c0_840 = arith.constant 0 : index
    %c0_841 = arith.constant 0 : index
    %1336 = vector.load %arg3[%c0_836, %c13_837, %c2_838, %c0_839, %c0_840, %c0_841] : memref<1x14x5x1x8x128xf32, #tpu.memory_space<vmem>>, vector<1x1x1x1x8x128xf32>
    %1337 = vector.shape_cast %1336 : vector<1x1x1x1x8x128xf32> to vector<8x128xf32>
    %1338 = vector.shape_cast %1335 : vector<8x128xf32> to vector<1x1x1x1x8x128xf32>
    tpu.vector_store %arg3[%c0_836, %c13_837, %c2_838, %c0_839, %c0_840, %c0_841], %1338 {strides = array<i32>} : memref<1x14x5x1x8x128xf32, #tpu.memory_space<vmem>>, vector<1x1x1x1x8x128xf32>,
    %cst_842 = arith.constant 0.000000e+00 : f32
    %1339 = vector.broadcast %cst_842 : f32 to vector<8x128xf32>
    %1340 = arith.maximumf %1326, %1339 : vector<8x128xf32>
    %1341 = math.sqrt %1340 : vector<8x128xf32>
    %c0_843 = arith.constant 0 : index
    %c13_844 = arith.constant 13 : index
    %c3_845 = arith.constant 3 : index
    %c0_846 = arith.constant 0 : index
    %c0_847 = arith.constant 0 : index
    %c0_848 = arith.constant 0 : index
    %1342 = vector.load %arg3[%c0_843, %c13_844, %c3_845, %c0_846, %c0_847, %c0_848] : memref<1x14x5x1x8x128xf32, #tpu.memory_space<vmem>>, vector<1x1x1x1x8x128xf32>
    %1343 = vector.shape_cast %1342 : vector<1x1x1x1x8x128xf32> to vector<8x128xf32>
    %1344 = vector.shape_cast %1341 : vector<8x128xf32> to vector<1x1x1x1x8x128xf32>
    tpu.vector_store %arg3[%c0_843, %c13_844, %c3_845, %c0_846, %c0_847, %c0_848], %1344 {strides = array<i32>} : memref<1x14x5x1x8x128xf32, #tpu.memory_space<vmem>>, vector<1x1x1x1x8x128xf32>,
    %c0_849 = arith.constant 0 : index
    %c13_850 = arith.constant 13 : index
    %c4_851 = arith.constant 4 : index
    %c0_852 = arith.constant 0 : index
    %c0_853 = arith.constant 0 : index
    %c0_854 = arith.constant 0 : index
    %1345 = vector.load %arg3[%c0_849, %c13_850, %c4_851, %c0_852, %c0_853, %c0_854] : memref<1x14x5x1x8x128xf32, #tpu.memory_space<vmem>>, vector<1x1x1x1x8x128xf32>
    %1346 = vector.shape_cast %1345 : vector<1x1x1x1x8x128xf32> to vector<8x128xf32>
    %1347 = vector.shape_cast %0 : vector<8x128xf32> to vector<1x1x1x1x8x128xf32>
    tpu.vector_store %arg3[%c0_849, %c13_850, %c4_851, %c0_852, %c0_853, %c0_854], %1347 {strides = array<i32>} : memref<1x14x5x1x8x128xf32, #tpu.memory_space<vmem>>, vector<1x1x1x1x8x128xf32>,
    return
  }
  func.func @transform_0(%arg0: i32) -> (i32, i32, i32, i32, i32, i32) {
    %c0_i32 = arith.constant 0 : i32
    %c0_i32_0 = arith.constant 0 : i32
    %c0_i32_1 = arith.constant 0 : i32
    %c0_i32_2 = arith.constant 0 : i32
    %c0_i32_3 = arith.constant 0 : i32
    %c0_i32_4 = arith.constant 0 : i32
    return %arg0, %c0_i32, %c0_i32_0, %c0_i32_1, %c0_i32_2, %c0_i32_3 : i32, i32, i32, i32, i32, i32
  }
  func.func @transform_1(%arg0: i32) -> (i32, i32, i32, i32, i32) {
    %c0_i32 = arith.constant 0 : i32
    %c0_i32_0 = arith.constant 0 : i32
    %c0_i32_1 = arith.constant 0 : i32
    %c0_i32_2 = arith.constant 0 : i32
    %c0_i32_3 = arith.constant 0 : i32
    return %arg0, %c0_i32, %c0_i32_0, %c0_i32_1, %c0_i32_2 : i32, i32, i32, i32, i32
  }
  func.func @transform_2(%arg0: i32) -> (i32, i32, i32, i32, i32, i32) {
    %c0_i32 = arith.constant 0 : i32
    %c0_i32_0 = arith.constant 0 : i32
    %c0_i32_1 = arith.constant 0 : i32
    %c0_i32_2 = arith.constant 0 : i32
    %c0_i32_3 = arith.constant 0 : i32
    %c0_i32_4 = arith.constant 0 : i32
    return %arg0, %c0_i32, %c0_i32_0, %c0_i32_1, %c0_i32_2, %c0_i32_3 : i32, i32, i32, i32, i32, i32
  }
}

</mosaic_0001>

<bundles_post_ra>
// kernel: tpu_custom_call.1
= control target key start
LH: loop header
LB: loop body
LE: loop exit
PB: predicated region body
PF: predicated region fallthrough
CT: control target
= control target key end

     0   :  { %7 = vsyncpa [#allocation3], 0  ;;  %s1470_s0 = inlined_call_operand.hbm [shape: f32[1,8,2,1,8,128], index: 0, kind: input, shape index: {}]   ;;  %s1471_s1 = inlined_call_operand.hbm [shape: f32[1,8,1,8,128], index: 1, kind: input, shape index: {}]   ;;  %s1472_s2 = inlined_call_operand.hbm [shape: f32[1,14,5,1,8,128], index: 2, kind: output, shape index: {}]  }
   0x1   :  { %8 = vsyncpa [#allocation6], 0 }
   0x2   :  { %9 = vsyncpa [#allocation4], 0  ;;  %s908_s9 = smov [#allocation2]   ;;  %s836_s13 = scalar_lea.hbm %s1470_s0, 2048 }
   0x3   :  { %s15_s10 = sshll.u32 %s908_s9, 4  ;;  %p837_p0 = scmp.ne.s32.totalorder %s1470_s0, %s836_s13  ;;  %s16_s10 = int_to_ptr.vmem [resolvable:$true] %s15_s10 }
   0x4   :  { %p840_p1 = scmp.lt.u32.totalorder %s836_s13, %s1470_s0 }
   0x6   :  { %p842_p2 = pnand %p840_p1, %p837_p0 }
   0x8   :  { %845 = shalt.err (!%p842_p2)
}
   0x9   :  { %s846_s18 = scalar_lea.vmem %s16_s10, 2048  ;;  %p851_p4 = scmp.lt.s32.totalorder %s16_s10, %s16_s10 }
   0xa   :  { %p847_p3 = scmp.ne.s32.totalorder %s16_s10, %s846_s18  ;;  %p852_p5 = scmp.lt.s32.totalorder %s846_s18, %s846_s18 }
   0xc   :  { %p853_p6 = por %p852_p5, %p851_p4 }
   0xe   :  { %p854_p7 = pnand %p853_p6, %p847_p3 }
  0x10   :  { %857 = shalt.err (!%p854_p7)
}
  0x11   :  { %s909_s19 = smov 128   ;;  %s910_s20 = smov 8  }
  0x12   :  { %21 = dma.hbm_to_vmem [thread:$0]  %s1470_s0, 2048, %s16_s10, [#allocation3], %s909_s19, %s909_s19, %s910_s20  }
  0x13   :  { %s911_s23 = smov [#allocation5]   ;;  %s858_s27 = scalar_lea.hbm %s1471_s1, 1024 }
  0x14   :  { %s27_s24 = sshll.u32 %s911_s23, 4  ;;  %p859_p8 = scmp.ne.s32.totalorder %s1471_s1, %s858_s27  ;;  %s28_s24 = int_to_ptr.vmem [resolvable:$true] %s27_s24 }
  0x15   :  { %p862_p9 = scmp.lt.u32.totalorder %s858_s27, %s1471_s1 }
  0x17   :  { %p864_p10 = pnand %p862_p9, %p859_p8 }
  0x19   :  { %867 = shalt.err (!%p864_p10)
}
  0x1a   :  { %s868_s4 = scalar_lea.vmem %s28_s24, 1024  ;;  %p873_p12 = scmp.lt.s32.totalorder %s28_s24, %s28_s24 }
  0x1b   :  { %p869_p11 = scmp.ne.s32.totalorder %s28_s24, %s868_s4  ;;  %p874_p13 = scmp.lt.s32.totalorder %s868_s4, %s868_s4 }
  0x1d   :  { %p875_p0 = por %p874_p13, %p873_p12 }
  0x1f   :  { %p876_p1 = pnand %p875_p0, %p869_p11 }
  0x21   :  { %879 = shalt.err (!%p876_p1)
}
  0x22   :  { %33 = dma.hbm_to_vmem [thread:$0]  %s1471_s1, 1024, %s28_s24, [#allocation6], %s909_s19, %s909_s19, %s910_s20  }
  0x23   :  { %902 = dma.done.wait [#allocation3], 2048  }
  0x24   :  { %903 = vsyncadd [#allocation3], 4294965248 }
  0x25   :  { %904 = dma.done.wait [#allocation6], 1024  }
  0x26   :  { %905 = vsyncadd [#allocation6], 4294966272  ;;  %v912_v0 = vmov 0.0   ;;  %v960_v1 = vld [vmem:[#allocation5] sm:$0xff]  ;;  %v965_v5 = vld [vmem:[#allocation2 + $0x10] sm:$0xff]  ;;  %vm913_vm2 = vmmov 1  }
  0x27   :  { %105 = vst [vmem:[#allocation7 + $0x20] sm:$0xff] %v912_v0  ;;  %178 = vst [vmem:[#allocation7 + $0x48] sm:$0xff] %v912_v0  ;;  %vm44_vm0 = vcmp.gt.f32.partialorder %v960_v1, 0.5  ;;  %v40_v4 = vld [vmem:[#allocation2] sm:$0xff]  ;;  %v42_v7 = vld [vmem:[#allocation2 + $0x8] sm:$0xff]  ;;  %s914_s1 = smov [#allocation7]  }
  0x28   :  { %252 = vst [vmem:[#allocation7 + $0x70] sm:$0xff] %v912_v0  ;;  %326 = vst [vmem:[#allocation7 + $0x98] sm:$0xff] %v912_v0  ;;  %v55_v2 = vsel %vm44_vm0, 1.0, %v912_v0  ;;  %v967_v8 = vld [vmem:[#allocation2 + $0x18] sm:$0xff]  ;;  %v51_v9 = vsub.f32 %v965_v5, %v40_v4  ;;  %v49_v12 = vsel %vm44_vm0, %v40_v4, 0.0  ;;  %v50_v14 = vsel %vm44_vm0, %v42_v7, 0.0 }
  0x29   :  { %400 = vst [vmem:[#allocation7 + $0xc0] sm:$0xff] %v912_v0  ;;  %460 = vst [vmem:[#allocation7 + $0xe8] sm:$0xff] %v912_v0  ;;  %v58_v3 = vadd.f32 %v55_v2, %v55_v2  ;;  %v53_v11 = vsub.f32 %v967_v8, %v42_v7  ;;  %v979_v21 = vld [vmem:[#allocation5 + $0x8] sm:$0xff]  ;;  %v60_v24 = vadd.f32 0.1, %v55_v2  ;;  %v1007_v51 = vld [vmem:[#allocation2 + $0x20] sm:$0xff] }
  0x2a   :  { %522 = vst [vmem:[#allocation7 + $0x110] sm:$0xff] %v912_v0  ;;  %584 = vst [vmem:[#allocation7 + $0x138] sm:$0xff] %v912_v0  ;;  %v52_v13 = vsel %vm44_vm0, %v51_v9, 0.0  ;;  %vm110_vm1 = vcmp.gt.f32.partialorder %v979_v21, 0.5  ;;  %v1009_v54 = vld [vmem:[#allocation2 + $0x28] sm:$0xff]  ;;  %v119_v55 = vsub.f32 %v1007_v51, %v965_v5  ;;  %s772_s6 = sshll.u32 %s914_s1, 4  ;;  %s773_s6 = int_to_ptr.vmem [resolvable:$true] %s772_s6 }
  0x2b   :  { %615 = vst [vmem:[#allocation7 + $0x160] sm:$0xff] %v912_v0  ;;  %646 = vst [vmem:[#allocation7 + $0x188] sm:$0xff] %v912_v0  ;;  %v59_v6 = vadd.f32 0.01, %v58_v3  ;;  %v54_v15 = vsel %vm44_vm0, %v53_v11, 0.0  ;;  %v56_v16 = vadd.f32 %v52_v13, %v49_v12  ;;  %v121_v60 = vsub.f32 %v1009_v54, %v967_v8  ;;  %s880_s7 = scalar_lea.vmem %s773_s6, 8960  ;;  %p885_p3 = scmp.lt.s32.totalorder %s773_s6, %s773_s6 }
  0x2c   :  { %677 = vst [vmem:[#allocation7 + $0x1b0] sm:$0xff] %v912_v0  ;;  %708 = vst [vmem:[#allocation7 + $0x1d8] sm:$0xff] %v912_v0  ;;  %v76_v17 = vadd.f32 %v54_v15, %v50_v14  ;;  %p881_p2 = scmp.ne.s32.totalorder %s773_s6, %s880_s7  ;;  %p886_p4 = scmp.lt.s32.totalorder %s880_s7, %s880_s7 }
  0x2d   :  { %739 = vst [vmem:[#allocation7 + $0x200] sm:$0xff] %v912_v0  ;;  %766 = vst [vmem:[#allocation7 + $0x228] sm:$0xff] %v912_v0  ;;  %v61_v10 = vadd.f32 0.1, %v59_v6  ;;  %v65_v18 = vsub.f32 %v40_v4, %v56_v16 }
  0x2e   :  { %v77_v20 = vsub.f32 %v42_v7, %v76_v17  ;;  %vm111_vm3 = vmxor %vm44_vm0, %vm913_vm2  ;;  %p887_p5 = por %p886_p4, %p885_p3 }
  0x2f   :  { %792 = vrcp.f32 %v61_v10  ;;  %vm987_vm4 = vmand %vm110_vm1, %vm111_vm3 }
  0x30   :  { %vm1035_vm7 = vmor %vm44_vm0, %vm110_vm1  ;;  %p888_p6 = pnand %p887_p5, %p881_p2 }
  0x31   :  { %vm185_vm9 = vmxor %vm1035_vm7, %vm913_vm2 }
  0x39   :  { %v793_v19 = vpop.eup %792 }
  0x3a   :  { %v63_v22 = vmul.f32 %v793_v19, %v59_v6  ;;  %v64_v23 = vmul.f32 %v793_v19, %v55_v2 }
  0x3c   :  { %v66_v25 = vmul.f32 %v65_v18, %v63_v22  ;;  %v70_v26 = vmul.f32 %v63_v22, %v59_v6  ;;  %v72_v27 = vmul.f32 %v63_v22, %v55_v2  ;;  %v74_v28 = vmul.f32 %v64_v23, %v55_v2 }
  0x3d   :  { %v78_v29 = vmul.f32 %v77_v20, %v63_v22  ;;  %v68_v45 = vmul.f32 %v65_v18, %v64_v23  ;;  %v80_v47 = vmul.f32 %v77_v20, %v64_v23 }
  0x3e   :  { %v67_v30 = vadd.f32 %v66_v25, %v56_v16  ;;  %v71_v31 = vsub.f32 %v59_v6, %v70_v26  ;;  %v73_v32 = vsub.f32 %v55_v2, %v72_v27  ;;  %v75_v33 = vsub.f32 %v60_v24, %v74_v28 }
  0x3f   :  { %v79_v34 = vadd.f32 %v78_v29, %v76_v17  ;;  %v69_v50 = vadd.f32 %v68_v45, %v52_v13  ;;  %v81_v52 = vadd.f32 %v80_v47, %v54_v15  ;;  %v1039_v15 = vld [vmem:[#allocation5 + $0x10] sm:$0xff] }
  0x40   :  { %v82_v36 = vsel %vm44_vm0, %v67_v30, 0.0  ;;  %v84_v37 = vsel %vm44_vm0, %v71_v31, 0.0  ;;  %v85_v38 = vsel %vm44_vm0, %v73_v32, 0.0  ;;  %v86_v39 = vsel %vm44_vm0, %v75_v33, 0.0 }
  0x41   :  { %89 = vst [vmem:[#allocation7] sm:$0xff] %v82_v36  ;;  %v87_v40 = vsel %vm44_vm0, %v79_v34, 0.0  ;;  %v92_v41 = vmax.f32 %v84_v37, 0.0  ;;  %v124_v42 = vsel %vm987_vm4, 0.0, %v85_v38  ;;  %v125_v43 = vsel %vm987_vm4, 1.0, %v86_v39 }
  0x42   :  { %91 = vst [vmem:[#allocation7 + $0x8] sm:$0xff] %v87_v40  ;;  %v127_v44 = vmul.f32 2.0, %v124_v42  ;;  %v123_v46 = vsel %vm987_vm4, 1.0, %v84_v37  ;;  %v83_v59 = vsel %vm44_vm0, %v69_v50, 0.0  ;;  %v88_v62 = vsel %vm44_vm0, %v81_v52, 0.0 }
  0x43   :  { %794 = vrsqrt.f32 %v92_v41  ;;  %vm95_vm5 = vcmp.eq.f32.partialorder %v92_v41, inf  ;;  %v98_v58 = vand.u32 2147483648, %v92_v41  ;;  %vm97_vm6 = vcmp.eq.f32.partialorder %v92_v41, 0.0 }
  0x44   :  { %v128_v48 = vadd.f32 %v127_v44, %v125_v43  ;;  %v117_v0 = vsel %vm987_vm4, %v965_v5, %v82_v36  ;;  %v120_v2 = vsel %vm987_vm4, %v119_v55, %v83_v59  ;;  %v118_v4 = vsel %vm987_vm4, %v967_v8, %v87_v40 }
  0x45   :  { %v122_v6 = vsel %vm987_vm4, %v121_v60, %v88_v62  ;;  %v126_v7 = vadd.f32 %v120_v2, %v117_v0  ;;  %v131_v10 = vadd.f32 %v125_v43, %v124_v42  ;;  %v132_v18 = vadd.f32 0.1, %v125_v43 }
  0x46   :  { %v129_v49 = vadd.f32 %v128_v48, %v123_v46  ;;  %v148_v9 = vadd.f32 %v122_v6, %v118_v4  ;;  %vm184_vm8 = vcmp.gt.f32.partialorder %v1039_v15, 0.5 }
  0x47   :  { %v137_v11 = vsub.f32 %v965_v5, %v126_v7  ;;  %vm1047_vm10 = vmand %vm184_vm8, %vm185_vm9 }
  0x48   :  { %v130_v53 = vadd.f32 0.01, %v129_v49  ;;  %v149_v13 = vsub.f32 %v967_v8, %v148_v9  ;;  %vm1095_vm13 = vmor %vm1035_vm7, %vm184_vm8 }
  0x49   :  { %vm259_vm15 = vmxor %vm1095_vm13, %vm913_vm2 }
  0x4a   :  { %v133_v56 = vadd.f32 0.1, %v130_v53 }
  0x4c   :  { %796 = vrcp.f32 %v133_v56 }
  0x4d   :  { %v795_v57 = vpop.eup %794 }
  0x4e   :  { %v94_v61 = vmul.f32 %v795_v57, %v92_v41 }
  0x50   :  { %v96_v63 = vsel %vm95_vm5, %v92_v41, %v94_v61 }
  0x51   :  { %v99_v3 = vsel %vm97_vm6, %v98_v58, %v96_v63 }
  0x52   :  { %101 = vst [vmem:[#allocation7 + $0x10] sm:$0xff] %v99_v3  ;;  %103 = vst [vmem:[#allocation7 + $0x18] sm:$0xff] %v99_v3 }
  0x56   :  { %v797_v12 = vpop.eup %796 }
  0x57   :  { %v135_v16 = vmul.f32 %v797_v12, %v130_v53  ;;  %v136_v17 = vmul.f32 %v797_v12, %v131_v10 }
  0x59   :  { %v138_v19 = vmul.f32 %v137_v11, %v135_v16  ;;  %v142_v20 = vmul.f32 %v135_v16, %v130_v53  ;;  %v144_v22 = vmul.f32 %v135_v16, %v131_v10  ;;  %v146_v5 = vmul.f32 %v136_v17, %v131_v10 }
  0x5a   :  { %v150_v1 = vmul.f32 %v149_v13, %v135_v16  ;;  %v140_v37 = vmul.f32 %v137_v11, %v136_v17  ;;  %v152_v39 = vmul.f32 %v149_v13, %v136_v17 }
  0x5b   :  { %v139_v8 = vadd.f32 %v138_v19, %v126_v7  ;;  %v143_v23 = vsub.f32 %v130_v53, %v142_v20  ;;  %v145_v24 = vsub.f32 %v131_v10, %v144_v22  ;;  %v147_v25 = vsub.f32 %v132_v18, %v146_v5  ;;  %v1099_v7 = vld [vmem:[#allocation5 + $0x18] sm:$0xff] }
  0x5c   :  { %v151_v26 = vadd.f32 %v150_v1, %v148_v9  ;;  %v153_v44 = vadd.f32 %v152_v39, %v122_v6  ;;  %vm258_vm14 = vcmp.gt.f32.partialorder %v1099_v7, 0.5 }
  0x5d   :  { %v154_v28 = vsel %vm110_vm1, %v139_v8, %v117_v0  ;;  %v156_v29 = vsel %vm110_vm1, %v143_v23, %v123_v46  ;;  %v157_v30 = vsel %vm110_vm1, %v145_v24, %v124_v42  ;;  %v158_v31 = vsel %vm110_vm1, %v147_v25, %v125_v43  ;;  %v1067_v43 = vld [vmem:[#allocation2 + $0x30] sm:$0xff]  ;;  %v1069_v46 = vld [vmem:[#allocation2 + $0x38] sm:$0xff]  ;;  %vm1107_vm0 = vmand %vm258_vm14, %vm259_vm15 }
  0x5e   :  { %162 = vst [vmem:[#allocation7 + $0x28] sm:$0xff] %v154_v28  ;;  %v159_v32 = vsel %vm110_vm1, %v151_v26, %v118_v4  ;;  %v165_v33 = vmax.f32 %v156_v29, 0.0  ;;  %v198_v34 = vsel %vm1047_vm10, 0.0, %v157_v30  ;;  %v199_v35 = vsel %vm1047_vm10, 1.0, %v158_v31  ;;  %vm1154_vm4 = vmor %vm1095_vm13, %vm258_vm14 }
  0x5f   :  { %164 = vst [vmem:[#allocation7 + $0x30] sm:$0xff] %v159_v32  ;;  %v201_v36 = vmul.f32 2.0, %v198_v34  ;;  %v197_v38 = vsel %vm1047_vm10, 1.0, %v156_v29  ;;  %v141_v42 = vadd.f32 %v140_v37, %v120_v2  ;;  %v193_v47 = vsub.f32 %v1067_v43, %v1007_v51  ;;  %vm333_vm6 = vmxor %vm1154_vm4, %vm913_vm2 }
  0x60   :  { %798 = vrsqrt.f32 %v165_v33  ;;  %vm168_vm11 = vcmp.eq.f32.partialorder %v165_v33, inf  ;;  %v171_v50 = vand.u32 2147483648, %v165_v33  ;;  %v195_v53 = vsub.f32 %v1069_v46, %v1009_v54 }
  0x61   :  { %v202_v40 = vadd.f32 %v201_v36, %v199_v35  ;;  %v155_v52 = vsel %vm110_vm1, %v141_v42, %v120_v2  ;;  %vm170_vm12 = vcmp.eq.f32.partialorder %v165_v33, 0.0  ;;  %v160_v56 = vsel %vm110_vm1, %v153_v44, %v122_v6 }
  0x62   :  { %v191_v58 = vsel %vm1047_vm10, %v1007_v51, %v154_v28  ;;  %v194_v59 = vsel %vm1047_vm10, %v193_v47, %v155_v52  ;;  %v192_v61 = vsel %vm1047_vm10, %v1009_v54, %v159_v32  ;;  %v196_v62 = vsel %vm1047_vm10, %v195_v53, %v160_v56 }
  0x63   :  { %v203_v41 = vadd.f32 %v202_v40, %v197_v38  ;;  %v200_v21 = vadd.f32 %v194_v59, %v191_v58  ;;  %v222_v63 = vadd.f32 %v196_v62, %v192_v61  ;;  %v205_v0 = vadd.f32 %v199_v35, %v198_v34 }
  0x64   :  { %v206_v11 = vadd.f32 0.1, %v199_v35 }
  0x65   :  { %v204_v45 = vadd.f32 0.01, %v203_v41  ;;  %v211_v2 = vsub.f32 %v1007_v51, %v200_v21  ;;  %v223_v4 = vsub.f32 %v1009_v54, %v222_v63 }
  0x67   :  { %v207_v48 = vadd.f32 0.1, %v204_v45 }
  0x69   :  { %800 = vrcp.f32 %v207_v48 }
  0x6a   :  { %v799_v49 = vpop.eup %798 }
  0x6b   :  { %v167_v55 = vmul.f32 %v799_v49, %v165_v33 }
  0x6d   :  { %v169_v57 = vsel %vm168_vm11, %v165_v33, %v167_v55 }
  0x6e   :  { %v172_v60 = vsel %vm170_vm12, %v171_v50, %v169_v57 }
  0x6f   :  { %174 = vst [vmem:[#allocation7 + $0x38] sm:$0xff] %v172_v60  ;;  %176 = vst [vmem:[#allocation7 + $0x40] sm:$0xff] %v172_v60 }
  0x73   :  { %v801_v3 = vpop.eup %800 }
  0x74   :  { %v209_v9 = vmul.f32 %v801_v3, %v204_v45  ;;  %v210_v10 = vmul.f32 %v801_v3, %v205_v0 }
  0x76   :  { %v212_v12 = vmul.f32 %v211_v2, %v209_v9  ;;  %v216_v13 = vmul.f32 %v209_v9, %v204_v45  ;;  %v218_v16 = vmul.f32 %v209_v9, %v205_v0  ;;  %v220_v51 = vmul.f32 %v210_v10, %v205_v0 }
  0x77   :  { %v224_v54 = vmul.f32 %v223_v4, %v209_v9  ;;  %v214_v29 = vmul.f32 %v211_v2, %v210_v10  ;;  %v226_v31 = vmul.f32 %v223_v4, %v210_v10 }
  0x78   :  { %v213_v14 = vadd.f32 %v212_v12, %v200_v21  ;;  %v217_v17 = vsub.f32 %v204_v45, %v216_v13  ;;  %v219_v18 = vsub.f32 %v205_v0, %v218_v16  ;;  %v221_v19 = vsub.f32 %v206_v11, %v220_v51 }
  0x79   :  { %v225_v20 = vadd.f32 %v224_v54, %v222_v63  ;;  %v227_v36 = vadd.f32 %v226_v31, %v196_v62 }
  0x7a   :  { %v228_v5 = vsel %vm184_vm8, %v213_v14, %v191_v58  ;;  %v230_v1 = vsel %vm184_vm8, %v217_v17, %v197_v38  ;;  %v231_v8 = vsel %vm184_vm8, %v219_v18, %v198_v34  ;;  %v232_v23 = vsel %vm184_vm8, %v221_v19, %v199_v35  ;;  %v1127_v35 = vld [vmem:[#allocation2 + $0x40] sm:$0xff]  ;;  %v1129_v38 = vld [vmem:[#allocation2 + $0x48] sm:$0xff] }
  0x7b   :  { %236 = vst [vmem:[#allocation7 + $0x50] sm:$0xff] %v228_v5  ;;  %v233_v24 = vsel %vm184_vm8, %v225_v20, %v192_v61  ;;  %v239_v25 = vmax.f32 %v230_v1, 0.0  ;;  %v272_v26 = vsel %vm1107_vm0, 0.0, %v231_v8  ;;  %v273_v27 = vsel %vm1107_vm0, 1.0, %v232_v23 }
  0x7c   :  { %238 = vst [vmem:[#allocation7 + $0x58] sm:$0xff] %v233_v24  ;;  %v275_v28 = vmul.f32 2.0, %v272_v26  ;;  %v271_v30 = vsel %vm1107_vm0, 1.0, %v230_v1  ;;  %v215_v34 = vadd.f32 %v214_v29, %v194_v59  ;;  %v267_v39 = vsub.f32 %v1127_v35, %v1067_v43 }
  0x7d   :  { %802 = vrsqrt.f32 %v239_v25  ;;  %vm242_vm1 = vcmp.eq.f32.partialorder %v239_v25, inf  ;;  %v245_v42 = vand.u32 2147483648, %v239_v25  ;;  %v269_v45 = vsub.f32 %v1129_v38, %v1069_v46 }
  0x7e   :  { %v276_v32 = vadd.f32 %v275_v28, %v273_v27  ;;  %v229_v44 = vsel %vm184_vm8, %v215_v34, %v194_v59  ;;  %vm244_vm3 = vcmp.eq.f32.partialorder %v239_v25, 0.0  ;;  %v234_v48 = vsel %vm184_vm8, %v227_v36, %v196_v62  ;;  %v1158_v62 = vld [vmem:[#allocation5 + $0x20] sm:$0xff] }
  0x7f   :  { %v265_v50 = vsel %vm1107_vm0, %v1067_v43, %v228_v5  ;;  %v268_v52 = vsel %vm1107_vm0, %v267_v39, %v229_v44  ;;  %v266_v55 = vsel %vm1107_vm0, %v1069_v46, %v233_v24  ;;  %v270_v56 = vsel %vm1107_vm0, %v269_v45, %v234_v48 }
  0x80   :  { %v277_v33 = vadd.f32 %v276_v32, %v271_v30  ;;  %v274_v15 = vadd.f32 %v268_v52, %v265_v50  ;;  %v296_v57 = vadd.f32 %v270_v56, %v266_v55  ;;  %v279_v58 = vadd.f32 %v273_v27, %v272_v26 }
  0x81   :  { %v280_v2 = vadd.f32 0.1, %v273_v27  ;;  %vm332_vm5 = vcmp.gt.f32.partialorder %v1158_v62, 0.5 }
  0x82   :  { %v278_v37 = vadd.f32 0.01, %v277_v33  ;;  %v285_v59 = vsub.f32 %v1067_v43, %v274_v15  ;;  %v297_v21 = vsub.f32 %v1069_v46, %v296_v57  ;;  %vm1167_vm7 = vmand %vm332_vm5, %vm333_vm6 }
  0x83   :  { %vm1231_vm11 = vmor %vm1154_vm4, %vm332_vm5 }
  0x84   :  { %v281_v40 = vadd.f32 0.1, %v278_v37 }
  0x86   :  { %804 = vrcp.f32 %v281_v40 }
  0x87   :  { %v803_v41 = vpop.eup %802 }
  0x88   :  { %v241_v47 = vmul.f32 %v803_v41, %v239_v25 }
  0x8a   :  { %v243_v49 = vsel %vm242_vm1, %v239_v25, %v241_v47 }
  0x8b   :  { %v246_v53 = vsel %vm244_vm3, %v245_v42, %v243_v49 }
  0x8c   :  { %248 = vst [vmem:[#allocation7 + $0x60] sm:$0xff] %v246_v53  ;;  %250 = vst [vmem:[#allocation7 + $0x68] sm:$0xff] %v246_v53 }
  0x90   :  { %v805_v60 = vpop.eup %804 }
  0x91   :  { %v283_v63 = vmul.f32 %v805_v60, %v278_v37  ;;  %v284_v0 = vmul.f32 %v805_v60, %v279_v58 }
  0x93   :  { %v286_v3 = vmul.f32 %v285_v59, %v283_v63  ;;  %v290_v4 = vmul.f32 %v283_v63, %v278_v37  ;;  %v292_v9 = vmul.f32 %v283_v63, %v279_v58  ;;  %v294_v43 = vmul.f32 %v284_v0, %v279_v58 }
  0x94   :  { %v298_v6 = vmul.f32 %v297_v21, %v283_v63  ;;  %v288_v5 = vmul.f32 %v285_v59, %v284_v0  ;;  %v300_v24 = vmul.f32 %v297_v21, %v284_v0 }
  0x95   :  { %v287_v10 = vadd.f32 %v286_v3, %v274_v15  ;;  %v291_v11 = vsub.f32 %v278_v37, %v290_v4  ;;  %v293_v12 = vsub.f32 %v279_v58, %v292_v9  ;;  %v295_v13 = vsub.f32 %v280_v2, %v294_v43 }
  0x96   :  { %v299_v16 = vadd.f32 %v298_v6, %v296_v57  ;;  %v301_v29 = vadd.f32 %v300_v24, %v270_v56 }
  0x97   :  { %v302_v51 = vsel %vm258_vm14, %v287_v10, %v265_v50  ;;  %v305_v54 = vsel %vm258_vm14, %v293_v12, %v272_v26  ;;  %v304_v14 = vsel %vm258_vm14, %v291_v11, %v271_v30  ;;  %v306_v17 = vsel %vm258_vm14, %v295_v13, %v273_v27  ;;  %v1187_v27 = vld [vmem:[#allocation2 + $0x50] sm:$0xff]  ;;  %v1189_v30 = vld [vmem:[#allocation2 + $0x58] sm:$0xff] }
  0x98   :  { %310 = vst [vmem:[#allocation7 + $0x78] sm:$0xff] %v302_v51  ;;  %v346_v18 = vsel %vm1167_vm7, 0.0, %v305_v54  ;;  %v347_v19 = vsel %vm1167_vm7, 1.0, %v306_v17  ;;  %v307_v20 = vsel %vm258_vm14, %v299_v16, %v266_v55  ;;  %v345_v1 = vsel %vm1167_vm7, 1.0, %v304_v14 }
  0x99   :  { %v349_v22 = vmul.f32 2.0, %v346_v18  ;;  %312 = vst [vmem:[#allocation7 + $0x80] sm:$0xff] %v307_v20  ;;  %v313_v8 = vmax.f32 %v304_v14, 0.0  ;;  %v289_v26 = vadd.f32 %v288_v5, %v268_v52  ;;  %v341_v31 = vsub.f32 %v1187_v27, %v1127_v35 }
  0x9a   :  { %v343_v34 = vsub.f32 %v1189_v30, %v1129_v38  ;;  %v308_v36 = vsel %vm258_vm14, %v301_v29, %v270_v56  ;;  %v339_v37 = vsel %vm1167_vm7, %v1127_v35, %v302_v51  ;;  %v340_v41 = vsel %vm1167_vm7, %v1129_v38, %v307_v20 }
  0x9b   :  { %v350_v23 = vadd.f32 %v349_v22, %v347_v19  ;;  %806 = vrsqrt.f32 %v313_v8  ;;  %v303_v33 = vsel %vm258_vm14, %v289_v26, %v268_v52  ;;  %vm316_vm2 = vcmp.eq.f32.partialorder %v313_v8, inf }
  0x9c   :  { %v342_v39 = vsel %vm1167_vm7, %v341_v31, %v303_v33  ;;  %v344_v42 = vsel %vm1167_vm7, %v343_v34, %v308_v36  ;;  %v319_v44 = vand.u32 2147483648, %v313_v8  ;;  %vm318_vm8 = vcmp.eq.f32.partialorder %v313_v8, 0.0 }
  0x9d   :  { %v351_v25 = vadd.f32 %v350_v23, %v345_v1  ;;  %v348_v7 = vadd.f32 %v342_v39, %v339_v37  ;;  %v370_v47 = vadd.f32 %v344_v42, %v340_v41  ;;  %v353_v49 = vadd.f32 %v347_v19, %v346_v18 }
  0x9e   :  { %v354_v57 = vadd.f32 0.1, %v347_v19 }
  0x9f   :  { %v352_v28 = vadd.f32 0.01, %v351_v25  ;;  %v359_v52 = vsub.f32 %v1127_v35, %v348_v7  ;;  %v371_v55 = vsub.f32 %v1129_v38, %v370_v47 }
  0xa1   :  { %v355_v32 = vadd.f32 0.1, %v352_v28 }
  0xa3   :  { %808 = vrcp.f32 %v355_v32 }
  0xa5   :  { %v807_v40 = vpop.eup %806 }
  0xa6   :  { %v315_v45 = vmul.f32 %v807_v40, %v313_v8 }
  0xa8   :  { %v317_v48 = vsel %vm316_vm2, %v313_v8, %v315_v45 }
  0xa9   :  { %v320_v50 = vsel %vm318_vm8, %v319_v44, %v317_v48 }
  0xaa   :  { %322 = vst [vmem:[#allocation7 + $0x88] sm:$0xff] %v320_v50  ;;  %324 = vst [vmem:[#allocation7 + $0x90] sm:$0xff] %v320_v50 }
  0xad   :  { %v809_v53 = vpop.eup %808 }
  0xae   :  { %v357_v56 = vmul.f32 %v809_v53, %v352_v28  ;;  %v358_v15 = vmul.f32 %v809_v53, %v353_v49 }
  0xb0   :  { %v360_v58 = vmul.f32 %v359_v52, %v357_v56  ;;  %v364_v59 = vmul.f32 %v357_v56, %v352_v28  ;;  %v366_v60 = vmul.f32 %v357_v56, %v353_v49  ;;  %v368_v21 = vmul.f32 %v358_v15, %v353_v49 }
  0xb1   :  { %v372_v63 = vmul.f32 %v371_v55, %v357_v56  ;;  %v362_v46 = vmul.f32 %v359_v52, %v358_v15  ;;  %v374_v51 = vmul.f32 %v371_v55, %v358_v15 }
  0xb2   :  { %v361_v0 = vadd.f32 %v360_v58, %v348_v7  ;;  %v365_v2 = vsub.f32 %v352_v28, %v364_v59  ;;  %v367_v3 = vsub.f32 %v353_v49, %v366_v60  ;;  %v369_v4 = vsub.f32 %v354_v57, %v368_v21  ;;  %v405_v28 = vld [vmem:[#allocation5 + $0x28] sm:$0xff] }
  0xb3   :  { %v373_v9 = vadd.f32 %v372_v63, %v370_v47  ;;  %v363_v14 = vadd.f32 %v362_v46, %v342_v39  ;;  %vm406_vm12 = vcmp.gt.f32.partialorder %v405_v28, 0.5 }
  0xb4   :  { %v376_v43 = vsel %vm332_vm5, %v361_v0, %v339_v37  ;;  %v379_v35 = vsel %vm332_vm5, %v367_v3, %v346_v18  ;;  %v380_v38 = vsel %vm332_vm5, %v369_v4, %v347_v19  ;;  %v378_v6 = vsel %vm332_vm5, %v365_v2, %v345_v1  ;;  %vm1238_vm13 = vmand %vm406_vm12, %vm1231_vm11 }
  0xb5   :  { %384 = vst [vmem:[#allocation7 + $0xa0] sm:$0xff] %v376_v43  ;;  %v409_v10 = vmul.f32 2.0, %v379_v35  ;;  %v381_v11 = vsel %vm332_vm5, %v373_v9, %v340_v41  ;;  %v387_v12 = vmax.f32 %v378_v6, 0.0  ;;  %v375_v18 = vadd.f32 %v374_v51, %v344_v42  ;;  %vm1259_vm0 = vmor %vm1231_vm11, %vm406_vm12 }
  0xb6   :  { %386 = vst [vmem:[#allocation7 + $0xa8] sm:$0xff] %v381_v11  ;;  %v377_v19 = vsel %vm332_vm5, %v363_v14, %v342_v39  ;;  %v413_v25 = vadd.f32 %v380_v38, %v379_v35  ;;  %v414_v37 = vadd.f32 0.1, %v380_v38 }
  0xb7   :  { %v410_v13 = vadd.f32 %v409_v10, %v380_v38  ;;  %810 = vrsqrt.f32 %v387_v12  ;;  %v382_v22 = vsel %vm332_vm5, %v375_v18, %v344_v42  ;;  %vm390_vm9 = vcmp.eq.f32.partialorder %v387_v12, inf }
  0xb8   :  { %v393_v5 = vand.u32 2147483648, %v387_v12  ;;  %vm392_vm10 = vcmp.eq.f32.partialorder %v387_v12, 0.0  ;;  %v408_v8 = vadd.f32 %v377_v19, %v376_v43  ;;  %v430_v23 = vadd.f32 %v382_v22, %v381_v11 }
  0xb9   :  { %v411_v16 = vadd.f32 %v410_v13, %v378_v6  ;;  %v467_v13 = vld [vmem:[#allocation5 + $0x30] sm:$0xff] }
  0xba   :  { %v419_v29 = vsub.f32 %v1187_v27, %v408_v8  ;;  %v431_v32 = vsub.f32 %v1189_v30, %v430_v23  ;;  %vm468_vm1 = vcmp.gt.f32.partialorder %v467_v13, 0.5 }
  0xbb   :  { %v412_v54 = vadd.f32 0.01, %v411_v16  ;;  %vm1266_vm3 = vmand %vm468_vm1, %vm1259_vm0 }
  0xbc   :  { %vm523_vm6 = vmor %vm1259_vm0, %vm468_vm1 }
  0xbd   :  { %v415_v17 = vadd.f32 0.1, %v412_v54 }
  0xbf   :  { %812 = vrcp.f32 %v415_v17 }
  0xc1   :  { %v811_v20 = vpop.eup %810 }
  0xc2   :  { %v389_v1 = vmul.f32 %v811_v20, %v387_v12 }
  0xc4   :  { %v391_v24 = vsel %vm390_vm9, %v387_v12, %v389_v1 }
  0xc5   :  { %v394_v26 = vsel %vm392_vm10, %v393_v5, %v391_v24 }
  0xc6   :  { %396 = vst [vmem:[#allocation7 + $0xb0] sm:$0xff] %v394_v26  ;;  %398 = vst [vmem:[#allocation7 + $0xb8] sm:$0xff] %v394_v26 }
  0xc9   :  { %v813_v31 = vpop.eup %812 }
  0xca   :  { %v417_v33 = vmul.f32 %v813_v31, %v412_v54  ;;  %v418_v34 = vmul.f32 %v813_v31, %v413_v25 }
  0xcc   :  { %v420_v39 = vmul.f32 %v419_v29, %v417_v33  ;;  %v424_v40 = vmul.f32 %v417_v33, %v412_v54  ;;  %v426_v41 = vmul.f32 %v417_v33, %v413_v25  ;;  %v428_v42 = vmul.f32 %v418_v34, %v413_v25 }
  0xcd   :  { %v432_v27 = vmul.f32 %v431_v32, %v417_v33  ;;  %v422_v15 = vmul.f32 %v419_v29, %v418_v34  ;;  %v434_v58 = vmul.f32 %v431_v32, %v418_v34 }
  0xce   :  { %v421_v62 = vadd.f32 %v420_v39, %v408_v8  ;;  %v425_v61 = vsub.f32 %v412_v54, %v424_v40  ;;  %v427_v44 = vsub.f32 %v413_v25, %v426_v41  ;;  %v429_v45 = vsub.f32 %v414_v37, %v428_v42 }
  0xcf   :  { %v433_v7 = vadd.f32 %v432_v27, %v430_v23  ;;  %v423_v60 = vadd.f32 %v422_v15, %v377_v19  ;;  %v435_v63 = vadd.f32 %v434_v58, %v382_v22 }
  0xd0   :  { %v436_v47 = vsel %vm1238_vm13, %v421_v62, %v376_v43  ;;  %v439_v48 = vsel %vm1238_vm13, %v427_v44, %v379_v35  ;;  %v438_v49 = vsel %vm1238_vm13, %v425_v61, %v378_v6  ;;  %v440_v50 = vsel %vm1238_vm13, %v429_v45, %v380_v38  ;;  %v463_v35 = vld [vmem:[#allocation2 + $0x60] sm:$0xff] }
  0xd1   :  { %444 = vst [vmem:[#allocation7 + $0xc8] sm:$0xff] %v436_v47  ;;  %v471_v52 = vmul.f32 2.0, %v439_v48  ;;  %v441_v53 = vsel %vm1238_vm13, %v433_v7, %v381_v11  ;;  %v447_v55 = vmax.f32 %v438_v49, 0.0  ;;  %v437_v0 = vsel %vm1238_vm13, %v423_v60, %v377_v19  ;;  %v465_v11 = vld [vmem:[#allocation2 + $0x68] sm:$0xff] }
  0xd2   :  { %446 = vst [vmem:[#allocation7 + $0xd0] sm:$0xff] %v441_v53  ;;  %v442_v3 = vsel %vm1238_vm13, %v435_v63, %v382_v22  ;;  %v470_v43 = vadd.f32 %v437_v0, %v436_v47  ;;  %v475_v10 = vadd.f32 %v440_v50, %v439_v48  ;;  %v476_v18 = vadd.f32 0.1, %v440_v50 }
  0xd3   :  { %v472_v56 = vadd.f32 %v471_v52, %v440_v50  ;;  %814 = vrsqrt.f32 %v447_v55  ;;  %vm450_vm14 = vcmp.eq.f32.partialorder %v447_v55, inf  ;;  %v453_v4 = vand.u32 2147483648, %v447_v55 }
  0xd4   :  { %vm452_vm15 = vcmp.eq.f32.partialorder %v447_v55, 0.0  ;;  %v492_v38 = vadd.f32 %v442_v3, %v441_v53  ;;  %v481_v46 = vsub.f32 %v463_v35, %v470_v43 }
  0xd5   :  { %v473_v57 = vadd.f32 %v472_v56, %v438_v49  ;;  %v527_v56 = vld [vmem:[#allocation2 + $0x78] sm:$0xff] }
  0xd6   :  { %v493_v51 = vsub.f32 %v465_v11, %v492_v38 }
  0xd7   :  { %v474_v59 = vadd.f32 0.01, %v473_v57  ;;  %v1284_v57 = vld [vmem:[#allocation5 + $0x38] sm:$0xff] }
  0xd8   :  { %vm530_vm7 = vcmp.gt.f32.partialorder %v1284_v57, 0.5 }
  0xd9   :  { %v477_v21 = vadd.f32 0.1, %v474_v59  ;;  %vm1292_vm2 = vmand %vm530_vm7, %vm523_vm6 }
  0xdb   :  { %816 = vrcp.f32 %v477_v21 }
  0xdd   :  { %v815_v2 = vpop.eup %814 }
  0xde   :  { %v449_v9 = vmul.f32 %v815_v2, %v447_v55 }
  0xe0   :  { %v451_v6 = vsel %vm450_vm14, %v447_v55, %v449_v9 }
  0xe1   :  { %v454_v12 = vsel %vm452_vm15, %v453_v4, %v451_v6 }
  0xe2   :  { %456 = vst [vmem:[#allocation7 + $0xd8] sm:$0xff] %v454_v12  ;;  %458 = vst [vmem:[#allocation7 + $0xe0] sm:$0xff] %v454_v12 }
  0xe5   :  { %v817_v16 = vpop.eup %816 }
  0xe6   :  { %v479_v54 = vmul.f32 %v817_v16, %v474_v59  ;;  %v480_v14 = vmul.f32 %v817_v16, %v475_v10 }
  0xe8   :  { %v482_v19 = vmul.f32 %v481_v46, %v479_v54  ;;  %v486_v20 = vmul.f32 %v479_v54, %v474_v59  ;;  %v488_v22 = vmul.f32 %v479_v54, %v475_v10  ;;  %v490_v5 = vmul.f32 %v480_v14, %v475_v10 }
  0xe9   :  { %v494_v1 = vmul.f32 %v493_v51, %v479_v54  ;;  %v484_v40 = vmul.f32 %v481_v46, %v480_v14  ;;  %v496_v42 = vmul.f32 %v493_v51, %v480_v14 }
  0xea   :  { %v483_v23 = vadd.f32 %v482_v19, %v470_v43  ;;  %v487_v24 = vsub.f32 %v474_v59, %v486_v20  ;;  %v489_v25 = vsub.f32 %v475_v10, %v488_v22  ;;  %v491_v26 = vsub.f32 %v476_v18, %v490_v5 }
  0xeb   :  { %v495_v28 = vadd.f32 %v494_v1, %v492_v38  ;;  %v485_v30 = vadd.f32 %v484_v40, %v437_v0  ;;  %v497_v61 = vadd.f32 %v496_v42, %v442_v3 }
  0xec   :  { %v498_v29 = vsel %vm1266_vm3, %v483_v23, %v436_v47  ;;  %v501_v31 = vsel %vm1266_vm3, %v489_v25, %v439_v48  ;;  %v500_v32 = vsel %vm1266_vm3, %v487_v24, %v438_v49  ;;  %v502_v33 = vsel %vm1266_vm3, %v491_v26, %v440_v50  ;;  %v525_v50 = vld [vmem:[#allocation2 + $0x70] sm:$0xff] }
  0xed   :  { %506 = vst [vmem:[#allocation7 + $0xf0] sm:$0xff] %v498_v29  ;;  %v533_v34 = vmul.f32 2.0, %v501_v31  ;;  %v503_v36 = vsel %vm1266_vm3, %v495_v28, %v441_v53  ;;  %v509_v37 = vmax.f32 %v500_v32, 0.0  ;;  %v499_v44 = vsel %vm1266_vm3, %v485_v30, %v437_v0 }
  0xee   :  { %508 = vst [vmem:[#allocation7 + $0xf8] sm:$0xff] %v503_v36  ;;  %v504_v7 = vsel %vm1266_vm3, %v497_v61, %v442_v3  ;;  %v532_v49 = vadd.f32 %v499_v44, %v498_v29  ;;  %v537_v55 = vadd.f32 %v502_v33, %v501_v31  ;;  %v538_v0 = vadd.f32 0.1, %v502_v33 }
  0xef   :  { %v534_v39 = vadd.f32 %v533_v34, %v502_v33  ;;  %818 = vrsqrt.f32 %v509_v37  ;;  %vm512_vm4 = vcmp.eq.f32.partialorder %v509_v37, inf  ;;  %v515_v47 = vand.u32 2147483648, %v509_v37 }
  0xf0   :  { %vm514_vm5 = vcmp.eq.f32.partialorder %v509_v37, 0.0  ;;  %v554_v52 = vadd.f32 %v504_v7, %v503_v36  ;;  %v543_v58 = vsub.f32 %v525_v50, %v532_v49 }
  0xf1   :  { %v535_v41 = vadd.f32 %v534_v39, %v500_v32 }
  0xf2   :  { %v555_v60 = vsub.f32 %v527_v56, %v554_v52 }
  0xf3   :  { %v536_v27 = vadd.f32 0.01, %v535_v41 }
  0xf5   :  { %v539_v62 = vadd.f32 0.1, %v536_v27 }
  0xf7   :  { %820 = vrcp.f32 %v539_v62 }
  0xf9   :  { %v819_v45 = vpop.eup %818 }
  0xfa   :  { %v511_v48 = vmul.f32 %v819_v45, %v509_v37 }
  0xfc   :  { %v513_v53 = vsel %vm512_vm4, %v509_v37, %v511_v48 }
  0xfd   :  { %v516_v15 = vsel %vm514_vm5, %v515_v47, %v513_v53 }
  0xfe   :  { %518 = vst [vmem:[#allocation7 + $0x100] sm:$0xff] %v516_v15  ;;  %520 = vst [vmem:[#allocation7 + $0x108] sm:$0xff] %v516_v15 }
 0x101   :  { %v821_v59 = vpop.eup %820 }
 0x102   :  { %v541_v21 = vmul.f32 %v821_v59, %v536_v27  ;;  %v542_v63 = vmul.f32 %v821_v59, %v537_v55 }
 0x104   :  { %v544_v2 = vmul.f32 %v543_v58, %v541_v21  ;;  %v546_v3 = vmul.f32 %v543_v58, %v542_v63  ;;  %v548_v4 = vmul.f32 %v541_v21, %v536_v27  ;;  %v550_v9 = vmul.f32 %v541_v21, %v537_v55 }
 0x105   :  { %v552_v35 = vmul.f32 %v542_v63, %v537_v55  ;;  %v556_v38 = vmul.f32 %v555_v60, %v541_v21  ;;  %v558_v6 = vmul.f32 %v555_v60, %v542_v63 }
 0x106   :  { %v545_v10 = vadd.f32 %v544_v2, %v532_v49  ;;  %v547_v11 = vadd.f32 %v546_v3, %v499_v44  ;;  %v549_v12 = vsub.f32 %v536_v27, %v548_v4  ;;  %v551_v13 = vsub.f32 %v537_v55, %v550_v9 }
 0x107   :  { %v553_v46 = vsub.f32 %v538_v0, %v552_v35  ;;  %v557_v16 = vadd.f32 %v556_v38, %v554_v52  ;;  %v559_v51 = vadd.f32 %v558_v6, %v504_v7 }
 0x108   :  { %v1298_v54 = vsel %vm1292_vm2, %v545_v10, %v498_v29  ;;  %v1302_v14 = vsel %vm1292_vm2, %v547_v11, %v499_v44  ;;  %v1306_v17 = vsel %vm1292_vm2, %v549_v12, %v500_v32  ;;  %v1310_v18 = vsel %vm1292_vm2, %v551_v13, %v501_v31 }
 0x109   :  { %v1314_v19 = vsel %vm1292_vm2, %v553_v46, %v502_v33  ;;  %568 = vst [vmem:[#allocation7 + $0x118] sm:$0xff] %v1298_v54  ;;  %v1319_v20 = vsel %vm1292_vm2, %v557_v16, %v503_v36  ;;  %v1323_v22 = vsel %vm1292_vm2, %v559_v51, %v504_v7  ;;  %v1326_v5 = vmax.f32 %v1306_v17, 0.0 }
 0x10a   :  { %570 = vst [vmem:[#allocation7 + $0x120] sm:$0xff] %v1319_v20  ;;  %v585_v1 = vadd.f32 %v1302_v14, %v1298_v54  ;;  %v592_v8 = vadd.f32 %v1323_v22, %v1319_v20  ;;  %v586_v23 = vmul.f32 2.0, %v1310_v18  ;;  %v590_v24 = vadd.f32 %v1314_v19, %v1310_v18 }
 0x10b   :  { %822 = vrsqrt.f32 %v1326_v5  ;;  %v591_v29 = vadd.f32 0.1, %v1314_v19  ;;  %vm574_vm8 = vcmp.eq.f32.partialorder %v1326_v5, inf  ;;  %vm576_vm9 = vcmp.eq.f32.partialorder %v1326_v5, 0.0 }
 0x10c   :  { %v593_v25 = vsel %vm530_vm7, %v585_v1, %v1298_v54  ;;  %v597_v26 = vsel %vm530_vm7, %v592_v8, %v1319_v20  ;;  %v587_v28 = vadd.f32 %v586_v23, %v1314_v19  ;;  %v595_v33 = vsel %vm530_vm7, %v590_v24, %v1310_v18 }
 0x10d   :  { %599 = vst [vmem:[#allocation7 + $0x140] sm:$0xff] %v593_v25  ;;  %v616_v31 = vadd.f32 %v593_v25, %v1302_v14  ;;  %601 = vst [vmem:[#allocation7 + $0x148] sm:$0xff] %v597_v26  ;;  %v623_v32 = vadd.f32 %v597_v26, %v1323_v22  ;;  %v596_v36 = vsel %vm530_vm7, %v591_v29, %v1314_v19  ;;  %v617_v37 = vmul.f32 2.0, %v595_v33 }
 0x10e   :  { %v588_v34 = vadd.f32 %v587_v28, %v1306_v17  ;;  %v621_v39 = vadd.f32 %v596_v36, %v595_v33  ;;  %v622_v40 = vadd.f32 0.1, %v596_v36  ;;  %v577_v60 = vand.u32 2147483648, %v1326_v5 }
 0x10f   :  { %v624_v41 = vsel %vm530_vm7, %v616_v31, %v1298_v54  ;;  %v628_v42 = vsel %vm530_vm7, %v623_v32, %v1319_v20  ;;  %v618_v30 = vadd.f32 %v617_v37, %v596_v36 }
 0x110   :  { %v589_v27 = vadd.f32 0.01, %v588_v34  ;;  %630 = vst [vmem:[#allocation7 + $0x168] sm:$0xff] %v624_v41  ;;  %v647_v62 = vadd.f32 %v624_v41, %v1302_v14  ;;  %632 = vst [vmem:[#allocation7 + $0x170] sm:$0xff] %v628_v42  ;;  %v654_v61 = vadd.f32 %v628_v42, %v1323_v22  ;;  %v626_v44 = vsel %vm530_vm7, %v621_v39, %v1310_v18 }
 0x111   :  { %v627_v45 = vsel %vm530_vm7, %v622_v40, %v1314_v19  ;;  %v648_v47 = vmul.f32 2.0, %v626_v44 }
 0x112   :  { %v594_v7 = vsel %vm530_vm7, %v589_v27, %v1306_v17  ;;  %v652_v48 = vadd.f32 %v627_v45, %v626_v44  ;;  %v653_v49 = vadd.f32 0.1, %v627_v45  ;;  %v655_v53 = vsel %vm530_vm7, %v647_v62, %v1298_v54 }
 0x113   :  { %v1371_v50 = vmax.f32 %v594_v7, 0.0  ;;  %v619_v52 = vadd.f32 %v618_v30, %v594_v7  ;;  %v659_v55 = vsel %vm530_vm7, %v654_v61, %v1319_v20  ;;  %661 = vst [vmem:[#allocation7 + $0x190] sm:$0xff] %v655_v53  ;;  %v678_v56 = vadd.f32 %v655_v53, %v1302_v14 }
 0x114   :  { %663 = vst [vmem:[#allocation7 + $0x198] sm:$0xff] %v659_v55  ;;  %v685_v15 = vadd.f32 %v659_v55, %v1323_v22  ;;  %v657_v58 = vsel %vm530_vm7, %v652_v48, %v1310_v18  ;;  %v649_v21 = vadd.f32 %v648_v47, %v627_v45  ;;  %v658_v2 = vsel %vm530_vm7, %v653_v49, %v1314_v19 }
 0x115   :  { %v823_v59 = vpop.eup %822  ;;  %824 = vrsqrt.f32 %v1371_v50  ;;  %v620_v0 = vadd.f32 0.01, %v619_v52  ;;  %v679_v3 = vmul.f32 2.0, %v657_v58  ;;  %v683_v4 = vadd.f32 %v658_v2, %v657_v58 }
 0x116   :  { %v573_v63 = vmul.f32 %v823_v59, %v1326_v5  ;;  %v684_v9 = vadd.f32 0.1, %v658_v2  ;;  %v686_v43 = vsel %vm530_vm7, %v678_v56, %v1298_v54  ;;  %v690_v35 = vsel %vm530_vm7, %v685_v15, %v1319_v20 }
 0x117   :  { %v625_v6 = vsel %vm530_vm7, %v620_v0, %v1306_v17  ;;  %692 = vst [vmem:[#allocation7 + $0x1b8] sm:$0xff] %v686_v43  ;;  %v709_v10 = vadd.f32 %v686_v43, %v1302_v14  ;;  %694 = vst [vmem:[#allocation7 + $0x1c0] sm:$0xff] %v690_v35  ;;  %v716_v46 = vadd.f32 %v690_v35, %v1323_v22  ;;  %vm605_vm10 = vcmp.eq.f32.partialorder %v1371_v50, inf }
 0x118   :  { %v575_v38 = vsel %vm574_vm8, %v1326_v5, %v573_v63  ;;  %v633_v12 = vmax.f32 %v625_v6, 0.0  ;;  %v650_v13 = vadd.f32 %v649_v21, %v625_v6  ;;  %v688_v16 = vsel %vm530_vm7, %v683_v4, %v1310_v18 }
 0x119   :  { %v578_v11 = vsel %vm576_vm9, %v577_v60, %v575_v38  ;;  %v689_v51 = vsel %vm530_vm7, %v684_v9, %v1314_v19  ;;  %v717_v1 = vsel %vm530_vm7, %v709_v10, %v1298_v54  ;;  %v680_v5 = vadd.f32 %v679_v3, %v658_v2 }
 0x11a   :  { %580 = vst [vmem:[#allocation7 + $0x128] sm:$0xff] %v578_v11  ;;  %582 = vst [vmem:[#allocation7 + $0x130] sm:$0xff] %v578_v11  ;;  %826 = vrsqrt.f32 %v633_v12  ;;  %v651_v8 = vadd.f32 0.01, %v650_v13  ;;  %v714_v23 = vadd.f32 %v689_v51, %v688_v16  ;;  %v710_v24 = vmul.f32 2.0, %v688_v16 }
 0x11b   :  { %723 = vst [vmem:[#allocation7 + $0x1e0] sm:$0xff] %v717_v1  ;;  %v740_v25 = vadd.f32 %v717_v1, %v1302_v14  ;;  %v721_v26 = vsel %vm530_vm7, %v716_v46, %v1319_v20  ;;  %vm607_vm11 = vcmp.eq.f32.partialorder %v1371_v50, 0.0  ;;  %v608_v32 = vand.u32 2147483648, %v1371_v50 }
 0x11c   :  { %v656_v28 = vsel %vm530_vm7, %v651_v8, %v1306_v17  ;;  %725 = vst [vmem:[#allocation7 + $0x1e8] sm:$0xff] %v721_v26  ;;  %v745_v29 = vadd.f32 %v721_v26, %v1323_v22  ;;  %v715_v34 = vadd.f32 0.1, %v689_v51  ;;  %v719_v37 = vsel %vm530_vm7, %v714_v23, %v1310_v18 }
 0x11d   :  { %v664_v33 = vmax.f32 %v656_v28, 0.0  ;;  %v681_v14 = vadd.f32 %v680_v5, %v656_v28  ;;  %v746_v39 = vsel %vm530_vm7, %v740_v25, %v1298_v54  ;;  %v711_v40 = vadd.f32 %v710_v24, %v689_v51 }
 0x11e   :  { %v748_v22 = vsel %vm530_vm7, %v745_v29, %v1319_v20  ;;  %750 = vst [vmem:[#allocation7 + $0x208] sm:$0xff] %v746_v39  ;;  %v741_v27 = vmul.f32 2.0, %v719_v37  ;;  %v720_v20 = vsel %vm530_vm7, %v715_v34, %v1314_v19  ;;  %vm636_vm12 = vcmp.eq.f32.partialorder %v633_v12, inf }
 0x11f   :  { %v825_v31 = vpop.eup %824  ;;  %828 = vrsqrt.f32 %v664_v33  ;;  %752 = vst [vmem:[#allocation7 + $0x210] sm:$0xff] %v748_v22  ;;  %v682_v42 = vadd.f32 0.01, %v681_v14  ;;  %v639_v62 = vand.u32 2147483648, %v633_v12  ;;  %vm638_vm13 = vcmp.eq.f32.partialorder %v633_v12, 0.0 }
 0x120   :  { %v604_v36 = vmul.f32 %v825_v31, %v1371_v50  ;;  %v742_v7 = vadd.f32 %v741_v27, %v720_v20  ;;  %vm667_vm14 = vcmp.eq.f32.partialorder %v664_v33, inf  ;;  %v670_v19 = vand.u32 2147483648, %v664_v33 }
 0x121   :  { %v687_v54 = vsel %vm530_vm7, %v682_v42, %v1306_v17  ;;  %vm669_vm15 = vcmp.eq.f32.partialorder %v664_v33, 0.0 }
 0x122   :  { %v606_v41 = vsel %vm605_vm10, %v1371_v50, %v604_v36  ;;  %v695_v61 = vmax.f32 %v687_v54, 0.0  ;;  %v712_v44 = vadd.f32 %v711_v40, %v687_v54 }
 0x123   :  { %v609_v18 = vsel %vm607_vm11, %v608_v32, %v606_v41 }
 0x124   :  { %611 = vst [vmem:[#allocation7 + $0x150] sm:$0xff] %v609_v18  ;;  %613 = vst [vmem:[#allocation7 + $0x158] sm:$0xff] %v609_v18  ;;  %v827_v30 = vpop.eup %826  ;;  %830 = vrsqrt.f32 %v695_v61  ;;  %v713_v48 = vadd.f32 0.01, %v712_v44  ;;  %vm698_vm0 = vcmp.eq.f32.partialorder %v695_v61, inf  ;;  %v701_v63 = vand.u32 2147483648, %v695_v61 }
 0x125   :  { %v635_v45 = vmul.f32 %v827_v30, %v633_v12  ;;  %vm700_vm1 = vcmp.eq.f32.partialorder %v695_v61, 0.0 }
 0x126   :  { %v718_v50 = vsel %vm530_vm7, %v713_v48, %v1306_v17 }
 0x127   :  { %v637_v47 = vsel %vm636_vm12, %v633_v12, %v635_v45  ;;  %v726_v53 = vmax.f32 %v718_v50, 0.0  ;;  %v743_v55 = vadd.f32 %v742_v7, %v718_v50 }
 0x128   :  { %v640_v49 = vsel %vm638_vm13, %v639_v62, %v637_v47 }
 0x129   :  { %642 = vst [vmem:[#allocation7 + $0x178] sm:$0xff] %v640_v49  ;;  %644 = vst [vmem:[#allocation7 + $0x180] sm:$0xff] %v640_v49  ;;  %v829_v52 = vpop.eup %828  ;;  %832 = vrsqrt.f32 %v726_v53  ;;  %v744_v58 = vadd.f32 0.01, %v743_v55  ;;  %vm729_vm3 = vcmp.eq.f32.partialorder %v726_v53, inf  ;;  %v732_v43 = vand.u32 2147483648, %v726_v53 }
 0x12a   :  { %v666_v56 = vmul.f32 %v829_v52, %v664_v33  ;;  %vm731_vm4 = vcmp.eq.f32.partialorder %v726_v53, 0.0 }
 0x12b   :  { %v747_v60 = vsel %vm530_vm7, %v744_v58, %v1306_v17 }
 0x12c   :  { %v668_v15 = vsel %vm667_vm14, %v664_v33, %v666_v56  ;;  %v753_v0 = vmax.f32 %v747_v60, 0.0 }
 0x12d   :  { %v671_v59 = vsel %vm669_vm15, %v670_v19, %v668_v15 }
 0x12e   :  { %673 = vst [vmem:[#allocation7 + $0x1a0] sm:$0xff] %v671_v59  ;;  %675 = vst [vmem:[#allocation7 + $0x1a8] sm:$0xff] %v671_v59  ;;  %v831_v21 = vpop.eup %830  ;;  %834 = vrsqrt.f32 %v753_v0  ;;  %vm756_vm5 = vcmp.eq.f32.partialorder %v753_v0, inf  ;;  %v759_v17 = vand.u32 2147483648, %v753_v0  ;;  %vm758_vm6 = vcmp.eq.f32.partialorder %v753_v0, 0.0 }
 0x12f   :  { %v697_v2 = vmul.f32 %v831_v21, %v695_v61 }
 0x131   :  { %v699_v3 = vsel %vm698_vm0, %v695_v61, %v697_v2 }
 0x132   :  { %v702_v4 = vsel %vm700_vm1, %v701_v63, %v699_v3 }
 0x133   :  { %704 = vst [vmem:[#allocation7 + $0x1c8] sm:$0xff] %v702_v4  ;;  %706 = vst [vmem:[#allocation7 + $0x1d0] sm:$0xff] %v702_v4  ;;  %v833_v9 = vpop.eup %832 }
 0x134   :  { %v728_v35 = vmul.f32 %v833_v9, %v726_v53 }
 0x136   :  { %v730_v38 = vsel %vm729_vm3, %v726_v53, %v728_v35 }
 0x137   :  { %v733_v6 = vsel %vm731_vm4, %v732_v43, %v730_v38 }
 0x138   :  { %735 = vst [vmem:[#allocation7 + $0x1f0] sm:$0xff] %v733_v6  ;;  %737 = vst [vmem:[#allocation7 + $0x1f8] sm:$0xff] %v733_v6  ;;  %v835_v57 = vpop.eup %834 }
 0x139   :  { %v755_v10 = vmul.f32 %v835_v57, %v753_v0 }
 0x13b   :  { %v757_v11 = vsel %vm756_vm5, %v753_v0, %v755_v10 }
 0x13c   :  { %v760_v12 = vsel %vm758_vm6, %v759_v17, %v757_v11 }
 0x13d   :  { %762 = vst [vmem:[#allocation7 + $0x218] sm:$0xff] %v760_v12  ;;  %764 = vst [vmem:[#allocation7 + $0x220] sm:$0xff] %v760_v12 }
 0x13e   :  { %891 = shalt.err (!%p888_p6)
}
 0x13f   :  { %s892_s10 = scalar_lea.hbm %s1472_s2, 8960 }
 0x140   :  { %p893_p7 = scmp.ne.s32.totalorder %s1472_s2, %s892_s10  ;;  %p896_p8 = scmp.lt.u32.totalorder %s892_s10, %s1472_s2 }
 0x142   :  { %p898_p9 = pnand %p896_p8, %p893_p7 }
 0x144   :  { %901 = shalt.err (!%p898_p9)
}
 0x145   :  { %778 = dma.vmem_to_hbm [thread:$0]  %s773_s6, 8960, %s1472_s2, [#allocation4], %s909_s19, %s909_s19, %s910_s20  }
 0x146   :  { %906 = dma.done.wait [#allocation4], 8960  }
 0x147   :  { %907 = vsyncadd [#allocation4], 4294958336 }
 0x148   :  { %782 = vsyncpa [#allocation3], 1 }
 0x149   :  { %783 = vsyncpa [#allocation6], 1 }
 0x14a   :  { %784 = vsyncpa [#allocation4], 1 }

</bundles_post_ra>
